<compile_context>
chip_gen: v7x
topology: tpu7x:2x2x1
jax: 0.10.0
libtpu: 0.0.40
codegen_flags: <defaults>
</compile_context>

<pallas_src>
import functools
import jax
import jax.numpy as jnp
from jax.experimental import pallas as pl
from jax.experimental.pallas import tpu as pltpu


def _round_up(x, m):
    return ((x + m - 1) // m) * m


# ----------------------------------------------------------------------------
# Kernel 1: single-K-step matmul with fused bias + optional residual skip +
# activation.  bf16 operands, f32 accumulation/epilogue.
# ----------------------------------------------------------------------------
def _matmul_kernel(*refs, act, has_skip):
    if has_skip:
        a_ref, b_ref, bias_ref, s_ref, o_ref = refs
    else:
        a_ref, b_ref, bias_ref, o_ref = refs
        s_ref = None
    acc = jnp.dot(a_ref[...], b_ref[...], preferred_element_type=jnp.float32)
    acc = acc + bias_ref[...]
    if has_skip:
        acc = acc + s_ref[...].astype(jnp.float32)
    if act == "relu":
        acc = jnp.maximum(acc, 0.0)
    elif act == "sigmoid":
        acc = jax.nn.sigmoid(acc)
    o_ref[...] = acc.astype(o_ref.dtype)


def _pick_tm(M):
    # >=2 M blocks when possible (keeps both v7x TensorCores busy), tile <= 512.
    return max(128, min(512, _round_up(M, 256) // 2))


def matmul_bias_act(a, b, bias=None, act="none", skip=None, out_dtype=jnp.bfloat16):
    """(M,K) @ (K,N) + bias [+ skip], fused activation.  K/N are full-dim blocks."""
    M, K = a.shape
    K2, N = b.shape
    assert K == K2
    a = a.astype(jnp.bfloat16)
    b = b.astype(jnp.bfloat16)
    if bias is None:
        bias = jnp.zeros((N,), jnp.float32)
    bias = bias.astype(jnp.float32).reshape(1, N)

    tm = _pick_tm(M)
    Mp = _round_up(M, tm)
    if Mp != M:
        a = jnp.pad(a, ((0, Mp - M), (0, 0)))
        if skip is not None:
            skip = jnp.pad(skip, ((0, Mp - M), (0, 0)))
    has_skip = skip is not None

    in_specs = [
        pl.BlockSpec((tm, K), lambda i: (i, 0)),
        pl.BlockSpec((K, N), lambda i: (0, 0)),
        pl.BlockSpec((1, N), lambda i: (0, 0)),
    ]
    args = [a, b, bias]
    if has_skip:
        in_specs.append(pl.BlockSpec((tm, N), lambda i: (i, 0)))
        args.append(skip.astype(jnp.bfloat16))

    out = pl.pallas_call(
        functools.partial(_matmul_kernel, act=act, has_skip=has_skip),
        out_shape=jax.ShapeDtypeStruct((Mp, N), out_dtype),
        grid_spec=pltpu.PrefetchScalarGridSpec(
            num_scalar_prefetch=0,
            grid=(Mp // tm,),
            in_specs=in_specs,
            out_specs=pl.BlockSpec((tm, N), lambda i: (i, 0)),
        ),
        compiler_params=pltpu.CompilerParams(
            dimension_semantics=("parallel",)),
    )(*args)
    return out[:M] if Mp != M else out


# ----------------------------------------------------------------------------
# Kernel 2: fully fused RGA head, one grid step per batch element.
#   theta/phi/gx projections, relation Gs = theta @ phi^T and Gs^T = phi @
#   theta^T (both straight MXU matmuls, no in-kernel transpose), gg projection
#   (no gs_joint materialization), gx row-mean, ws1/ws2 gating MLP (VPU
#   multiply + lane reduce for the N=1 tail), sigmoid, gating multiply,
#   1x1 channel-expansion conv, and the 6-part average pooling.
# ----------------------------------------------------------------------------
def _rga_head_kernel(x_ref, thw_ref, thb_ref, phw_ref, phb_ref,
                     ggwr_ref, ggwc_ref, ggb_ref,
                     gxw_ref, gxb_ref,
                     w1x_ref, w1g_ref, w1b_ref,
                     w2_ref, w2b_ref,
                     expw_ref, expb_ref, pmat_ref,
                     feat_ref, pool_ref, *, pool_scale):
    f32 = jnp.float32
    bf = jnp.bfloat16
    x = x_ref[0]                                                   # (HW, C) bf16

    theta = jnp.maximum(
        jnp.dot(x, thw_ref[...], preferred_element_type=f32) + thb_ref[...], 0.0)
    phi = jnp.maximum(
        jnp.dot(x, phw_ref[...], preferred_element_type=f32) + phb_ref[...], 0.0)
    theta16 = theta.astype(bf)
    phi16 = phi.astype(bf)

    # pairwise relation Gs = theta @ phi^T and Gs^T = phi @ theta^T
    gs16 = jax.lax.dot_general(
        theta16, phi16, dimension_numbers=(((1,), (1,)), ((), ())),
        preferred_element_type=f32).astype(bf)                     # (HW, HW)
    gst16 = jax.lax.dot_general(
        phi16, theta16, dimension_numbers=(((1,), (1,)), ((), ())),
        preferred_element_type=f32).astype(bf)                     # (HW, HW)

    gg = (jnp.dot(gs16, ggwr_ref[...], preferred_element_type=f32)
          + jnp.dot(gst16, ggwc_ref[...], preferred_element_type=f32)
          + ggb_ref[...])
    gg = jnp.maximum(gg, 0.0)                                      # (HW, hwd)

    gx = jnp.maximum(
        jnp.dot(x, gxw_ref[...], preferred_element_type=f32) + gxb_ref[...], 0.0)
    gxm = jnp.mean(gx, axis=-1, keepdims=True)                     # (HW, 1)

    h = jnp.maximum(
        gxm * w1x_ref[...]
        + jnp.dot(gg.astype(bf), w1g_ref[...], preferred_element_type=f32)
        + w1b_ref[...], 0.0)                                       # (HW, 8)

    gate = jax.nn.sigmoid(
        jnp.sum(h * w2_ref[...], axis=-1, keepdims=True) + w2b_ref[...])   # (HW, 1)

    gated16 = (x.astype(f32) * gate).astype(bf)                    # (HW, C)

    # 1x1 channel-expansion conv fused in
    feat = jnp.maximum(
        jnp.dot(gated16, expw_ref[...], preferred_element_type=f32)
        + expb_ref[...], 0.0)                                      # (HW, Cfeat)
    feat16 = feat.astype(bf)
    feat_ref[0] = feat16

    # 6-part average pooling: (num_part, HW) @ (HW, Cfeat)
    pool_ref[0] = jnp.dot(pmat_ref[...], feat16,
                          preferred_element_type=f32) * pool_scale


def rga_head(p, x_b_hw_c, feat_h, feat_w, num_part):
    """Returns (feat (B,HW,Cfeat) bf16, pooled (B,num_part,Cfeat) f32)."""
    B, HW, C = x_b_hw_c.shape
    assert HW == feat_h * feat_w
    cs = p["theta_w"].shape[1]
    hwd = p["gg_w"].shape[1]
    assert p["gg_w"].shape[0] == 2 * HW
    c_feat = p["exp_w"].shape[-1]
    bf, f32 = jnp.bfloat16, jnp.float32

    # part-pooling matrix: avg_pool2d(kernel=(kx, W), stride=(sx, W))
    sx = feat_h // num_part
    kx = feat_h - sx * (num_part - 1)
    rows = jnp.arange(feat_h)[None, :]
    lo = (jnp.arange(num_part) * sx)[:, None]
    sel = (rows >= lo) & (rows < lo + kx)                          # (num_part, H)
    pmat = jnp.repeat(sel.astype(bf), feat_w, axis=1)              # (num_part, H*W)
    pool_scale = 1.0 / float(kx * feat_w)

    args = [
        x_b_hw_c.astype(bf),
        p["theta_w"].astype(bf), p["theta_b"].reshape(1, cs).astype(f32),
        p["phi_w"].astype(bf), p["phi_b"].reshape(1, cs).astype(f32),
        p["gg_w"][:HW].astype(bf), p["gg_w"][HW:].astype(bf),
        p["gg_b"].reshape(1, hwd).astype(f32),
        p["gx_w"].astype(bf), p["gx_b"].reshape(1, cs).astype(f32),
        p["ws1_w"][0:1].astype(f32), p["ws1_w"][1:].astype(bf),
        p["ws1_b"].reshape(1, -1).astype(f32),
        p["ws2_w"].T.astype(f32), p["ws2_b"].reshape(1, 1).astype(f32),
        p["exp_w"].reshape(C, c_feat).astype(bf),
        p["exp_b"].reshape(1, c_feat).astype(f32),
        pmat,
    ]
    in_specs = ([pl.BlockSpec((1, HW, C), lambda b: (b, 0, 0))]
                + [pl.BlockSpec(a.shape, lambda b: (0, 0)) for a in args[1:]])

    feat, pooled = pl.pallas_call(
        functools.partial(_rga_head_kernel, pool_scale=pool_scale),
        out_shape=(jax.ShapeDtypeStruct((B, HW, c_feat), jnp.bfloat16),
                   jax.ShapeDtypeStruct((B, num_part, c_feat), jnp.float32)),
        grid_spec=pltpu.PrefetchScalarGridSpec(
            num_scalar_prefetch=0,
            grid=(B,),
            in_specs=in_specs,
            out_specs=(pl.BlockSpec((1, HW, c_feat), lambda b: (b, 0, 0)),
                       pl.BlockSpec((1, num_part, c_feat), lambda b: (b, 0, 0))),
        ),
        compiler_params=pltpu.CompilerParams(
            dimension_semantics=("parallel",)),
    )(*args)
    return feat, pooled


# ----------------------------------------------------------------------------
# Convolution = im2col (plain-JAX glue, bf16 patches) + single-K-step Pallas
# matmul with fused bias/skip/activation.
# ----------------------------------------------------------------------------
def conv2d(x, w, b, stride=1, pad=0, act="none", skip=None):
    """x: (B,H,W,Cin) NHWC bf16, w: (kh,kw,Cin,Cout), b: (Cout,), skip: (B,Ho,Wo,Cout)."""
    kh, kw, cin, cout = w.shape
    B, H, W, C = x.shape
    assert C == cin
    if kh == 1 and kw == 1 and pad == 0:
        if stride > 1:
            x = x[:, ::stride, ::stride, :]
        Ho, Wo = x.shape[1], x.shape[2]
        patches = x.reshape(B * Ho * Wo, cin)
    else:
        xp = jnp.pad(x, ((0, 0), (pad, pad), (pad, pad), (0, 0)))
        Hp, Wp = xp.shape[1], xp.shape[2]
        Ho = (Hp - kh) // stride + 1
        Wo = (Wp - kw) // stride + 1
        cols = []
        for i in range(kh):
            for j in range(kw):
                cols.append(xp[:, i:i + (Ho - 1) * stride + 1:stride,
                                j:j + (Wo - 1) * stride + 1:stride, :])
        patches = jnp.concatenate(cols, axis=-1).reshape(B * Ho * Wo, kh * kw * cin)
    skip_flat = None if skip is None else skip.reshape(B * Ho * Wo, cout)
    out = matmul_bias_act(patches, w.reshape(kh * kw * cin, cout), b,
                          act=act, skip=skip_flat)
    return out.reshape(B, Ho, Wo, cout)


# ----------------------------------------------------------------------------
# Stand-in RGA_Branch (see TODO at top) + the exact part-pooling forward.
# ----------------------------------------------------------------------------
def thermal_net_resnet_forward(params, x_nchw, num_part=6):
    # NCHW (PyTorch) -> NHWC (kernel layout), bf16 internal dtype
    x = jnp.transpose(x_nchw, (0, 2, 3, 1)).astype(jnp.bfloat16)

    # stem: 3x3 s2
    x = conv2d(x, params["conv1_w"], params["conv1_b"], stride=2, pad=1, act="relu")
    # residual block (s2); residual add + ReLU fused into blk_b's epilogue
    skip = conv2d(x, params["blk_p_w"], params["blk_p_b"], stride=2, pad=0, act="none")
    y = conv2d(x, params["blk_a_w"], params["blk_a_b"], stride=2, pad=1, act="relu")
    y = conv2d(y, params["blk_b_w"], params["blk_b_b"], stride=1, pad=1,
               act="relu", skip=skip)

    # fused RGA spatial attention + channel expansion + 6-part average pooling
    B, H, W, C = y.shape
    feat, pooled = rga_head(params, y.reshape(B, H * W, C), H, W, num_part)
    c_feat = feat.shape[-1]

    ori_x = jnp.transpose(feat.reshape(B, H, W, c_feat).astype(jnp.float32),
                          (0, 3, 1, 2))                       # NCHW "ori_x" clone
    x_parts = jnp.transpose(pooled, (0, 2, 1))                # (B, Cfeat, num_part)
    return x_parts, ori_x


# ----------------------------------------------------------------------------
# Deterministic parameter init (synthetic; no checkpoint loading).
# ----------------------------------------------------------------------------
def init_params(key, c_stem=16, c_mid=32, c_feat=64, hw=128, s_ratio=8, d_ratio=8):
    keys = iter(jax.random.split(key, 32))

    def conv_w(kh, kw, cin, cout):
        fan_in = kh * kw * cin
        return jax.random.normal(next(keys), (kh, kw, cin, cout),
                                 jnp.float32) * (2.0 / fan_in) ** 0.5

    def lin_w(cin, cout):
        return jax.random.normal(next(keys), (cin, cout),
                                 jnp.float32) * (2.0 / cin) ** 0.5

    cs = c_mid // s_ratio
    hwd = hw // d_ratio
    return {
        "conv1_w": conv_w(3, 3, 3, c_stem), "conv1_b": jnp.zeros((c_stem,), jnp.float32),
        "blk_a_w": conv_w(3, 3, c_stem, c_mid), "blk_a_b": jnp.zeros((c_mid,), jnp.float32),
        "blk_b_w": conv_w(3, 3, c_mid, c_mid), "blk_b_b": jnp.zeros((c_mid,), jnp.float32),
        "blk_p_w": conv_w(1, 1, c_stem, c_mid), "blk_p_b": jnp.zeros((c_mid,), jnp.float32),
        "theta_w": lin_w(c_mid, cs), "theta_b": jnp.zeros((cs,), jnp.float32),
        "phi_w": lin_w(c_mid, cs), "phi_b": jnp.zeros((cs,), jnp.float32),
        "gg_w": lin_w(2 * hw, hwd), "gg_b": jnp.zeros((hwd,), jnp.float32),
        "gx_w": lin_w(c_mid, cs), "gx_b": jnp.zeros((cs,), jnp.float32),
        "ws1_w": lin_w(1 + hwd, 8), "ws1_b": jnp.zeros((8,), jnp.float32),
        "ws2_w": lin_w(8, 1), "ws2_b": jnp.zeros((1,), jnp.float32),
        "exp_w": conv_w(1, 1, c_mid, c_feat), "exp_b": jnp.zeros((c_feat,), jnp.float32),
    }


if __name__ == "__main__":
    # small shapes consistent with the module: NCHW image input, RGB-like 3 channels
    B, C_in, H_in, W_in = 2, 3, 64, 32          # backbone downsamples x4 -> feature 16x8
    key = jax.random.PRNGKey(0)
    x_nchw = jax.random.normal(key, (B, C_in, H_in, W_in), jnp.float32)

    params = init_params(jax.random.PRNGKey(42), hw=(H_in // 4) * (W_in // 4))

    fwd = jax.jit(thermal_net_resnet_forward)
    x_parts, ori_x = fwd(params, x_nchw)
    jax.block_until_ready((x_parts, ori_x))

    # thermal_net_resnet.forward returns (x, ori_x):
    #   ori_x: backbone feature map (B, C_feat, H, W) [NCHW]
    #   x    : 6-part pooled features (B, C_feat, 6)
    assert ori_x.shape == (B, 64, H_in // 4, W_in // 4), ori_x.shape
    assert x_parts.shape == (B, 64, 6), x_parts.shape
    assert bool(jnp.all(jnp.isfinite(x_parts))) and bool(jnp.all(jnp.isfinite(ori_x)))
    # (the reference module's debug print of ori_x.shape is omitted to keep stdout clean)
    print("KERNEL_OK")
</pallas_src>

<mosaic_0001>
module attributes {stable_mosaic.version = 11 : i64} {
  func.func @_matmul_kernel(%arg0: i32, %arg1: memref<512x27xbf16, #tpu.memory_space<vmem>>, %arg2: memref<27x16xbf16, #tpu.memory_space<vmem>>, %arg3: memref<1x16xf32, #tpu.memory_space<vmem>>, %arg4: memref<512x16xbf16, #tpu.memory_space<vmem>>) attributes {dimension_semantics = [#tpu.dimension_semantics<parallel>], iteration_bounds = array<i64: 2>, scalar_prefetch = 0 : i64, scratch_operands = 0 : i64, tpu.core_type = #tpu.core_type<tc>, window_params = [{transform_indices = @transform_0, window_bounds = array<i64: 512, 27>}, {pipeline_mode = #tpu.pipeline_mode<synchronous>, transform_indices = @transform_1, window_bounds = array<i64: 27, 16>}, {pipeline_mode = #tpu.pipeline_mode<synchronous>, transform_indices = @transform_2, window_bounds = array<i64: 1, 16>}, {transform_indices = @transform_3, window_bounds = array<i64: 512, 16>}]} {
    %c0 = arith.constant 0 : index
    %c0_0 = arith.constant 0 : index
    %0 = vector.load %arg1[%c0, %c0_0] : memref<512x27xbf16, #tpu.memory_space<vmem>>, vector<512x27xbf16>
    %c0_1 = arith.constant 0 : index
    %c0_2 = arith.constant 0 : index
    %1 = vector.load %arg2[%c0_1, %c0_2] : memref<27x16xbf16, #tpu.memory_space<vmem>>, vector<27x16xbf16>
    %cst = arith.constant dense<0.000000e+00> : vector<512x16xf32>
    %2 = tpu.matmul %0, %1, %cst {dimension_numbers = #tpu.dot_dimension_numbers<[1], [0], [0], [1], [0, 0, 1, 1], [], []>} : vector<512x27xbf16>, vector<27x16xbf16>, vector<512x16xf32> -> vector<512x16xf32>
    %c0_3 = arith.constant 0 : index
    %c0_4 = arith.constant 0 : index
    %3 = vector.load %arg3[%c0_3, %c0_4] : memref<1x16xf32, #tpu.memory_space<vmem>>, vector<1x16xf32>
    %4 = vector.broadcast %3 : vector<1x16xf32> to vector<512x16xf32>
    %5 = arith.addf %2, %4 : vector<512x16xf32>
    %cst_5 = arith.constant 0.000000e+00 : f32
    %6 = vector.broadcast %cst_5 : f32 to vector<512x16xf32>
    %7 = arith.maximumf %5, %6 : vector<512x16xf32>
    %8 = arith.truncf %7 : vector<512x16xf32> to vector<512x16xbf16>
    %c0_6 = arith.constant 0 : index
    %c0_7 = arith.constant 0 : index
    %9 = vector.load %arg4[%c0_6, %c0_7] : memref<512x16xbf16, #tpu.memory_space<vmem>>, vector<512x16xbf16>
    tpu.vector_store %arg4[%c0_6, %c0_7], %8 {strides = array<i32>} : memref<512x16xbf16, #tpu.memory_space<vmem>>, vector<512x16xbf16>,
    return
  }
  func.func @transform_0(%arg0: i32) -> (i32, i32) {
    %c0_i32 = arith.constant 0 : i32
    %c0_i32_0 = arith.constant 0 : i32
    return %arg0, %c0_i32 : i32, i32
  }
  func.func @transform_1(%arg0: i32) -> (i32, i32) {
    %c0_i32 = arith.constant 0 : i32
    %c0_i32_0 = arith.constant 0 : i32
    %c0_i32_1 = arith.constant 0 : i32
    return %c0_i32, %c0_i32_0 : i32, i32
  }
  func.func @transform_2(%arg0: i32) -> (i32, i32) {
    %c0_i32 = arith.constant 0 : i32
    %c0_i32_0 = arith.constant 0 : i32
    %c0_i32_1 = arith.constant 0 : i32
    return %c0_i32, %c0_i32_0 : i32, i32
  }
  func.func @transform_3(%arg0: i32) -> (i32, i32) {
    %c0_i32 = arith.constant 0 : i32
    %c0_i32_0 = arith.constant 0 : i32
    return %arg0, %c0_i32 : i32, i32
  }
}

module attributes {stable_mosaic.version = 11 : i64} {
  func.func @_matmul_kernel(%arg0: i32, %arg1: memref<128x144xbf16, #tpu.memory_space<vmem>>, %arg2: memref<144x32xbf16, #tpu.memory_space<vmem>>, %arg3: memref<1x32xf32, #tpu.memory_space<vmem>>, %arg4: memref<128x32xbf16, #tpu.memory_space<vmem>>) attributes {dimension_semantics = [#tpu.dimension_semantics<parallel>], iteration_bounds = array<i64: 2>, scalar_prefetch = 0 : i64, scratch_operands = 0 : i64, tpu.core_type = #tpu.core_type<tc>, window_params = [{transform_indices = @transform_0, window_bounds = array<i64: 128, 144>}, {pipeline_mode = #tpu.pipeline_mode<synchronous>, transform_indices = @transform_1, window_bounds = array<i64: 144, 32>}, {pipeline_mode = #tpu.pipeline_mode<synchronous>, transform_indices = @transform_2, window_bounds = array<i64: 1, 32>}, {transform_indices = @transform_3, window_bounds = array<i64: 128, 32>}]} {
    %c0 = arith.constant 0 : index
    %c0_0 = arith.constant 0 : index
    %0 = vector.load %arg1[%c0, %c0_0] : memref<128x144xbf16, #tpu.memory_space<vmem>>, vector<128x144xbf16>
    %c0_1 = arith.constant 0 : index
    %c0_2 = arith.constant 0 : index
    %1 = vector.load %arg2[%c0_1, %c0_2] : memref<144x32xbf16, #tpu.memory_space<vmem>>, vector<144x32xbf16>
    %cst = arith.constant dense<0.000000e+00> : vector<128x32xf32>
    %2 = tpu.matmul %0, %1, %cst {dimension_numbers = #tpu.dot_dimension_numbers<[1], [0], [0], [1], [0, 0, 1, 1], [], []>} : vector<128x144xbf16>, vector<144x32xbf16>, vector<128x32xf32> -> vector<128x32xf32>
    %c0_3 = arith.constant 0 : index
    %c0_4 = arith.constant 0 : index
    %3 = vector.load %arg3[%c0_3, %c0_4] : memref<1x32xf32, #tpu.memory_space<vmem>>, vector<1x32xf32>
    %4 = vector.broadcast %3 : vector<1x32xf32> to vector<128x32xf32>
    %5 = arith.addf %2, %4 : vector<128x32xf32>
    %cst_5 = arith.constant 0.000000e+00 : f32
    %6 = vector.broadcast %cst_5 : f32 to vector<128x32xf32>
    %7 = arith.maximumf %5, %6 : vector<128x32xf32>
    %8 = arith.truncf %7 : vector<128x32xf32> to vector<128x32xbf16>
    %c0_6 = arith.constant 0 : index
    %c0_7 = arith.constant 0 : index
    %9 = vector.load %arg4[%c0_6, %c0_7] : memref<128x32xbf16, #tpu.memory_space<vmem>>, vector<128x32xbf16>
    tpu.vector_store %arg4[%c0_6, %c0_7], %8 {strides = array<i32>} : memref<128x32xbf16, #tpu.memory_space<vmem>>, vector<128x32xbf16>,
    return
  }
  func.func @transform_0(%arg0: i32) -> (i32, i32) {
    %c0_i32 = arith.constant 0 : i32
    %c0_i32_0 = arith.constant 0 : i32
    return %arg0, %c0_i32 : i32, i32
  }
  func.func @transform_1(%arg0: i32) -> (i32, i32) {
    %c0_i32 = arith.constant 0 : i32
    %c0_i32_0 = arith.constant 0 : i32
    %c0_i32_1 = arith.constant 0 : i32
    return %c0_i32, %c0_i32_0 : i32, i32
  }
  func.func @transform_2(%arg0: i32) -> (i32, i32) {
    %c0_i32 = arith.constant 0 : i32
    %c0_i32_0 = arith.constant 0 : i32
    %c0_i32_1 = arith.constant 0 : i32
    return %c0_i32, %c0_i32_0 : i32, i32
  }
  func.func @transform_3(%arg0: i32) -> (i32, i32) {
    %c0_i32 = arith.constant 0 : i32
    %c0_i32_0 = arith.constant 0 : i32
    return %arg0, %c0_i32 : i32, i32
  }
}

module attributes {stable_mosaic.version = 11 : i64} {
  func.func @_matmul_kernel(%arg0: i32, %arg1: memref<128x16xbf16, #tpu.memory_space<vmem>>, %arg2: memref<16x32xbf16, #tpu.memory_space<vmem>>, %arg3: memref<1x32xf32, #tpu.memory_space<vmem>>, %arg4: memref<128x32xbf16, #tpu.memory_space<vmem>>) attributes {dimension_semantics = [#tpu.dimension_semantics<parallel>], iteration_bounds = array<i64: 2>, scalar_prefetch = 0 : i64, scratch_operands = 0 : i64, tpu.core_type = #tpu.core_type<tc>, window_params = [{transform_indices = @transform_0, window_bounds = array<i64: 128, 16>}, {pipeline_mode = #tpu.pipeline_mode<synchronous>, transform_indices = @transform_1, window_bounds = array<i64: 16, 32>}, {pipeline_mode = #tpu.pipeline_mode<synchronous>, transform_indices = @transform_2, window_bounds = array<i64: 1, 32>}, {transform_indices = @transform_3, window_bounds = array<i64: 128, 32>}]} {
    %c0 = arith.constant 0 : index
    %c0_0 = arith.constant 0 : index
    %0 = vector.load %arg1[%c0, %c0_0] : memref<128x16xbf16, #tpu.memory_space<vmem>>, vector<128x16xbf16>
    %c0_1 = arith.constant 0 : index
    %c0_2 = arith.constant 0 : index
    %1 = vector.load %arg2[%c0_1, %c0_2] : memref<16x32xbf16, #tpu.memory_space<vmem>>, vector<16x32xbf16>
    %cst = arith.constant dense<0.000000e+00> : vector<128x32xf32>
    %2 = tpu.matmul %0, %1, %cst {dimension_numbers = #tpu.dot_dimension_numbers<[1], [0], [0], [1], [0, 0, 1, 1], [], []>} : vector<128x16xbf16>, vector<16x32xbf16>, vector<128x32xf32> -> vector<128x32xf32>
    %c0_3 = arith.constant 0 : index
    %c0_4 = arith.constant 0 : index
    %3 = vector.load %arg3[%c0_3, %c0_4] : memref<1x32xf32, #tpu.memory_space<vmem>>, vector<1x32xf32>
    %4 = vector.broadcast %3 : vector<1x32xf32> to vector<128x32xf32>
    %5 = arith.addf %2, %4 : vector<128x32xf32>
    %6 = arith.truncf %5 : vector<128x32xf32> to vector<128x32xbf16>
    %c0_5 = arith.constant 0 : index
    %c0_6 = arith.constant 0 : index
    %7 = vector.load %arg4[%c0_5, %c0_6] : memref<128x32xbf16, #tpu.memory_space<vmem>>, vector<128x32xbf16>
    tpu.vector_store %arg4[%c0_5, %c0_6], %6 {strides = array<i32>} : memref<128x32xbf16, #tpu.memory_space<vmem>>, vector<128x32xbf16>,
    return
  }
  func.func @transform_0(%arg0: i32) -> (i32, i32) {
    %c0_i32 = arith.constant 0 : i32
    %c0_i32_0 = arith.constant 0 : i32
    return %arg0, %c0_i32 : i32, i32
  }
  func.func @transform_1(%arg0: i32) -> (i32, i32) {
    %c0_i32 = arith.constant 0 : i32
    %c0_i32_0 = arith.constant 0 : i32
    %c0_i32_1 = arith.constant 0 : i32
    return %c0_i32, %c0_i32_0 : i32, i32
  }
  func.func @transform_2(%arg0: i32) -> (i32, i32) {
    %c0_i32 = arith.constant 0 : i32
    %c0_i32_0 = arith.constant 0 : i32
    %c0_i32_1 = arith.constant 0 : i32
    return %c0_i32, %c0_i32_0 : i32, i32
  }
  func.func @transform_3(%arg0: i32) -> (i32, i32) {
    %c0_i32 = arith.constant 0 : i32
    %c0_i32_0 = arith.constant 0 : i32
    return %arg0, %c0_i32 : i32, i32
  }
}

module attributes {stable_mosaic.version = 11 : i64} {
  func.func @_matmul_kernel(%arg0: i32, %arg1: memref<128x288xbf16, #tpu.memory_space<vmem>>, %arg2: memref<288x32xbf16, #tpu.memory_space<vmem>>, %arg3: memref<1x32xf32, #tpu.memory_space<vmem>>, %arg4: memref<128x32xbf16, #tpu.memory_space<vmem>>, %arg5: memref<128x32xbf16, #tpu.memory_space<vmem>>) attributes {dimension_semantics = [#tpu.dimension_semantics<parallel>], iteration_bounds = array<i64: 2>, scalar_prefetch = 0 : i64, scratch_operands = 0 : i64, tpu.core_type = #tpu.core_type<tc>, window_params = [{transform_indices = @transform_0, window_bounds = array<i64: 128, 288>}, {pipeline_mode = #tpu.pipeline_mode<synchronous>, transform_indices = @transform_1, window_bounds = array<i64: 288, 32>}, {pipeline_mode = #tpu.pipeline_mode<synchronous>, transform_indices = @transform_2, window_bounds = array<i64: 1, 32>}, {transform_indices = @transform_3, window_bounds = array<i64: 128, 32>}, {transform_indices = @transform_4, window_bounds = array<i64: 128, 32>}]} {
    %c0 = arith.constant 0 : index
    %c0_0 = arith.constant 0 : index
    %0 = vector.load %arg1[%c0, %c0_0] : memref<128x288xbf16, #tpu.memory_space<vmem>>, vector<128x288xbf16>
    %c0_1 = arith.constant 0 : index
    %c0_2 = arith.constant 0 : index
    %1 = vector.load %arg2[%c0_1, %c0_2] : memref<288x32xbf16, #tpu.memory_space<vmem>>, vector<288x32xbf16>
    %cst = arith.constant dense<0.000000e+00> : vector<128x32xf32>
    %2 = tpu.matmul %0, %1, %cst {dimension_numbers = #tpu.dot_dimension_numbers<[1], [0], [0], [1], [0, 0, 1, 1], [], []>} : vector<128x288xbf16>, vector<288x32xbf16>, vector<128x32xf32> -> vector<128x32xf32>
    %c0_3 = arith.constant 0 : index
    %c0_4 = arith.constant 0 : index
    %3 = vector.load %arg3[%c0_3, %c0_4] : memref<1x32xf32, #tpu.memory_space<vmem>>, vector<1x32xf32>
    %4 = vector.broadcast %3 : vector<1x32xf32> to vector<128x32xf32>
    %5 = arith.addf %2, %4 : vector<128x32xf32>
    %c0_5 = arith.constant 0 : index
    %c0_6 = arith.constant 0 : index
    %6 = vector.load %arg4[%c0_5, %c0_6] : memref<128x32xbf16, #tpu.memory_space<vmem>>, vector<128x32xbf16>
    %7 = arith.extf %6 : vector<128x32xbf16> to vector<128x32xf32>
    %8 = arith.addf %5, %7 : vector<128x32xf32>
    %cst_7 = arith.constant 0.000000e+00 : f32
    %9 = vector.broadcast %cst_7 : f32 to vector<128x32xf32>
    %10 = arith.maximumf %8, %9 : vector<128x32xf32>
    %11 = arith.truncf %10 : vector<128x32xf32> to vector<128x32xbf16>
    %c0_8 = arith.constant 0 : index
    %c0_9 = arith.constant 0 : index
    %12 = vector.load %arg5[%c0_8, %c0_9] : memref<128x32xbf16, #tpu.memory_space<vmem>>, vector<128x32xbf16>
    tpu.vector_store %arg5[%c0_8, %c0_9], %11 {strides = array<i32>} : memref<128x32xbf16, #tpu.memory_space<vmem>>, vector<128x32xbf16>,
    return
  }
  func.func @transform_0(%arg0: i32) -> (i32, i32) {
    %c0_i32 = arith.constant 0 : i32
    %c0_i32_0 = arith.constant 0 : i32
    return %arg0, %c0_i32 : i32, i32
  }
  func.func @transform_1(%arg0: i32) -> (i32, i32) {
    %c0_i32 = arith.constant 0 : i32
    %c0_i32_0 = arith.constant 0 : i32
    %c0_i32_1 = arith.constant 0 : i32
    return %c0_i32, %c0_i32_0 : i32, i32
  }
  func.func @transform_2(%arg0: i32) -> (i32, i32) {
    %c0_i32 = arith.constant 0 : i32
    %c0_i32_0 = arith.constant 0 : i32
    %c0_i32_1 = arith.constant 0 : i32
    return %c0_i32, %c0_i32_0 : i32, i32
  }
  func.func @transform_3(%arg0: i32) -> (i32, i32) {
    %c0_i32 = arith.constant 0 : i32
    %c0_i32_0 = arith.constant 0 : i32
    return %arg0, %c0_i32 : i32, i32
  }
  func.func @transform_4(%arg0: i32) -> (i32, i32) {
    %c0_i32 = arith.constant 0 : i32
    %c0_i32_0 = arith.constant 0 : i32
    return %arg0, %c0_i32 : i32, i32
  }
}

module attributes {stable_mosaic.version = 11 : i64} {
  func.func @_rga_head_kernel(%arg0: i32, %arg1: memref<1x128x32xbf16, #tpu.memory_space<vmem>>, %arg2: memref<32x4xbf16, #tpu.memory_space<vmem>>, %arg3: memref<1x4xf32, #tpu.memory_space<vmem>>, %arg4: memref<32x4xbf16, #tpu.memory_space<vmem>>, %arg5: memref<1x4xf32, #tpu.memory_space<vmem>>, %arg6: memref<128x16xbf16, #tpu.memory_space<vmem>>, %arg7: memref<128x16xbf16, #tpu.memory_space<vmem>>, %arg8: memref<1x16xf32, #tpu.memory_space<vmem>>, %arg9: memref<32x4xbf16, #tpu.memory_space<vmem>>, %arg10: memref<1x4xf32, #tpu.memory_space<vmem>>, %arg11: memref<1x8xf32, #tpu.memory_space<vmem>>, %arg12: memref<16x8xbf16, #tpu.memory_space<vmem>>, %arg13: memref<1x8xf32, #tpu.memory_space<vmem>>, %arg14: memref<1x8xf32, #tpu.memory_space<vmem>>, %arg15: memref<1x1xf32, #tpu.memory_space<vmem>>, %arg16: memref<32x64xbf16, #tpu.memory_space<vmem>>, %arg17: memref<1x64xf32, #tpu.memory_space<vmem>>, %arg18: memref<6x128xbf16, #tpu.memory_space<vmem>>, %arg19: memref<1x128x64xbf16, #tpu.memory_space<vmem>>, %arg20: memref<1x6x64xf32, #tpu.memory_space<vmem>>) attributes {dimension_semantics = [#tpu.dimension_semantics<parallel>], iteration_bounds = array<i64: 2>, scalar_prefetch = 0 : i64, scratch_operands = 0 : i64, tpu.core_type = #tpu.core_type<tc>, window_params = [{transform_indices = @transform_0, window_bounds = array<i64: 1, 128, 32>}, {pipeline_mode = #tpu.pipeline_mode<synchronous>, transform_indices = @transform_1, window_bounds = array<i64: 32, 4>}, {pipeline_mode = #tpu.pipeline_mode<synchronous>, transform_indices = @transform_2, window_bounds = array<i64: 1, 4>}, {pipeline_mode = #tpu.pipeline_mode<synchronous>, transform_indices = @transform_3, window_bounds = array<i64: 32, 4>}, {pipeline_mode = #tpu.pipeline_mode<synchronous>, transform_indices = @transform_4, window_bounds = array<i64: 1, 4>}, {pipeline_mode = #tpu.pipeline_mode<synchronous>, transform_indices = @transform_5, window_bounds = array<i64: 128, 16>}, {pipeline_mode = #tpu.pipeline_mode<synchronous>, transform_indices = @transform_6, window_bounds = array<i64: 128, 16>}, {pipeline_mode = #tpu.pipeline_mode<synchronous>, transform_indices = @transform_7, window_bounds = array<i64: 1, 16>}, {pipeline_mode = #tpu.pipeline_mode<synchronous>, transform_indices = @transform_8, window_bounds = array<i64: 32, 4>}, {pipeline_mode = #tpu.pipeline_mode<synchronous>, transform_indices = @transform_9, window_bounds = array<i64: 1, 4>}, {pipeline_mode = #tpu.pipeline_mode<synchronous>, transform_indices = @transform_10, window_bounds = array<i64: 1, 8>}, {pipeline_mode = #tpu.pipeline_mode<synchronous>, transform_indices = @transform_11, window_bounds = array<i64: 16, 8>}, {pipeline_mode = #tpu.pipeline_mode<synchronous>, transform_indices = @transform_12, window_bounds = array<i64: 1, 8>}, {pipeline_mode = #tpu.pipeline_mode<synchronous>, transform_indices = @transform_13, window_bounds = array<i64: 1, 8>}, {pipeline_mode = #tpu.pipeline_mode<synchronous>, transform_indices = @transform_14, window_bounds = array<i64: 1, 1>}, {pipeline_mode = #tpu.pipeline_mode<synchronous>, transform_indices = @transform_15, window_bounds = array<i64: 32, 64>}, {pipeline_mode = #tpu.pipeline_mode<synchronous>, transform_indices = @transform_16, window_bounds = array<i64: 1, 64>}, {pipeline_mode = #tpu.pipeline_mode<synchronous>, transform_indices = @transform_17, window_bounds = array<i64: 6, 128>}, {transform_indices = @transform_18, window_bounds = array<i64: 1, 128, 64>}, {transform_indices = @transform_19, window_bounds = array<i64: 1, 6, 64>}]} {
    %c0 = arith.constant 0 : index
    %c0_0 = arith.constant 0 : index
    %c0_1 = arith.constant 0 : index
    %0 = vector.load %arg1[%c0, %c0_0, %c0_1] : memref<1x128x32xbf16, #tpu.memory_space<vmem>>, vector<1x128x32xbf16>
    %1 = vector.shape_cast %0 : vector<1x128x32xbf16> to vector<128x32xbf16>
    %c0_2 = arith.constant 0 : index
    %c0_3 = arith.constant 0 : index
    %2 = vector.load %arg2[%c0_2, %c0_3] : memref<32x4xbf16, #tpu.memory_space<vmem>>, vector<32x4xbf16>
    %cst = arith.constant dense<0.000000e+00> : vector<128x4xf32>
    %3 = tpu.matmul %1, %2, %cst {dimension_numbers = #tpu.dot_dimension_numbers<[1], [0], [0], [1], [0, 0, 1, 1], [], []>} : vector<128x32xbf16>, vector<32x4xbf16>, vector<128x4xf32> -> vector<128x4xf32>
    %c0_4 = arith.constant 0 : index
    %c0_5 = arith.constant 0 : index
    %4 = vector.load %arg3[%c0_4, %c0_5] : memref<1x4xf32, #tpu.memory_space<vmem>>, vector<1x4xf32>
    %5 = vector.broadcast %4 : vector<1x4xf32> to vector<128x4xf32>
    %6 = arith.addf %3, %5 : vector<128x4xf32>
    %cst_6 = arith.constant 0.000000e+00 : f32
    %7 = vector.broadcast %cst_6 : f32 to vector<128x4xf32>
    %8 = arith.maximumf %6, %7 : vector<128x4xf32>
    %c0_7 = arith.constant 0 : index
    %c0_8 = arith.constant 0 : index
    %9 = vector.load %arg4[%c0_7, %c0_8] : memref<32x4xbf16, #tpu.memory_space<vmem>>, vector<32x4xbf16>
    %cst_9 = arith.constant dense<0.000000e+00> : vector<128x4xf32>
    %10 = tpu.matmul %1, %9, %cst_9 {dimension_numbers = #tpu.dot_dimension_numbers<[1], [0], [0], [1], [0, 0, 1, 1], [], []>} : vector<128x32xbf16>, vector<32x4xbf16>, vector<128x4xf32> -> vector<128x4xf32>
    %c0_10 = arith.constant 0 : index
    %c0_11 = arith.constant 0 : index
    %11 = vector.load %arg5[%c0_10, %c0_11] : memref<1x4xf32, #tpu.memory_space<vmem>>, vector<1x4xf32>
    %12 = vector.broadcast %11 : vector<1x4xf32> to vector<128x4xf32>
    %13 = arith.addf %10, %12 : vector<128x4xf32>
    %cst_12 = arith.constant 0.000000e+00 : f32
    %14 = vector.broadcast %cst_12 : f32 to vector<128x4xf32>
    %15 = arith.maximumf %13, %14 : vector<128x4xf32>
    %16 = arith.truncf %8 : vector<128x4xf32> to vector<128x4xbf16>
    %17 = arith.truncf %15 : vector<128x4xf32> to vector<128x4xbf16>
    %cst_13 = arith.constant dense<0.000000e+00> : vector<128x128xf32>
    %18 = tpu.matmul %16, %17, %cst_13 {dimension_numbers = #tpu.dot_dimension_numbers<[1], [1], [0], [0], [0, 0, 1, 0], [], []>} : vector<128x4xbf16>, vector<128x4xbf16>, vector<128x128xf32> -> vector<128x128xf32>
    %19 = arith.truncf %18 : vector<128x128xf32> to vector<128x128xbf16>
    %cst_14 = arith.constant dense<0.000000e+00> : vector<128x128xf32>
    %20 = tpu.matmul %17, %16, %cst_14 {dimension_numbers = #tpu.dot_dimension_numbers<[1], [1], [0], [0], [0, 0, 1, 0], [], []>} : vector<128x4xbf16>, vector<128x4xbf16>, vector<128x128xf32> -> vector<128x128xf32>
    %21 = arith.truncf %20 : vector<128x128xf32> to vector<128x128xbf16>
    %c0_15 = arith.constant 0 : index
    %c0_16 = arith.constant 0 : index
    %22 = vector.load %arg6[%c0_15, %c0_16] : memref<128x16xbf16, #tpu.memory_space<vmem>>, vector<128x16xbf16>
    %cst_17 = arith.constant dense<0.000000e+00> : vector<128x16xf32>
    %23 = tpu.matmul %19, %22, %cst_17 {dimension_numbers = #tpu.dot_dimension_numbers<[1], [0], [0], [1], [0, 0, 1, 1], [], []>} : vector<128x128xbf16>, vector<128x16xbf16>, vector<128x16xf32> -> vector<128x16xf32>
    %c0_18 = arith.constant 0 : index
    %c0_19 = arith.constant 0 : index
    %24 = vector.load %arg7[%c0_18, %c0_19] : memref<128x16xbf16, #tpu.memory_space<vmem>>, vector<128x16xbf16>
    %cst_20 = arith.constant dense<0.000000e+00> : vector<128x16xf32>
    %25 = tpu.matmul %21, %24, %cst_20 {dimension_numbers = #tpu.dot_dimension_numbers<[1], [0], [0], [1], [0, 0, 1, 1], [], []>} : vector<128x128xbf16>, vector<128x16xbf16>, vector<128x16xf32> -> vector<128x16xf32>
    %26 = arith.addf %23, %25 : vector<128x16xf32>
    %c0_21 = arith.constant 0 : index
    %c0_22 = arith.constant 0 : index
    %27 = vector.load %arg8[%c0_21, %c0_22] : memref<1x16xf32, #tpu.memory_space<vmem>>, vector<1x16xf32>
    %28 = vector.broadcast %27 : vector<1x16xf32> to vector<128x16xf32>
    %29 = arith.addf %26, %28 : vector<128x16xf32>
    %cst_23 = arith.constant 0.000000e+00 : f32
    %30 = vector.broadcast %cst_23 : f32 to vector<128x16xf32>
    %31 = arith.maximumf %29, %30 : vector<128x16xf32>
    %c0_24 = arith.constant 0 : index
    %c0_25 = arith.constant 0 : index
    %32 = vector.load %arg9[%c0_24, %c0_25] : memref<32x4xbf16, #tpu.memory_space<vmem>>, vector<32x4xbf16>
    %cst_26 = arith.constant dense<0.000000e+00> : vector<128x4xf32>
    %33 = tpu.matmul %1, %32, %cst_26 {dimension_numbers = #tpu.dot_dimension_numbers<[1], [0], [0], [1], [0, 0, 1, 1], [], []>} : vector<128x32xbf16>, vector<32x4xbf16>, vector<128x4xf32> -> vector<128x4xf32>
    %c0_27 = arith.constant 0 : index
    %c0_28 = arith.constant 0 : index
    %34 = vector.load %arg10[%c0_27, %c0_28] : memref<1x4xf32, #tpu.memory_space<vmem>>, vector<1x4xf32>
    %35 = vector.broadcast %34 : vector<1x4xf32> to vector<128x4xf32>
    %36 = arith.addf %33, %35 : vector<128x4xf32>
    %cst_29 = arith.constant 0.000000e+00 : f32
    %37 = vector.broadcast %cst_29 : f32 to vector<128x4xf32>
    %38 = arith.maximumf %36, %37 : vector<128x4xf32>
    %cst_30 = arith.constant dense<0.000000e+00> : vector<128xf32>
    %39 = vector.multi_reduction <add>, %38, %cst_30 [1] : vector<128x4xf32> to vector<128xf32>
    %40 = vector.shape_cast %39 : vector<128xf32> to vector<128x1xf32>
    %cst_31 = arith.constant 4.000000e+00 : f32
    %41 = vector.broadcast %cst_31 : f32 to vector<128x1xf32>
    %42 = arith.divf %40, %41 : vector<128x1xf32>
    %c0_32 = arith.constant 0 : index
    %c0_33 = arith.constant 0 : index
    %43 = vector.load %arg11[%c0_32, %c0_33] : memref<1x8xf32, #tpu.memory_space<vmem>>, vector<1x8xf32>
    %44 = vector.broadcast %42 : vector<128x1xf32> to vector<128x8xf32>
    %45 = vector.broadcast %43 : vector<1x8xf32> to vector<128x8xf32>
    %46 = arith.mulf %44, %45 : vector<128x8xf32>
    %47 = arith.truncf %31 : vector<128x16xf32> to vector<128x16xbf16>
    %c0_34 = arith.constant 0 : index
    %c0_35 = arith.constant 0 : index
    %48 = vector.load %arg12[%c0_34, %c0_35] : memref<16x8xbf16, #tpu.memory_space<vmem>>, vector<16x8xbf16>
    %cst_36 = arith.constant dense<0.000000e+00> : vector<128x8xf32>
    %49 = tpu.matmul %47, %48, %cst_36 {dimension_numbers = #tpu.dot_dimension_numbers<[1], [0], [0], [1], [0, 0, 1, 1], [], []>} : vector<128x16xbf16>, vector<16x8xbf16>, vector<128x8xf32> -> vector<128x8xf32>
    %50 = arith.addf %46, %49 : vector<128x8xf32>
    %c0_37 = arith.constant 0 : index
    %c0_38 = arith.constant 0 : index
    %51 = vector.load %arg13[%c0_37, %c0_38] : memref<1x8xf32, #tpu.memory_space<vmem>>, vector<1x8xf32>
    %52 = vector.broadcast %51 : vector<1x8xf32> to vector<128x8xf32>
    %53 = arith.addf %50, %52 : vector<128x8xf32>
    %cst_39 = arith.constant 0.000000e+00 : f32
    %54 = vector.broadcast %cst_39 : f32 to vector<128x8xf32>
    %55 = arith.maximumf %53, %54 : vector<128x8xf32>
    %c0_40 = arith.constant 0 : index
    %c0_41 = arith.constant 0 : index
    %56 = vector.load %arg14[%c0_40, %c0_41] : memref<1x8xf32, #tpu.memory_space<vmem>>, vector<1x8xf32>
    %57 = vector.broadcast %56 : vector<1x8xf32> to vector<128x8xf32>
    %58 = arith.mulf %55, %57 : vector<128x8xf32>
    %cst_42 = arith.constant dense<0.000000e+00> : vector<128xf32>
    %59 = vector.multi_reduction <add>, %58, %cst_42 [1] : vector<128x8xf32> to vector<128xf32>
    %60 = vector.shape_cast %59 : vector<128xf32> to vector<128x1xf32>
    %c0_43 = arith.constant 0 : index
    %c0_44 = arith.constant 0 : index
    %61 = vector.load %arg15[%c0_43, %c0_44] : memref<1x1xf32, #tpu.memory_space<vmem>>, vector<1x1xf32>
    %62 = vector.broadcast %61 : vector<1x1xf32> to vector<128x1xf32>
    %63 = arith.addf %60, %62 : vector<128x1xf32>
    %64 = arith.negf %63 : vector<128x1xf32>
    %65 = math.exp %64 : vector<128x1xf32>
    %cst_45 = arith.constant 1.000000e+00 : f32
    %66 = vector.broadcast %cst_45 : f32 to vector<128x1xf32>
    %67 = arith.addf %66, %65 : vector<128x1xf32>
    %68 = arith.divf %66, %67 : vector<128x1xf32>
    %69 = arith.extf %1 : vector<128x32xbf16> to vector<128x32xf32>
    %70 = vector.broadcast %68 : vector<128x1xf32> to vector<128x32xf32>
    %71 = arith.mulf %69, %70 : vector<128x32xf32>
    %72 = arith.truncf %71 : vector<128x32xf32> to vector<128x32xbf16>
    %c0_46 = arith.constant 0 : index
    %c0_47 = arith.constant 0 : index
    %73 = vector.load %arg16[%c0_46, %c0_47] : memref<32x64xbf16, #tpu.memory_space<vmem>>, vector<32x64xbf16>
    %cst_48 = arith.constant dense<0.000000e+00> : vector<128x64xf32>
    %74 = tpu.matmul %72, %73, %cst_48 {dimension_numbers = #tpu.dot_dimension_numbers<[1], [0], [0], [1], [0, 0, 1, 1], [], []>} : vector<128x32xbf16>, vector<32x64xbf16>, vector<128x64xf32> -> vector<128x64xf32>
    %c0_49 = arith.constant 0 : index
    %c0_50 = arith.constant 0 : index
    %75 = vector.load %arg17[%c0_49, %c0_50] : memref<1x64xf32, #tpu.memory_space<vmem>>, vector<1x64xf32>
    %76 = vector.broadcast %75 : vector<1x64xf32> to vector<128x64xf32>
    %77 = arith.addf %74, %76 : vector<128x64xf32>
    %cst_51 = arith.constant 0.000000e+00 : f32
    %78 = vector.broadcast %cst_51 : f32 to vector<128x64xf32>
    %79 = arith.maximumf %77, %78 : vector<128x64xf32>
    %80 = arith.truncf %79 : vector<128x64xf32> to vector<128x64xbf16>
    %c0_52 = arith.constant 0 : index
    %c0_53 = arith.constant 0 : index
    %c0_54 = arith.constant 0 : index
    %81 = vector.load %arg19[%c0_52, %c0_53, %c0_54] : memref<1x128x64xbf16, #tpu.memory_space<vmem>>, vector<1x128x64xbf16>
    %82 = vector.shape_cast %81 : vector<1x128x64xbf16> to vector<128x64xbf16>
    %83 = vector.shape_cast %80 : vector<128x64xbf16> to vector<1x128x64xbf16>
    tpu.vector_store %arg19[%c0_52, %c0_53, %c0_54], %83 {strides = array<i32>} : memref<1x128x64xbf16, #tpu.memory_space<vmem>>, vector<1x128x64xbf16>,
    %c0_55 = arith.constant 0 : index
    %c0_56 = arith.constant 0 : index
    %84 = vector.load %arg18[%c0_55, %c0_56] : memref<6x128xbf16, #tpu.memory_space<vmem>>, vector<6x128xbf16>
    %cst_57 = arith.constant dense<0.000000e+00> : vector<6x64xf32>
    %85 = tpu.matmul %84, %80, %cst_57 {dimension_numbers = #tpu.dot_dimension_numbers<[1], [0], [0], [1], [0, 0, 1, 1], [], []>} : vector<6x128xbf16>, vector<128x64xbf16>, vector<6x64xf32> -> vector<6x64xf32>
    %cst_58 = arith.constant 0.020833334 : f32
    %86 = vector.broadcast %cst_58 : f32 to vector<6x64xf32>
    %87 = arith.mulf %85, %86 : vector<6x64xf32>
    %c0_59 = arith.constant 0 : index
    %c0_60 = arith.constant 0 : index
    %c0_61 = arith.constant 0 : index
    %88 = vector.load %arg20[%c0_59, %c0_60, %c0_61] : memref<1x6x64xf32, #tpu.memory_space<vmem>>, vector<1x6x64xf32>
    %89 = vector.shape_cast %88 : vector<1x6x64xf32> to vector<6x64xf32>
    %90 = vector.shape_cast %87 : vector<6x64xf32> to vector<1x6x64xf32>
    tpu.vector_store %arg20[%c0_59, %c0_60, %c0_61], %90 {strides = array<i32>} : memref<1x6x64xf32, #tpu.memory_space<vmem>>, vector<1x6x64xf32>,
    return
  }
  func.func @transform_0(%arg0: i32) -> (i32, i32, i32) {
    %c0_i32 = arith.constant 0 : i32
    %c0_i32_0 = arith.constant 0 : i32
    %c0_i32_1 = arith.constant 0 : i32
    return %arg0, %c0_i32, %c0_i32_0 : i32, i32, i32
  }
  func.func @transform_1(%arg0: i32) -> (i32, i32) {
    %c0_i32 = arith.constant 0 : i32
    %c0_i32_0 = arith.constant 0 : i32
    %c0_i32_1 = arith.constant 0 : i32
    return %c0_i32, %c0_i32_0 : i32, i32
  }
  func.func @transform_2(%arg0: i32) -> (i32, i32) {
    %c0_i32 = arith.constant 0 : i32
    %c0_i32_0 = arith.constant 0 : i32
    %c0_i32_1 = arith.constant 0 : i32
    return %c0_i32, %c0_i32_0 : i32, i32
  }
  func.func @transform_3(%arg0: i32) -> (i32, i32) {
    %c0_i32 = arith.constant 0 : i32
    %c0_i32_0 = arith.constant 0 : i32
    %c0_i32_1 = arith.constant 0 : i32
    return %c0_i32, %c0_i32_0 : i32, i32
  }
  func.func @transform_4(%arg0: i32) -> (i32, i32) {
    %c0_i32 = arith.constant 0 : i32
    %c0_i32_0 = arith.constant 0 : i32
    %c0_i32_1 = arith.constant 0 : i32
    return %c0_i32, %c0_i32_0 : i32, i32
  }
  func.func @transform_5(%arg0: i32) -> (i32, i32) {
    %c0_i32 = arith.constant 0 : i32
    %c0_i32_0 = arith.constant 0 : i32
    %c0_i32_1 = arith.constant 0 : i32
    return %c0_i32, %c0_i32_0 : i32, i32
  }
  func.func @transform_6(%arg0: i32) -> (i32, i32) {
    %c0_i32 = arith.constant 0 : i32
    %c0_i32_0 = arith.constant 0 : i32
    %c0_i32_1 = arith.constant 0 : i32
    return %c0_i32, %c0_i32_0 : i32, i32
  }
  func.func @transform_7(%arg0: i32) -> (i32, i32) {
    %c0_i32 = arith.constant 0 : i32
    %c0_i32_0 = arith.constant 0 : i32
    %c0_i32_1 = arith.constant 0 : i32
    return %c0_i32, %c0_i32_0 : i32, i32
  }
  func.func @transform_8(%arg0: i32) -> (i32, i32) {
    %c0_i32 = arith.constant 0 : i32
    %c0_i32_0 = arith.constant 0 : i32
    %c0_i32_1 = arith.constant 0 : i32
    return %c0_i32, %c0_i32_0 : i32, i32
  }
  func.func @transform_9(%arg0: i32) -> (i32, i32) {
    %c0_i32 = arith.constant 0 : i32
    %c0_i32_0 = arith.constant 0 : i32
    %c0_i32_1 = arith.constant 0 : i32
    return %c0_i32, %c0_i32_0 : i32, i32
  }
  func.func @transform_10(%arg0: i32) -> (i32, i32) {
    %c0_i32 = arith.constant 0 : i32
    %c0_i32_0 = arith.constant 0 : i32
    %c0_i32_1 = arith.constant 0 : i32
    return %c0_i32, %c0_i32_0 : i32, i32
  }
  func.func @transform_11(%arg0: i32) -> (i32, i32) {
    %c0_i32 = arith.constant 0 : i32
    %c0_i32_0 = arith.constant 0 : i32
    %c0_i32_1 = arith.constant 0 : i32
    return %c0_i32, %c0_i32_0 : i32, i32
  }
  func.func @transform_12(%arg0: i32) -> (i32, i32) {
    %c0_i32 = arith.constant 0 : i32
    %c0_i32_0 = arith.constant 0 : i32
    %c0_i32_1 = arith.constant 0 : i32
    return %c0_i32, %c0_i32_0 : i32, i32
  }
  func.func @transform_13(%arg0: i32) -> (i32, i32) {
    %c0_i32 = arith.constant 0 : i32
    %c0_i32_0 = arith.constant 0 : i32
    %c0_i32_1 = arith.constant 0 : i32
    return %c0_i32, %c0_i32_0 : i32, i32
  }
  func.func @transform_14(%arg0: i32) -> (i32, i32) {
    %c0_i32 = arith.constant 0 : i32
    %c0_i32_0 = arith.constant 0 : i32
    %c0_i32_1 = arith.constant 0 : i32
    return %c0_i32, %c0_i32_0 : i32, i32
  }
  func.func @transform_15(%arg0: i32) -> (i32, i32) {
    %c0_i32 = arith.constant 0 : i32
    %c0_i32_0 = arith.constant 0 : i32
    %c0_i32_1 = arith.constant 0 : i32
    return %c0_i32, %c0_i32_0 : i32, i32
  }
  func.func @transform_16(%arg0: i32) -> (i32, i32) {
    %c0_i32 = arith.constant 0 : i32
    %c0_i32_0 = arith.constant 0 : i32
    %c0_i32_1 = arith.constant 0 : i32
    return %c0_i32, %c0_i32_0 : i32, i32
  }
  func.func @transform_17(%arg0: i32) -> (i32, i32) {
    %c0_i32 = arith.constant 0 : i32
    %c0_i32_0 = arith.constant 0 : i32
    %c0_i32_1 = arith.constant 0 : i32
    return %c0_i32, %c0_i32_0 : i32, i32
  }
  func.func @transform_18(%arg0: i32) -> (i32, i32, i32) {
    %c0_i32 = arith.constant 0 : i32
    %c0_i32_0 = arith.constant 0 : i32
    %c0_i32_1 = arith.constant 0 : i32
    return %arg0, %c0_i32, %c0_i32_0 : i32, i32, i32
  }
  func.func @transform_19(%arg0: i32) -> (i32, i32, i32) {
    %c0_i32 = arith.constant 0 : i32
    %c0_i32_0 = arith.constant 0 : i32
    %c0_i32_1 = arith.constant 0 : i32
    return %arg0, %c0_i32, %c0_i32_0 : i32, i32, i32
  }
}

</mosaic_0001>

<bundles_post_ra>
// kernel: thermal_net_resnet_forward.5
= control target key start
LH: loop header
LB: loop body
LE: loop exit
PB: predicated region body
PF: predicated region fallthrough
CT: control target
= control target key end

     0   :  { %s1639_s12 = smov 0   ;;  %s1934_s0 = inlined_call_operand.vmem [shape: bf16[1024,27], index: 0, kind: input, shape index: {}]   ;;  %s1935_s1 = inlined_call_operand.vmem [shape: bf16[27,16], index: 1, kind: input, shape index: {}]   ;;  %s1936_s2 = inlined_call_operand.vmem [shape: f32[1,16], index: 2, kind: input, shape index: {}]   ;;  %s1937_s3 = inlined_call_operand.vmem [shape: bf16[1024,16], index: 3, kind: output, shape index: {}]  }
   0x1 LB: > { %s1255_s13 = sadd.s32 4294967295, %s1616_s12   ;;  %p1259_p0 = scmp.ge.s32.totalorder %s1616_s12, 1  ;;  %s1616_s12 = sphi %s1639_s12, %s13_s12  }
   0x2   : > { %p138_p1 = scmp.lt.s32.totalorder %s1616_s12, 3 }
   0x4   : > { %p139_p2 = pnand %p1259_p0, %p138_p1 }
   0x5   : > { %v1576_v0 = vld [vmem:[%s1935_s1] sm:$0xff] (!%p139_p2)   ;;  %vm518_vm0 = vcmask (!%p139_p2), 1044480   ;;  %v1577_v1 = vld [vmem:[%s1935_s1 + $0x8] sm:$0x3f] (!%p139_p2)   ;;  %vm519_vm1 = vcmask (!%p139_p2), 1045504   ;;  %s1260_s18 = sshll.u32 (!%p139_p2), %s1255_s13, 6 }
   0x6   : > { %142 = sbr.rel (%p139_p2) target bundleno = 297 (0x129), region = 32  ;;  %1495 = vmatprep.subr.bf16.mxu0 (!%p139_p2), %v1576_v0  ;;  %1563 = vmatprep.subr.bf16.mxu1 (!%p139_p2), %v1576_v0  ;;  %v1618_v2 = vmov (!%p139_p2), 65535   ;;  %p163_p3 = scmp.lt.s32.totalorder (!%p139_p2), %s1260_s18, 127  ;;  %vm421_vm2 = vcmask (!%p139_p2), 220160   ;;  %v1730_v38 = vld [vmem:[%s1936_s2] ss:$0 sm:$0xff] (!%p139_p2) }
   0x7   : > { %1496 = vmatpush3.bf16.msra.mxu0 (!%p139_p2), %v1576_v0  ;;  %1565 = vmatpush3.bf16.msra.mxu1 (!%p139_p2), %v1576_v0  ;;  %v520_v3 = vsel (!%p139_p2), %vm518_vm0, 4294967295, %v1618_v2  ;;  %vm1134_vm3 = vcmask (!%p139_p2), 125952  }
   0x8   : > { %v521_v4 = vsel (!%p139_p2), %vm519_vm1, %v520_v3, 0 }
   0x9   : > { %v523_v5 = vand.u32 (!%p139_p2), %v1577_v1, %v521_v4 }
   0xb   : > { %1497 = vmatprep.subr.bf16.mxu0 (!%p139_p2), %v523_v5  ;;  %1564 = vmatprep.subr.bf16.mxu1 (!%p139_p2), %v523_v5 }
   0xc   : > { %1498 = vmatpush3.bf16.msra.mxu0 (!%p139_p2), %v523_v5  ;;  %1566 = vmatpush3.bf16.msra.mxu1 (!%p139_p2), %v523_v5 }
   0xd   : > { %s1939_s18 = smov (!%p163_p3, %s1260_s18), 127 }
   0xe   : > { %s1261_s19 = sshll.u32 %s1939_s18, 2 }
   0xf   : > { %s1661_s22 = scalar_lea.vmem %s1934_s0, %s1261_s19  ;;  %s1742_s27 = scalar_lea.vmem %s1937_s3, %s1261_s19 }
  0x10   : > { %v1578_v6 = vld [vmem:[%s1661_s22] sm:$0xff]   ;;  %v1580_v8 = vld [vmem:[%s1661_s22 + $0x8] sm:$0xff]   ;;  %v1582_v10 = vld [vmem:[%s1661_s22 + $0x10] sm:$0xff]  }
  0x11   : > { %v1579_v7 = vld [vmem:[%s1661_s22 + $0x80] sm:$0xff]   ;;  %1499 = vmatprep.mubr.msk.bf16.mxu0 %vm421_vm2, %v1578_v6  ;;  %v1581_v9 = vld [vmem:[%s1661_s22 + $0x88] sm:$0xff]   ;;  %v1583_v11 = vld [vmem:[%s1661_s22 + $0x90] sm:$0xff]  }
  0x12   : > { %1531 = vmatprep.mubr.msk.bf16.mxu1 %vm421_vm2, %v1579_v7  ;;  %1500 = vmatmul.mubr.msk.bf16.vlgmr.msra.gmra.mrb[0].mxu0 %vm421_vm2, %v1580_v8  ;;  %v1584_v12 = vld [vmem:[%s1661_s22 + $0x18] sm:$0xff]   ;;  %v1586_v14 = vld [vmem:[%s1661_s22 + $0x20] sm:$0xff]   ;;  %v1588_v16 = vld [vmem:[%s1661_s22 + $0x28] sm:$0xff]  }
  0x13   : > { %1532 = vmatmul.mubr.msk.bf16.vlgmr.msra.gmra.mrb[0].mxu1 %vm421_vm2, %v1581_v9  ;;  %1503 = vmatprep.mubr.msk.bf16.mxu0 %vm421_vm2, %v1582_v10  ;;  %v1585_v13 = vld [vmem:[%s1661_s22 + $0x98] sm:$0xff]   ;;  %v1587_v15 = vld [vmem:[%s1661_s22 + $0xa0] sm:$0xff]   ;;  %v1589_v17 = vld [vmem:[%s1661_s22 + $0xa8] sm:$0xff]  }
  0x14   : > { %1535 = vmatprep.mubr.msk.bf16.mxu1 %vm421_vm2, %v1583_v11  ;;  %v1590_v18 = vld [vmem:[%s1661_s22 + $0x30] sm:$0xff]   ;;  %v1592_v20 = vld [vmem:[%s1661_s22 + $0x38] sm:$0xff]   ;;  %v1594_v22 = vld [vmem:[%s1661_s22 + $0x40] sm:$0xff]  }
  0x15   : > { %v1591_v19 = vld [vmem:[%s1661_s22 + $0xb0] sm:$0xff]   ;;  %v1593_v21 = vld [vmem:[%s1661_s22 + $0xb8] sm:$0xff]   ;;  %v1595_v23 = vld [vmem:[%s1661_s22 + $0xc0] sm:$0xff]  }
  0x16   : > { %v1596_v24 = vld [vmem:[%s1661_s22 + $0x48] sm:$0xff]   ;;  %v1598_v26 = vld [vmem:[%s1661_s22 + $0x50] sm:$0xff]   ;;  %v1600_v28 = vld [vmem:[%s1661_s22 + $0x58] sm:$0xff]  }
  0x17   : > { %v1597_v25 = vld [vmem:[%s1661_s22 + $0xc8] sm:$0xff]   ;;  %v1599_v27 = vld [vmem:[%s1661_s22 + $0xd0] sm:$0xff]   ;;  %v1601_v29 = vld [vmem:[%s1661_s22 + $0xd8] sm:$0xff]  }
  0x18   : > { %v1602_v30 = vld [vmem:[%s1661_s22 + $0x60] sm:$0xff]   ;;  %v1604_v32 = vld [vmem:[%s1661_s22 + $0x68] sm:$0xff]   ;;  %v1606_v34 = vld [vmem:[%s1661_s22 + $0x70] sm:$0xff]  }
  0x19   : > { %v1603_v31 = vld [vmem:[%s1661_s22 + $0xe0] sm:$0xff]   ;;  %v1605_v33 = vld [vmem:[%s1661_s22 + $0xe8] sm:$0xff]   ;;  %v1607_v35 = vld [vmem:[%s1661_s22 + $0xf0] sm:$0xff]  }
  0x1a   : > { %1504 = vmatmul.mubr.msk.bf16.gmra.mrb[4].mxu0 %vm421_vm2, %v1584_v12  ;;  %v1608_v36 = vld [vmem:[%s1661_s22 + $0x78] sm:$0xff]  }
  0x1b   : > { %1536 = vmatmul.mubr.msk.bf16.gmra.mrb[4].mxu1 %vm421_vm2, %v1585_v13  ;;  %1507 = vmatprep.mubr.msk.bf16.mxu0 %vm421_vm2, %v1586_v14  ;;  %v1609_v37 = vld [vmem:[%s1661_s22 + $0xf8] sm:$0xff]  }
  0x1c   : > { %1539 = vmatprep.mubr.msk.bf16.mxu1 %vm421_vm2, %v1587_v15 }
  0x22   : > { %1508 = vmatmul.mubr.msk.bf16.gmra.mrb[8].mxu0 %vm421_vm2, %v1588_v16 }
  0x23   : > { %1540 = vmatmul.mubr.msk.bf16.gmra.mrb[8].mxu1 %vm421_vm2, %v1589_v17  ;;  %1511 = vmatprep.mubr.msk.bf16.mxu0 %vm421_vm2, %v1590_v18 }
  0x24   : > { %1543 = vmatprep.mubr.msk.bf16.mxu1 %vm421_vm2, %v1591_v19 }
  0x2a   : > { %1512 = vmatmul.mubr.msk.bf16.gmra.mrb[12].mxu0 %vm421_vm2, %v1592_v20 }
  0x2b   : > { %1544 = vmatmul.mubr.msk.bf16.gmra.mrb[12].mxu1 %vm421_vm2, %v1593_v21  ;;  %1515 = vmatprep.mubr.msk.bf16.mxu0 %vm421_vm2, %v1594_v22 }
  0x2c   : > { %1547 = vmatprep.mubr.msk.bf16.mxu1 %vm421_vm2, %v1595_v23 }
  0x32   : > { %1516 = vmatmul.mubr.msk.bf16.gmra.mrb[16].mxu0 %vm421_vm2, %v1596_v24 }
  0x33   : > { %1548 = vmatmul.mubr.msk.bf16.gmra.mrb[16].mxu1 %vm421_vm2, %v1597_v25  ;;  %1519 = vmatprep.mubr.msk.bf16.mxu0 %vm421_vm2, %v1598_v26 }
  0x34   : > { %1551 = vmatprep.mubr.msk.bf16.mxu1 %vm421_vm2, %v1599_v27 }
  0x3a   : > { %1520 = vmatmul.mubr.msk.bf16.gmra.mrb[20].mxu0 %vm421_vm2, %v1600_v28 }
  0x3b   : > { %1552 = vmatmul.mubr.msk.bf16.gmra.mrb[20].mxu1 %vm421_vm2, %v1601_v29  ;;  %1523 = vmatprep.mubr.msk.bf16.mxu0 %vm421_vm2, %v1602_v30 }
  0x3c   : > { %1555 = vmatprep.mubr.msk.bf16.mxu1 %vm421_vm2, %v1603_v31 }
  0x42   : > { %1524 = vmatmul.mubr.msk.bf16.gmra.mrb[24].mxu0 %vm421_vm2, %v1604_v32 }
  0x43   : > { %1556 = vmatmul.mubr.msk.bf16.gmra.mrb[24].mxu1 %vm421_vm2, %v1605_v33  ;;  %1527 = vmatprep.mubr.msk.bf16.mxu0 %vm421_vm2, %v1606_v34 }
  0x44   : > { %1559 = vmatprep.mubr.msk.bf16.mxu1 %vm421_vm2, %v1607_v35 }
  0x4a   : > { %1528 = vmatmul.mubr.msk.bf16.gmra.mrb[28].mxu0 %vm421_vm2, %v1608_v36 }
  0x4b   : > { %1560 = vmatmul.mubr.msk.bf16.gmra.mrb[28].mxu1 %vm421_vm2, %v1609_v37 }
  0xe5   : > { %v1501_v39 = vpop.f32.mrb[0].mxu0 }
  0xe6   : > { %v568_v40 = vadd.f32 %v1501_v39, %v1730_v38  ;;  %v1533_v41 = vpop.f32.mrb[0].mxu1  ;;  %v559_v42 = vpop.f32.mrb[1].mxu0 }
  0xe7   : > { %v696_v43 = vadd.f32 %v1533_v41, %v1730_v38  ;;  %v560_v44 = vadd.f32 %v1730_v38, %v559_v42  ;;  %v687_v45 = vpop.f32.mrb[1].mxu1  ;;  %v1502_v46 = vpop.f32.mrb[2].mxu0 }
  0xe8   : > { %v816_v47 = vmax.f32 %v568_v40, 0.0  ;;  %v688_v48 = vadd.f32 %v1730_v38, %v687_v45  ;;  %v571_v49 = vadd.f32 %v1502_v46, %v1730_v38  ;;  %v1534_v50 = vpop.f32.mrb[2].mxu1  ;;  %v562_v51 = vpop.f32.mrb[3].mxu0 }
  0xe9   : > { %v848_v52 = vmax.f32 %v696_v43, 0.0  ;;  %v814_v53 = vmax.f32 %v560_v44, 0.0  ;;  %v699_v54 = vadd.f32 %v1534_v50, %v1730_v38  ;;  %v563_v55 = vadd.f32 %v1730_v38, %v562_v51  ;;  %v690_v56 = vpop.f32.mrb[3].mxu1 }
  0xea   : > { %v1399_v57 = vpack.c.bf16 %v816_v47, %v816_v47  ;;  %v846_v58 = vmax.f32 %v688_v48, 0.0  ;;  %v817_v59 = vmax.f32 %v571_v49, 0.0  ;;  %v691_v60 = vadd.f32 %v1730_v38, %v690_v56 }
  0xeb   : > { %v1431_v61 = vpack.c.bf16 %v848_v52, %v848_v52  ;;  %v1397_v62 = vpack.c.bf16 %v814_v53, %v814_v53  ;;  %v849_v63 = vmax.f32 %v699_v54, 0.0  ;;  %v815_v0 = vmax.f32 %v563_v55, 0.0 }
  0xec   : > { %1137 = vst.msk [vmem:[%s1742_s27 + $0x8] sm:$0xf] %vm1134_vm3, %v1399_v57  ;;  %v1429_v1 = vpack.c.bf16 %v846_v58, %v846_v58  ;;  %v1400_v2 = vpack.c.bf16 %v817_v59, %v817_v59  ;;  %v847_v3 = vmax.f32 %v691_v60, 0.0 }
  0xed   : > { %1169 = vst.msk [vmem:[%s1742_s27 + $0x88] sm:$0xf] %vm1134_vm3, %v1431_v61  ;;  %1135 = vst.msk [vmem:[%s1742_s27] sm:$0xf] %vm1134_vm3, %v1397_v62  ;;  %v1432_v4 = vpack.c.bf16 %v849_v63, %v849_v63  ;;  %v1398_v5 = vpack.c.bf16 %v815_v0, %v815_v0  ;;  %v1505_v6 = vpop.f32.mrb[4].mxu0 }
  0xee   : > { %1167 = vst.msk [vmem:[%s1742_s27 + $0x80] sm:$0xf] %vm1134_vm3, %v1429_v1  ;;  %1138 = vst.msk [vmem:[%s1742_s27 + $0xc] sm:$0xf] %vm1134_vm3, %v1400_v2  ;;  %v1430_v7 = vpack.c.bf16 %v847_v3, %v847_v3  ;;  %v584_v8 = vadd.f32 %v1505_v6, %v1730_v38  ;;  %v1537_v9 = vpop.f32.mrb[4].mxu1  ;;  %v575_v10 = vpop.f32.mrb[5].mxu0 }
  0xef   : > { %1170 = vst.msk [vmem:[%s1742_s27 + $0x8c] sm:$0xf] %vm1134_vm3, %v1432_v4  ;;  %1136 = vst.msk [vmem:[%s1742_s27 + $0x4] sm:$0xf] %vm1134_vm3, %v1398_v5  ;;  %v712_v11 = vadd.f32 %v1537_v9, %v1730_v38  ;;  %v576_v12 = vadd.f32 %v1730_v38, %v575_v10  ;;  %v703_v13 = vpop.f32.mrb[5].mxu1  ;;  %v1506_v14 = vpop.f32.mrb[6].mxu0 }
  0xf0   : > { %1168 = vst.msk [vmem:[%s1742_s27 + $0x84] sm:$0xf] %vm1134_vm3, %v1430_v7  ;;  %v820_v15 = vmax.f32 %v584_v8, 0.0  ;;  %v704_v16 = vadd.f32 %v1730_v38, %v703_v13  ;;  %v587_v17 = vadd.f32 %v1506_v14, %v1730_v38  ;;  %v1538_v18 = vpop.f32.mrb[6].mxu1  ;;  %v578_v19 = vpop.f32.mrb[7].mxu0 }
  0xf1   : > { %v852_v20 = vmax.f32 %v712_v11, 0.0  ;;  %v818_v21 = vmax.f32 %v576_v12, 0.0  ;;  %v715_v22 = vadd.f32 %v1538_v18, %v1730_v38  ;;  %v579_v23 = vadd.f32 %v1730_v38, %v578_v19  ;;  %v706_v24 = vpop.f32.mrb[7].mxu1 }
  0xf2   : > { %v1403_v25 = vpack.c.bf16 %v820_v15, %v820_v15  ;;  %v850_v26 = vmax.f32 %v704_v16, 0.0  ;;  %v821_v27 = vmax.f32 %v587_v17, 0.0  ;;  %v707_v28 = vadd.f32 %v1730_v38, %v706_v24 }
  0xf3   : > { %v1435_v29 = vpack.c.bf16 %v852_v20, %v852_v20  ;;  %v1401_v30 = vpack.c.bf16 %v818_v21, %v818_v21  ;;  %v853_v31 = vmax.f32 %v715_v22, 0.0  ;;  %v819_v32 = vmax.f32 %v579_v23, 0.0 }
  0xf4   : > { %1141 = vst.msk [vmem:[%s1742_s27 + $0x18] sm:$0xf] %vm1134_vm3, %v1403_v25  ;;  %v1433_v33 = vpack.c.bf16 %v850_v26, %v850_v26  ;;  %v1404_v34 = vpack.c.bf16 %v821_v27, %v821_v27  ;;  %v851_v35 = vmax.f32 %v707_v28, 0.0 }
  0xf5   : > { %1173 = vst.msk [vmem:[%s1742_s27 + $0x98] sm:$0xf] %vm1134_vm3, %v1435_v29  ;;  %1139 = vst.msk [vmem:[%s1742_s27 + $0x10] sm:$0xf] %vm1134_vm3, %v1401_v30  ;;  %v1436_v36 = vpack.c.bf16 %v853_v31, %v853_v31  ;;  %v1402_v37 = vpack.c.bf16 %v819_v32, %v819_v32  ;;  %v1509_v39 = vpop.f32.mrb[8].mxu0 }
  0xf6   : > { %1171 = vst.msk [vmem:[%s1742_s27 + $0x90] sm:$0xf] %vm1134_vm3, %v1433_v33  ;;  %1142 = vst.msk [vmem:[%s1742_s27 + $0x1c] sm:$0xf] %vm1134_vm3, %v1404_v34  ;;  %v1434_v40 = vpack.c.bf16 %v851_v35, %v851_v35  ;;  %v600_v41 = vadd.f32 %v1509_v39, %v1730_v38  ;;  %v1541_v42 = vpop.f32.mrb[8].mxu1  ;;  %v591_v43 = vpop.f32.mrb[9].mxu0 }
  0xf7   : > { %1174 = vst.msk [vmem:[%s1742_s27 + $0x9c] sm:$0xf] %vm1134_vm3, %v1436_v36  ;;  %1140 = vst.msk [vmem:[%s1742_s27 + $0x14] sm:$0xf] %vm1134_vm3, %v1402_v37  ;;  %v728_v44 = vadd.f32 %v1541_v42, %v1730_v38  ;;  %v592_v45 = vadd.f32 %v1730_v38, %v591_v43  ;;  %v719_v46 = vpop.f32.mrb[9].mxu1  ;;  %v1510_v47 = vpop.f32.mrb[10].mxu0 }
  0xf8   : > { %1172 = vst.msk [vmem:[%s1742_s27 + $0x94] sm:$0xf] %vm1134_vm3, %v1434_v40  ;;  %v824_v48 = vmax.f32 %v600_v41, 0.0  ;;  %v720_v49 = vadd.f32 %v1730_v38, %v719_v46  ;;  %v603_v50 = vadd.f32 %v1510_v47, %v1730_v38  ;;  %v1542_v51 = vpop.f32.mrb[10].mxu1  ;;  %v594_v52 = vpop.f32.mrb[11].mxu0 }
  0xf9   : > { %v856_v53 = vmax.f32 %v728_v44, 0.0  ;;  %v822_v54 = vmax.f32 %v592_v45, 0.0  ;;  %v731_v55 = vadd.f32 %v1542_v51, %v1730_v38  ;;  %v595_v56 = vadd.f32 %v1730_v38, %v594_v52  ;;  %v722_v57 = vpop.f32.mrb[11].mxu1 }
  0xfa   : > { %v1407_v58 = vpack.c.bf16 %v824_v48, %v824_v48  ;;  %v854_v59 = vmax.f32 %v720_v49, 0.0  ;;  %v825_v60 = vmax.f32 %v603_v50, 0.0  ;;  %v723_v61 = vadd.f32 %v1730_v38, %v722_v57 }
  0xfb   : > { %v1439_v62 = vpack.c.bf16 %v856_v53, %v856_v53  ;;  %v1405_v63 = vpack.c.bf16 %v822_v54, %v822_v54  ;;  %v857_v0 = vmax.f32 %v731_v55, 0.0  ;;  %v823_v1 = vmax.f32 %v595_v56, 0.0 }
  0xfc   : > { %1145 = vst.msk [vmem:[%s1742_s27 + $0x28] sm:$0xf] %vm1134_vm3, %v1407_v58  ;;  %v1437_v2 = vpack.c.bf16 %v854_v59, %v854_v59  ;;  %v1408_v3 = vpack.c.bf16 %v825_v60, %v825_v60  ;;  %v855_v4 = vmax.f32 %v723_v61, 0.0 }
  0xfd   : > { %1177 = vst.msk [vmem:[%s1742_s27 + $0xa8] sm:$0xf] %vm1134_vm3, %v1439_v62  ;;  %1143 = vst.msk [vmem:[%s1742_s27 + $0x20] sm:$0xf] %vm1134_vm3, %v1405_v63  ;;  %v1440_v5 = vpack.c.bf16 %v857_v0, %v857_v0  ;;  %v1406_v6 = vpack.c.bf16 %v823_v1, %v823_v1  ;;  %v1513_v7 = vpop.f32.mrb[12].mxu0 }
  0xfe   : > { %1175 = vst.msk [vmem:[%s1742_s27 + $0xa0] sm:$0xf] %vm1134_vm3, %v1437_v2  ;;  %1146 = vst.msk [vmem:[%s1742_s27 + $0x2c] sm:$0xf] %vm1134_vm3, %v1408_v3  ;;  %v1438_v8 = vpack.c.bf16 %v855_v4, %v855_v4  ;;  %v616_v9 = vadd.f32 %v1513_v7, %v1730_v38  ;;  %v1545_v10 = vpop.f32.mrb[12].mxu1  ;;  %v607_v11 = vpop.f32.mrb[13].mxu0 }
  0xff   : > { %1178 = vst.msk [vmem:[%s1742_s27 + $0xac] sm:$0xf] %vm1134_vm3, %v1440_v5  ;;  %1144 = vst.msk [vmem:[%s1742_s27 + $0x24] sm:$0xf] %vm1134_vm3, %v1406_v6  ;;  %v744_v12 = vadd.f32 %v1545_v10, %v1730_v38  ;;  %v608_v13 = vadd.f32 %v1730_v38, %v607_v11  ;;  %v735_v14 = vpop.f32.mrb[13].mxu1  ;;  %v1514_v15 = vpop.f32.mrb[14].mxu0 }
 0x100   : > { %1176 = vst.msk [vmem:[%s1742_s27 + $0xa4] sm:$0xf] %vm1134_vm3, %v1438_v8  ;;  %v828_v16 = vmax.f32 %v616_v9, 0.0  ;;  %v736_v17 = vadd.f32 %v1730_v38, %v735_v14  ;;  %v619_v18 = vadd.f32 %v1514_v15, %v1730_v38  ;;  %v1546_v19 = vpop.f32.mrb[14].mxu1  ;;  %v610_v20 = vpop.f32.mrb[15].mxu0 }
 0x101   : > { %v860_v21 = vmax.f32 %v744_v12, 0.0  ;;  %v826_v22 = vmax.f32 %v608_v13, 0.0  ;;  %v747_v23 = vadd.f32 %v1546_v19, %v1730_v38  ;;  %v611_v24 = vadd.f32 %v1730_v38, %v610_v20  ;;  %v738_v25 = vpop.f32.mrb[15].mxu1 }
 0x102   : > { %v1411_v26 = vpack.c.bf16 %v828_v16, %v828_v16  ;;  %v858_v27 = vmax.f32 %v736_v17, 0.0  ;;  %v829_v28 = vmax.f32 %v619_v18, 0.0  ;;  %v739_v29 = vadd.f32 %v1730_v38, %v738_v25 }
 0x103   : > { %v1443_v30 = vpack.c.bf16 %v860_v21, %v860_v21  ;;  %v1409_v31 = vpack.c.bf16 %v826_v22, %v826_v22  ;;  %v861_v32 = vmax.f32 %v747_v23, 0.0  ;;  %v827_v33 = vmax.f32 %v611_v24, 0.0 }
 0x104   : > { %1149 = vst.msk [vmem:[%s1742_s27 + $0x38] sm:$0xf] %vm1134_vm3, %v1411_v26  ;;  %v1441_v34 = vpack.c.bf16 %v858_v27, %v858_v27  ;;  %v1412_v35 = vpack.c.bf16 %v829_v28, %v829_v28  ;;  %v859_v36 = vmax.f32 %v739_v29, 0.0 }
 0x105   : > { %1181 = vst.msk [vmem:[%s1742_s27 + $0xb8] sm:$0xf] %vm1134_vm3, %v1443_v30  ;;  %1147 = vst.msk [vmem:[%s1742_s27 + $0x30] sm:$0xf] %vm1134_vm3, %v1409_v31  ;;  %v1444_v37 = vpack.c.bf16 %v861_v32, %v861_v32  ;;  %v1410_v39 = vpack.c.bf16 %v827_v33, %v827_v33  ;;  %v1517_v40 = vpop.f32.mrb[16].mxu0 }
 0x106   : > { %1179 = vst.msk [vmem:[%s1742_s27 + $0xb0] sm:$0xf] %vm1134_vm3, %v1441_v34  ;;  %1150 = vst.msk [vmem:[%s1742_s27 + $0x3c] sm:$0xf] %vm1134_vm3, %v1412_v35  ;;  %v1442_v41 = vpack.c.bf16 %v859_v36, %v859_v36  ;;  %v632_v42 = vadd.f32 %v1517_v40, %v1730_v38  ;;  %v1549_v43 = vpop.f32.mrb[16].mxu1  ;;  %v623_v44 = vpop.f32.mrb[17].mxu0 }
 0x107   : > { %1182 = vst.msk [vmem:[%s1742_s27 + $0xbc] sm:$0xf] %vm1134_vm3, %v1444_v37  ;;  %1148 = vst.msk [vmem:[%s1742_s27 + $0x34] sm:$0xf] %vm1134_vm3, %v1410_v39  ;;  %v760_v45 = vadd.f32 %v1549_v43, %v1730_v38  ;;  %v624_v46 = vadd.f32 %v1730_v38, %v623_v44  ;;  %v751_v47 = vpop.f32.mrb[17].mxu1  ;;  %v1518_v48 = vpop.f32.mrb[18].mxu0 }
 0x108   : > { %1180 = vst.msk [vmem:[%s1742_s27 + $0xb4] sm:$0xf] %vm1134_vm3, %v1442_v41  ;;  %v832_v49 = vmax.f32 %v632_v42, 0.0  ;;  %v752_v50 = vadd.f32 %v1730_v38, %v751_v47  ;;  %v635_v51 = vadd.f32 %v1518_v48, %v1730_v38  ;;  %v1550_v52 = vpop.f32.mrb[18].mxu1  ;;  %v626_v53 = vpop.f32.mrb[19].mxu0 }
 0x109   : > { %v864_v54 = vmax.f32 %v760_v45, 0.0  ;;  %v830_v55 = vmax.f32 %v624_v46, 0.0  ;;  %v763_v56 = vadd.f32 %v1550_v52, %v1730_v38  ;;  %v627_v57 = vadd.f32 %v1730_v38, %v626_v53  ;;  %v754_v58 = vpop.f32.mrb[19].mxu1 }
 0x10a   : > { %v1415_v59 = vpack.c.bf16 %v832_v49, %v832_v49  ;;  %v862_v60 = vmax.f32 %v752_v50, 0.0  ;;  %v833_v61 = vmax.f32 %v635_v51, 0.0  ;;  %v755_v62 = vadd.f32 %v1730_v38, %v754_v58 }
 0x10b   : > { %v1447_v63 = vpack.c.bf16 %v864_v54, %v864_v54  ;;  %v1413_v0 = vpack.c.bf16 %v830_v55, %v830_v55  ;;  %v865_v1 = vmax.f32 %v763_v56, 0.0  ;;  %v831_v2 = vmax.f32 %v627_v57, 0.0 }
 0x10c   : > { %1153 = vst.msk [vmem:[%s1742_s27 + $0x48] sm:$0xf] %vm1134_vm3, %v1415_v59  ;;  %v1445_v3 = vpack.c.bf16 %v862_v60, %v862_v60  ;;  %v1416_v4 = vpack.c.bf16 %v833_v61, %v833_v61  ;;  %v863_v5 = vmax.f32 %v755_v62, 0.0 }
 0x10d   : > { %1185 = vst.msk [vmem:[%s1742_s27 + $0xc8] sm:$0xf] %vm1134_vm3, %v1447_v63  ;;  %1151 = vst.msk [vmem:[%s1742_s27 + $0x40] sm:$0xf] %vm1134_vm3, %v1413_v0  ;;  %v1448_v6 = vpack.c.bf16 %v865_v1, %v865_v1  ;;  %v1414_v7 = vpack.c.bf16 %v831_v2, %v831_v2  ;;  %v1521_v8 = vpop.f32.mrb[20].mxu0 }
 0x10e   : > { %1183 = vst.msk [vmem:[%s1742_s27 + $0xc0] sm:$0xf] %vm1134_vm3, %v1445_v3  ;;  %1154 = vst.msk [vmem:[%s1742_s27 + $0x4c] sm:$0xf] %vm1134_vm3, %v1416_v4  ;;  %v1446_v9 = vpack.c.bf16 %v863_v5, %v863_v5  ;;  %v648_v10 = vadd.f32 %v1521_v8, %v1730_v38  ;;  %v1553_v11 = vpop.f32.mrb[20].mxu1  ;;  %v639_v12 = vpop.f32.mrb[21].mxu0 }
 0x10f   : > { %1186 = vst.msk [vmem:[%s1742_s27 + $0xcc] sm:$0xf] %vm1134_vm3, %v1448_v6  ;;  %1152 = vst.msk [vmem:[%s1742_s27 + $0x44] sm:$0xf] %vm1134_vm3, %v1414_v7  ;;  %v776_v13 = vadd.f32 %v1553_v11, %v1730_v38  ;;  %v640_v14 = vadd.f32 %v1730_v38, %v639_v12  ;;  %v767_v15 = vpop.f32.mrb[21].mxu1  ;;  %v1522_v16 = vpop.f32.mrb[22].mxu0 }
 0x110   : > { %1184 = vst.msk [vmem:[%s1742_s27 + $0xc4] sm:$0xf] %vm1134_vm3, %v1446_v9  ;;  %v836_v17 = vmax.f32 %v648_v10, 0.0  ;;  %v768_v18 = vadd.f32 %v1730_v38, %v767_v15  ;;  %v651_v19 = vadd.f32 %v1522_v16, %v1730_v38  ;;  %v1554_v20 = vpop.f32.mrb[22].mxu1  ;;  %v642_v21 = vpop.f32.mrb[23].mxu0 }
 0x111   : > { %v868_v22 = vmax.f32 %v776_v13, 0.0  ;;  %v834_v23 = vmax.f32 %v640_v14, 0.0  ;;  %v779_v24 = vadd.f32 %v1554_v20, %v1730_v38  ;;  %v643_v25 = vadd.f32 %v1730_v38, %v642_v21  ;;  %v770_v26 = vpop.f32.mrb[23].mxu1 }
 0x112   : > { %v1419_v27 = vpack.c.bf16 %v836_v17, %v836_v17  ;;  %v866_v28 = vmax.f32 %v768_v18, 0.0  ;;  %v837_v29 = vmax.f32 %v651_v19, 0.0  ;;  %v771_v30 = vadd.f32 %v1730_v38, %v770_v26 }
 0x113   : > { %v1451_v31 = vpack.c.bf16 %v868_v22, %v868_v22  ;;  %v1417_v32 = vpack.c.bf16 %v834_v23, %v834_v23  ;;  %v869_v33 = vmax.f32 %v779_v24, 0.0  ;;  %v835_v34 = vmax.f32 %v643_v25, 0.0 }
 0x114   : > { %1157 = vst.msk [vmem:[%s1742_s27 + $0x58] sm:$0xf] %vm1134_vm3, %v1419_v27  ;;  %v1449_v35 = vpack.c.bf16 %v866_v28, %v866_v28  ;;  %v1420_v36 = vpack.c.bf16 %v837_v29, %v837_v29  ;;  %v867_v37 = vmax.f32 %v771_v30, 0.0 }
 0x115   : > { %1189 = vst.msk [vmem:[%s1742_s27 + $0xd8] sm:$0xf] %vm1134_vm3, %v1451_v31  ;;  %1155 = vst.msk [vmem:[%s1742_s27 + $0x50] sm:$0xf] %vm1134_vm3, %v1417_v32  ;;  %v1452_v39 = vpack.c.bf16 %v869_v33, %v869_v33  ;;  %v1418_v40 = vpack.c.bf16 %v835_v34, %v835_v34  ;;  %v1525_v41 = vpop.f32.mrb[24].mxu0 }
 0x116   : > { %1187 = vst.msk [vmem:[%s1742_s27 + $0xd0] sm:$0xf] %vm1134_vm3, %v1449_v35  ;;  %1158 = vst.msk [vmem:[%s1742_s27 + $0x5c] sm:$0xf] %vm1134_vm3, %v1420_v36  ;;  %v1450_v42 = vpack.c.bf16 %v867_v37, %v867_v37  ;;  %v664_v43 = vadd.f32 %v1525_v41, %v1730_v38  ;;  %v1557_v44 = vpop.f32.mrb[24].mxu1  ;;  %v655_v45 = vpop.f32.mrb[25].mxu0 }
 0x117   : > { %1190 = vst.msk [vmem:[%s1742_s27 + $0xdc] sm:$0xf] %vm1134_vm3, %v1452_v39  ;;  %1156 = vst.msk [vmem:[%s1742_s27 + $0x54] sm:$0xf] %vm1134_vm3, %v1418_v40  ;;  %v792_v46 = vadd.f32 %v1557_v44, %v1730_v38  ;;  %v656_v47 = vadd.f32 %v1730_v38, %v655_v45  ;;  %v783_v48 = vpop.f32.mrb[25].mxu1  ;;  %v1526_v49 = vpop.f32.mrb[26].mxu0 }
 0x118   : > { %1188 = vst.msk [vmem:[%s1742_s27 + $0xd4] sm:$0xf] %vm1134_vm3, %v1450_v42  ;;  %v840_v50 = vmax.f32 %v664_v43, 0.0  ;;  %v784_v51 = vadd.f32 %v1730_v38, %v783_v48  ;;  %v667_v52 = vadd.f32 %v1526_v49, %v1730_v38  ;;  %v1558_v53 = vpop.f32.mrb[26].mxu1  ;;  %v658_v54 = vpop.f32.mrb[27].mxu0 }
 0x119   : > { %v872_v55 = vmax.f32 %v792_v46, 0.0  ;;  %v838_v56 = vmax.f32 %v656_v47, 0.0  ;;  %v795_v57 = vadd.f32 %v1558_v53, %v1730_v38  ;;  %v659_v58 = vadd.f32 %v1730_v38, %v658_v54  ;;  %v786_v59 = vpop.f32.mrb[27].mxu1 }
 0x11a   : > { %v1423_v60 = vpack.c.bf16 %v840_v50, %v840_v50  ;;  %v870_v61 = vmax.f32 %v784_v51, 0.0  ;;  %v841_v62 = vmax.f32 %v667_v52, 0.0  ;;  %v787_v63 = vadd.f32 %v1730_v38, %v786_v59 }
 0x11b   : > { %v1455_v0 = vpack.c.bf16 %v872_v55, %v872_v55  ;;  %v1421_v1 = vpack.c.bf16 %v838_v56, %v838_v56  ;;  %v873_v2 = vmax.f32 %v795_v57, 0.0  ;;  %v839_v3 = vmax.f32 %v659_v58, 0.0 }
 0x11c   : > { %1161 = vst.msk [vmem:[%s1742_s27 + $0x68] sm:$0xf] %vm1134_vm3, %v1423_v60  ;;  %v1453_v4 = vpack.c.bf16 %v870_v61, %v870_v61  ;;  %v1424_v5 = vpack.c.bf16 %v841_v62, %v841_v62  ;;  %v871_v6 = vmax.f32 %v787_v63, 0.0 }
 0x11d   : > { %1193 = vst.msk [vmem:[%s1742_s27 + $0xe8] sm:$0xf] %vm1134_vm3, %v1455_v0  ;;  %1159 = vst.msk [vmem:[%s1742_s27 + $0x60] sm:$0xf] %vm1134_vm3, %v1421_v1  ;;  %v1456_v7 = vpack.c.bf16 %v873_v2, %v873_v2  ;;  %v1422_v8 = vpack.c.bf16 %v839_v3, %v839_v3  ;;  %v1529_v9 = vpop.f32.mrb[28].mxu0 }
 0x11e   : > { %1191 = vst.msk [vmem:[%s1742_s27 + $0xe0] sm:$0xf] %vm1134_vm3, %v1453_v4  ;;  %1162 = vst.msk [vmem:[%s1742_s27 + $0x6c] sm:$0xf] %vm1134_vm3, %v1424_v5  ;;  %v1454_v10 = vpack.c.bf16 %v871_v6, %v871_v6  ;;  %v680_v11 = vadd.f32 %v1529_v9, %v1730_v38  ;;  %v1561_v12 = vpop.f32.mrb[28].mxu1  ;;  %v671_v13 = vpop.f32.mrb[29].mxu0 }
 0x11f   : > { %1194 = vst.msk [vmem:[%s1742_s27 + $0xec] sm:$0xf] %vm1134_vm3, %v1456_v7  ;;  %1160 = vst.msk [vmem:[%s1742_s27 + $0x64] sm:$0xf] %vm1134_vm3, %v1422_v8  ;;  %v808_v14 = vadd.f32 %v1561_v12, %v1730_v38  ;;  %v672_v15 = vadd.f32 %v1730_v38, %v671_v13  ;;  %v799_v16 = vpop.f32.mrb[29].mxu1  ;;  %v1530_v17 = vpop.f32.mrb[30].mxu0 }
 0x120   : > { %1192 = vst.msk [vmem:[%s1742_s27 + $0xe4] sm:$0xf] %vm1134_vm3, %v1454_v10  ;;  %v844_v18 = vmax.f32 %v680_v11, 0.0  ;;  %v800_v19 = vadd.f32 %v1730_v38, %v799_v16  ;;  %v683_v20 = vadd.f32 %v1530_v17, %v1730_v38  ;;  %v1562_v21 = vpop.f32.mrb[30].mxu1  ;;  %v674_v22 = vpop.f32.mrb[31].mxu0 }
 0x121   : > { %v876_v23 = vmax.f32 %v808_v14, 0.0  ;;  %v842_v24 = vmax.f32 %v672_v15, 0.0  ;;  %v811_v25 = vadd.f32 %v1562_v21, %v1730_v38  ;;  %v675_v26 = vadd.f32 %v1730_v38, %v674_v22  ;;  %v802_v27 = vpop.f32.mrb[31].mxu1 }
 0x122   : > { %v1427_v28 = vpack.c.bf16 %v844_v18, %v844_v18  ;;  %v874_v29 = vmax.f32 %v800_v19, 0.0  ;;  %v845_v30 = vmax.f32 %v683_v20, 0.0  ;;  %v803_v31 = vadd.f32 %v1730_v38, %v802_v27 }
 0x123   : > { %v1459_v32 = vpack.c.bf16 %v876_v23, %v876_v23  ;;  %v1425_v33 = vpack.c.bf16 %v842_v24, %v842_v24  ;;  %v877_v34 = vmax.f32 %v811_v25, 0.0  ;;  %v843_v35 = vmax.f32 %v675_v26, 0.0 }
 0x124   : > { %1165 = vst.msk [vmem:[%s1742_s27 + $0x78] sm:$0xf] %vm1134_vm3, %v1427_v28  ;;  %v1457_v36 = vpack.c.bf16 %v874_v29, %v874_v29  ;;  %v1428_v37 = vpack.c.bf16 %v845_v30, %v845_v30  ;;  %v875_v39 = vmax.f32 %v803_v31, 0.0 }
 0x125   : > { %1197 = vst.msk [vmem:[%s1742_s27 + $0xf8] sm:$0xf] %vm1134_vm3, %v1459_v32  ;;  %1163 = vst.msk [vmem:[%s1742_s27 + $0x70] sm:$0xf] %vm1134_vm3, %v1425_v33  ;;  %v1460_v40 = vpack.c.bf16 %v877_v34, %v877_v34  ;;  %v1426_v41 = vpack.c.bf16 %v843_v35, %v843_v35 }
 0x126   : > { %1195 = vst.msk [vmem:[%s1742_s27 + $0xf0] sm:$0xf] %vm1134_vm3, %v1457_v36  ;;  %1166 = vst.msk [vmem:[%s1742_s27 + $0x7c] sm:$0xf] %vm1134_vm3, %v1428_v37  ;;  %v1458_v38 = vpack.c.bf16 %v875_v39, %v875_v39 }
 0x127   : > { %1198 = vst.msk [vmem:[%s1742_s27 + $0xfc] sm:$0xf] %vm1134_vm3, %v1460_v40  ;;  %1164 = vst.msk [vmem:[%s1742_s27 + $0x74] sm:$0xf] %vm1134_vm3, %v1426_v41 }
 0x128   : > { %1196 = vst.msk [vmem:[%s1742_s27 + $0xf4] sm:$0xf] %vm1134_vm3, %v1458_v38 }
 0x129 PF: > { %s13_s12 = sadd.s32 1, %s1616_s12  }
 0x12a   : > { %p10_p4 = scmp.ge.s32.totalorder %s13_s12, 4  }
 0x12c   :  { %12 = sbr.rel (!%p10_p4) target bundleno = 1 (0x1), region = 62 }

// kernel: thermal_net_resnet_forward.7
= control target key start
LH: loop header
LB: loop body
LE: loop exit
PB: predicated region body
PF: predicated region fallthrough
CT: control target
= control target key end

     0   :  { %s788_s12 = smov 0   ;;  %s917_s0 = inlined_call_operand.vmem [shape: bf16[256,144], index: 0, kind: input, shape index: {}]   ;;  %s918_s1 = inlined_call_operand.vmem [shape: bf16[144,32], index: 1, kind: input, shape index: {}]   ;;  %s919_s2 = inlined_call_operand.vmem [shape: f32[1,32], index: 2, kind: input, shape index: {}]   ;;  %s920_s3 = inlined_call_operand.vmem [shape: bf16[256,32], index: 3, kind: output, shape index: {}]  }
   0x1 LB: > { %s620_s13 = sadd.s32 4294967295, %s765_s12   ;;  %p624_p0 = scmp.ge.s32.totalorder %s765_s12, 1  ;;  %s765_s12 = sphi %s788_s12, %s13_s12  }
   0x2   : > { %p139_p1 = scmp.lt.s32.totalorder %s765_s12, 3 }
   0x4   : > { %p140_p2 = pnand %p624_p0, %p139_p1 }
   0x5   : > { %v726_v0 = vld [vmem:[%s918_s1] sm:$0xff] (!%p140_p2)   ;;  %v767_v1 = vmov (!%p140_p2), 0   ;;  %s625_s16 = sshll.u32 (!%p140_p2), %s620_s13, 4  ;;  %v727_v2 = vld [vmem:[%s918_s1 + $0x8] sm:$0xff] (!%p140_p2)   ;;  %v728_v3 = vld [vmem:[%s918_s1 + $0x10] sm:$0xff] (!%p140_p2)   ;;  %vm345_vm0 = vcmask (!%p140_p2), 130048  }
   0x6   : > { %143 = sbr.rel (%p140_p2) target bundleno = 287 (0x11f), region = 32  ;;  %370 = vmatprep.subr.bf16.mxu0 (!%p140_p2), %v767_v1  ;;  %699 = vmatprep.subr.bf16.mxu1 (!%p140_p2), %v767_v1  ;;  %p165_p3 = scmp.lt.s32.totalorder (!%p140_p2), %s625_s16, 31  ;;  %v729_v4 = vld [vmem:[%s918_s1 + $0x18] sm:$0xff] (!%p140_p2)   ;;  %v730_v7 = vld [vmem:[%s918_s1 + $0x20] sm:$0xff] (!%p140_p2)   ;;  %v731_v8 = vld [vmem:[%s918_s1 + $0x28] sm:$0xff] (!%p140_p2)   ;;  %vm547_vm1 = vcmask (!%p140_p2), 257024  }
   0x7   : > { %371 = vmatpush1.bf16.msra.mxu0 (!%p140_p2), %v726_v0  ;;  %708 = vmatpush1.bf16.msra.mxu1 (!%p140_p2), %v726_v0  ;;  %v732_v9 = vld [vmem:[%s918_s1 + $0x30] sm:$0xff] (!%p140_p2)   ;;  %v733_v10 = vld [vmem:[%s918_s1 + $0x38] sm:$0xff] (!%p140_p2)   ;;  %v734_v11 = vld [vmem:[%s918_s1 + $0x40] sm:$0xff] (!%p140_p2)  }
   0x8   : > { %372 = vmatprep.subr.bf16.mxu0 (!%p140_p2), %v767_v1  ;;  %700 = vmatprep.subr.bf16.mxu1 (!%p140_p2), %v767_v1  ;;  %v858_v26 = vld [vmem:[%s919_s2] ss:$0 sm:$0xff] (!%p140_p2) }
   0xb   : > { %373 = vmatpush1.bf16.msra.mxu0 (!%p140_p2), %v727_v2  ;;  %709 = vmatpush1.bf16.msra.mxu1 (!%p140_p2), %v727_v2 }
   0xc   : > { %374 = vmatprep.subr.bf16.mxu0 (!%p140_p2), %v767_v1  ;;  %701 = vmatprep.subr.bf16.mxu1 (!%p140_p2), %v767_v1 }
   0xd   : > { %s922_s16 = smov (!%p165_p3, %s625_s16), 31 }
   0xe   : > { %s682_s21 = sshll.u32 %s922_s16, 3  ;;  %s629_s13 = sshll.u32 %s922_s16, 2 }
   0xf   : > { %s811_s24 = scalar_lea.vmem %s917_s0, %s682_s21  ;;  %375 = vmatpush1.bf16.msra.mxu0 %v728_v3  ;;  %710 = vmatpush1.bf16.msra.mxu1 %v728_v3  ;;  %s868_s16 = scalar_lea.vmem %s920_s3, %s629_s13 }
  0x10   : > { %v737_v5 = vld [vmem:[%s811_s24 + $0x4] ss:$8 sps:$4 sm:$0xff]   ;;  %376 = vmatprep.subr.bf16.mxu0 %v767_v1  ;;  %702 = vmatprep.subr.bf16.mxu1 %v767_v1  ;;  %v735_v12 = vld [vmem:[%s811_s24] ss:$8 sps:$4 sm:$0xff]   ;;  %v741_v14 = vld [vmem:[%s811_s24 + $0x14] ss:$8 sps:$4 sm:$0xff]  }
  0x11   : > { %v740_v6 = vld [vmem:[%s811_s24 + $0x44] ss:$8 sps:$4 sm:$0xff]   ;;  %656 = vmatprep.mubr.msk.bf16.mxu0 %vm345_vm0, %v737_v5  ;;  %v738_v13 = vld [vmem:[%s811_s24 + $0x40] ss:$8 sps:$4 sm:$0xff]   ;;  %v743_v15 = vld [vmem:[%s811_s24 + $0x54] ss:$8 sps:$4 sm:$0xff]  }
  0x12   : > { %660 = vmatprep.mubr.msk.bf16.mxu1 %vm345_vm0, %v740_v6  ;;  %v745_v16 = vld [vmem:[%s811_s24 + $0x10] ss:$8 sps:$4 sm:$0xff]   ;;  %v747_v18 = vld [vmem:[%s811_s24 + $0x24] ss:$8 sps:$4 sm:$0xff]   ;;  %v751_v20 = vld [vmem:[%s811_s24 + $0x20] ss:$8 sps:$4 sm:$0xff]  }
  0x13   : > { %377 = vmatpush1.bf16.msra.mxu0 %v729_v4  ;;  %711 = vmatpush1.bf16.msra.mxu1 %v729_v4  ;;  %v746_v17 = vld [vmem:[%s811_s24 + $0x50] ss:$8 sps:$4 sm:$0xff]   ;;  %v749_v19 = vld [vmem:[%s811_s24 + $0x64] ss:$8 sps:$4 sm:$0xff]   ;;  %v752_v21 = vld [vmem:[%s811_s24 + $0x60] ss:$8 sps:$4 sm:$0xff]  }
  0x14   : > { %378 = vmatprep.subr.bf16.mxu0 %v767_v1  ;;  %703 = vmatprep.subr.bf16.mxu1 %v767_v1  ;;  %v753_v22 = vld [vmem:[%s811_s24 + $0x34] ss:$8 sps:$4 sm:$0xff]   ;;  %v757_v24 = vld [vmem:[%s811_s24 + $0x30] ss:$8 sps:$4 sm:$0xff]  }
  0x15   : > { %v755_v23 = vld [vmem:[%s811_s24 + $0x74] ss:$8 sps:$4 sm:$0xff]   ;;  %v758_v25 = vld [vmem:[%s811_s24 + $0x70] ss:$8 sps:$4 sm:$0xff]  }
  0x17   : > { %379 = vmatpush1.bf16.msra.mxu0 %v730_v7  ;;  %712 = vmatpush1.bf16.msra.mxu1 %v730_v7 }
  0x18   : > { %380 = vmatprep.subr.bf16.mxu0 %v767_v1  ;;  %704 = vmatprep.subr.bf16.mxu1 %v767_v1 }
  0x1b   : > { %381 = vmatpush1.bf16.msra.mxu0 %v731_v8  ;;  %713 = vmatpush1.bf16.msra.mxu1 %v731_v8 }
  0x1c   : > { %382 = vmatprep.subr.bf16.mxu0 %v767_v1  ;;  %705 = vmatprep.subr.bf16.mxu1 %v767_v1 }
  0x1f   : > { %383 = vmatpush1.bf16.msra.mxu0 %v732_v9  ;;  %714 = vmatpush1.bf16.msra.mxu1 %v732_v9 }
  0x20   : > { %384 = vmatprep.subr.bf16.mxu0 %v767_v1  ;;  %706 = vmatprep.subr.bf16.mxu1 %v767_v1 }
  0x23   : > { %385 = vmatpush1.bf16.msra.mxu0 %v733_v10  ;;  %715 = vmatpush1.bf16.msra.mxu1 %v733_v10 }
  0x24   : > { %386 = vmatprep.subr.bf16.mxu0 %v767_v1  ;;  %707 = vmatprep.subr.bf16.mxu1 %v767_v1 }
  0x27   : > { %387 = vmatpush1.bf16.msra.mxu0 %v734_v11  ;;  %716 = vmatpush1.bf16.msra.mxu1 %v734_v11 }
  0x2a   : > { %403 = vmatmul.mubr.bf16.vlgmr.msra.gmra.mrb[0].mxu0 %v735_v12  ;;  %435 = vmatmul.mubr.bf16.vlgmr.msra.gmra.mrb[0].mxu1 %v738_v13 }
  0x2b   : > { %657 = vmatprep.mubr.msk.bf16.mxu0 %vm345_vm0, %v741_v14  ;;  %661 = vmatprep.mubr.msk.bf16.mxu1 %vm345_vm0, %v743_v15 }
  0x32   : > { %411 = vmatmul.mubr.bf16.gmra.mrb[4].mxu0 %v745_v16  ;;  %443 = vmatmul.mubr.bf16.gmra.mrb[4].mxu1 %v746_v17 }
  0x33   : > { %658 = vmatprep.mubr.msk.bf16.mxu0 %vm345_vm0, %v747_v18  ;;  %662 = vmatprep.mubr.msk.bf16.mxu1 %vm345_vm0, %v749_v19 }
  0x3a   : > { %419 = vmatmul.mubr.bf16.gmra.mrb[8].mxu0 %v751_v20  ;;  %451 = vmatmul.mubr.bf16.gmra.mrb[8].mxu1 %v752_v21 }
  0x3b   : > { %659 = vmatprep.mubr.msk.bf16.mxu0 %vm345_vm0, %v753_v22  ;;  %663 = vmatprep.mubr.msk.bf16.mxu1 %vm345_vm0, %v755_v23 }
  0x42   : > { %427 = vmatmul.mubr.bf16.gmra.mrb[12].mxu0 %v757_v24  ;;  %459 = vmatmul.mubr.bf16.gmra.mrb[12].mxu1 %v758_v25 }
  0xfd   : > { %v404_v27 = vpop.f32.mrb[0].mxu0  ;;  %v436_v28 = vpop.f32.mrb[0].mxu1 }
  0xfe   : > { %v405_v29 = vadd.f32 %v858_v26, %v404_v27  ;;  %v437_v30 = vadd.f32 %v858_v26, %v436_v28  ;;  %v406_v31 = vpop.f32.mrb[1].mxu0  ;;  %v438_v32 = vpop.f32.mrb[1].mxu1 }
  0xff   : > { %v407_v33 = vpop.f32.mrb[2].mxu0  ;;  %v439_v34 = vpop.f32.mrb[2].mxu1 }
 0x100   : > { %v467_v35 = vmax.f32 %v405_v29, 0.0  ;;  %v475_v36 = vmax.f32 %v437_v30, 0.0  ;;  %v408_v37 = vadd.f32 %v858_v26, %v407_v33  ;;  %v440_v38 = vadd.f32 %v858_v26, %v439_v34  ;;  %v409_v39 = vpop.f32.mrb[3].mxu0  ;;  %v441_v40 = vpop.f32.mrb[3].mxu1 }
 0x102   : > { %v683_v41 = vpack.c.bf16 %v467_v35, %v467_v35  ;;  %v691_v42 = vpack.c.bf16 %v475_v36, %v475_v36  ;;  %v468_v43 = vmax.f32 %v408_v37, 0.0  ;;  %v476_v44 = vmax.f32 %v440_v38, 0.0 }
 0x104   : > { %548 = vst.msk [vmem:[%s868_s16] sm:$0xf] %vm547_vm1, %v683_v41  ;;  %556 = vst.msk [vmem:[%s868_s16 + $0x20] sm:$0xf] %vm547_vm1, %v691_v42  ;;  %v684_v45 = vpack.c.bf16 %v468_v43, %v468_v43  ;;  %v692_v46 = vpack.c.bf16 %v476_v44, %v476_v44 }
 0x105   : > { %v412_v47 = vpop.f32.mrb[4].mxu0  ;;  %v444_v48 = vpop.f32.mrb[4].mxu1 }
 0x106   : > { %549 = vst.msk [vmem:[%s868_s16 + $0x4] sm:$0xf] %vm547_vm1, %v684_v45  ;;  %557 = vst.msk [vmem:[%s868_s16 + $0x24] sm:$0xf] %vm547_vm1, %v692_v46  ;;  %v413_v49 = vadd.f32 %v858_v26, %v412_v47  ;;  %v445_v50 = vadd.f32 %v858_v26, %v444_v48  ;;  %v414_v51 = vpop.f32.mrb[5].mxu0  ;;  %v446_v52 = vpop.f32.mrb[5].mxu1 }
 0x107   : > { %v415_v53 = vpop.f32.mrb[6].mxu0  ;;  %v447_v54 = vpop.f32.mrb[6].mxu1 }
 0x108   : > { %v469_v55 = vmax.f32 %v413_v49, 0.0  ;;  %v477_v56 = vmax.f32 %v445_v50, 0.0  ;;  %v416_v57 = vadd.f32 %v858_v26, %v415_v53  ;;  %v448_v58 = vadd.f32 %v858_v26, %v447_v54  ;;  %v417_v59 = vpop.f32.mrb[7].mxu0  ;;  %v449_v60 = vpop.f32.mrb[7].mxu1 }
 0x10a   : > { %v685_v61 = vpack.c.bf16 %v469_v55, %v469_v55  ;;  %v693_v62 = vpack.c.bf16 %v477_v56, %v477_v56  ;;  %v470_v63 = vmax.f32 %v416_v57, 0.0  ;;  %v478_v0 = vmax.f32 %v448_v58, 0.0 }
 0x10c   : > { %550 = vst.msk [vmem:[%s868_s16 + $0x8] sm:$0xf] %vm547_vm1, %v685_v61  ;;  %558 = vst.msk [vmem:[%s868_s16 + $0x28] sm:$0xf] %vm547_vm1, %v693_v62  ;;  %v686_v1 = vpack.c.bf16 %v470_v63, %v470_v63  ;;  %v694_v2 = vpack.c.bf16 %v478_v0, %v478_v0 }
 0x10d   : > { %v420_v3 = vpop.f32.mrb[8].mxu0  ;;  %v452_v4 = vpop.f32.mrb[8].mxu1 }
 0x10e   : > { %551 = vst.msk [vmem:[%s868_s16 + $0xc] sm:$0xf] %vm547_vm1, %v686_v1  ;;  %559 = vst.msk [vmem:[%s868_s16 + $0x2c] sm:$0xf] %vm547_vm1, %v694_v2  ;;  %v421_v5 = vadd.f32 %v858_v26, %v420_v3  ;;  %v453_v6 = vadd.f32 %v858_v26, %v452_v4  ;;  %v422_v7 = vpop.f32.mrb[9].mxu0  ;;  %v454_v8 = vpop.f32.mrb[9].mxu1 }
 0x10f   : > { %v423_v9 = vpop.f32.mrb[10].mxu0  ;;  %v455_v10 = vpop.f32.mrb[10].mxu1 }
 0x110   : > { %v471_v11 = vmax.f32 %v421_v5, 0.0  ;;  %v479_v12 = vmax.f32 %v453_v6, 0.0  ;;  %v424_v13 = vadd.f32 %v858_v26, %v423_v9  ;;  %v456_v14 = vadd.f32 %v858_v26, %v455_v10  ;;  %v425_v15 = vpop.f32.mrb[11].mxu0  ;;  %v457_v16 = vpop.f32.mrb[11].mxu1 }
 0x112   : > { %v687_v17 = vpack.c.bf16 %v471_v11, %v471_v11  ;;  %v695_v18 = vpack.c.bf16 %v479_v12, %v479_v12  ;;  %v472_v19 = vmax.f32 %v424_v13, 0.0  ;;  %v480_v20 = vmax.f32 %v456_v14, 0.0 }
 0x114   : > { %552 = vst.msk [vmem:[%s868_s16 + $0x10] sm:$0xf] %vm547_vm1, %v687_v17  ;;  %560 = vst.msk [vmem:[%s868_s16 + $0x30] sm:$0xf] %vm547_vm1, %v695_v18  ;;  %v688_v21 = vpack.c.bf16 %v472_v19, %v472_v19  ;;  %v696_v22 = vpack.c.bf16 %v480_v20, %v480_v20 }
 0x115   : > { %v428_v23 = vpop.f32.mrb[12].mxu0  ;;  %v460_v24 = vpop.f32.mrb[12].mxu1 }
 0x116   : > { %553 = vst.msk [vmem:[%s868_s16 + $0x14] sm:$0xf] %vm547_vm1, %v688_v21  ;;  %561 = vst.msk [vmem:[%s868_s16 + $0x34] sm:$0xf] %vm547_vm1, %v696_v22  ;;  %v429_v25 = vadd.f32 %v858_v26, %v428_v23  ;;  %v461_v27 = vadd.f32 %v858_v26, %v460_v24  ;;  %v430_v28 = vpop.f32.mrb[13].mxu0  ;;  %v462_v29 = vpop.f32.mrb[13].mxu1 }
 0x117   : > { %v431_v30 = vpop.f32.mrb[14].mxu0  ;;  %v463_v31 = vpop.f32.mrb[14].mxu1 }
 0x118   : > { %v473_v32 = vmax.f32 %v429_v25, 0.0  ;;  %v481_v33 = vmax.f32 %v461_v27, 0.0  ;;  %v432_v34 = vadd.f32 %v858_v26, %v431_v30  ;;  %v464_v35 = vadd.f32 %v858_v26, %v463_v31  ;;  %v433_v36 = vpop.f32.mrb[15].mxu0  ;;  %v465_v37 = vpop.f32.mrb[15].mxu1 }
 0x11a   : > { %v689_v38 = vpack.c.bf16 %v473_v32, %v473_v32  ;;  %v697_v39 = vpack.c.bf16 %v481_v33, %v481_v33  ;;  %v474_v40 = vmax.f32 %v432_v34, 0.0  ;;  %v482_v41 = vmax.f32 %v464_v35, 0.0 }
 0x11c   : > { %554 = vst.msk [vmem:[%s868_s16 + $0x18] sm:$0xf] %vm547_vm1, %v689_v38  ;;  %562 = vst.msk [vmem:[%s868_s16 + $0x38] sm:$0xf] %vm547_vm1, %v697_v39  ;;  %v690_v42 = vpack.c.bf16 %v474_v40, %v474_v40  ;;  %v698_v43 = vpack.c.bf16 %v482_v41, %v482_v41 }
 0x11e   : > { %555 = vst.msk [vmem:[%s868_s16 + $0x1c] sm:$0xf] %vm547_vm1, %v690_v42  ;;  %563 = vst.msk [vmem:[%s868_s16 + $0x3c] sm:$0xf] %vm547_vm1, %v698_v43 }
 0x11f PF: > { %s13_s12 = sadd.s32 1, %s765_s12  }
 0x120   : > { %p10_p4 = scmp.ge.s32.totalorder %s13_s12, 4  }
 0x122   :  { %12 = sbr.rel (!%p10_p4) target bundleno = 1 (0x1), region = 62 }

// kernel: thermal_net_resnet_forward.6
= control target key start
LH: loop header
LB: loop body
LE: loop exit
PB: predicated region body
PF: predicated region fallthrough
CT: control target
= control target key end

     0   :  { %s640_s12 = smov 0   ;;  %s705_s0 = inlined_call_operand.vmem [shape: bf16[256,16], index: 0, kind: input, shape index: {}]   ;;  %s706_s1 = inlined_call_operand.vmem [shape: bf16[16,32], index: 1, kind: input, shape index: {}]   ;;  %s707_s2 = inlined_call_operand.vmem [shape: f32[1,32], index: 2, kind: input, shape index: {}]   ;;  %s708_s3 = inlined_call_operand.vmem [shape: bf16[256,32], index: 3, kind: output, shape index: {}]  }
   0x1 LB: > { %s505_s13 = sadd.s32 4294967295, %s618_s12   ;;  %p509_p0 = scmp.ge.s32.totalorder %s618_s12, 1  ;;  %s618_s12 = sphi %s640_s12, %s13_s12  }
   0x2   : > { %p138_p1 = scmp.lt.s32.totalorder %s618_s12, 3 }
   0x4   : > { %p139_p2 = pnand %p509_p0, %p138_p1 }
   0x5   : > { %v603_v0 = vld [vmem:[%s706_s1] sm:$0xff] (!%p139_p2)   ;;  %s510_s16 = sshll.u32 (!%p139_p2), %s505_s13, 4  ;;  %vm246_vm0 = vcmask (!%p139_p2), 130048   ;;  %vm432_vm1 = vcmask (!%p139_p2), 257024  }
   0x6   : > { %142 = sbr.rel (%p139_p2) target bundleno = 247 (0xf7), region = 32  ;;  %p163_p3 = scmp.lt.s32.totalorder (!%p139_p2), %s510_s16, 31  ;;  %575 = vmatprep.subr.bf16.mxu0 (!%p139_p2), %v603_v0  ;;  %593 = vmatprep.subr.bf16.mxu1 (!%p139_p2), %v603_v0  ;;  %v514_v9 = vld [vmem:[%s707_s2] ss:$0 sm:$0xff] (!%p139_p2) }
   0x7   : > { %576 = vmatpush3.bf16.msra.mxu0 (!%p139_p2), %v603_v0  ;;  %594 = vmatpush3.bf16.msra.mxu1 (!%p139_p2), %v603_v0 }
   0xd   : > { %s710_s16 = smov (!%p163_p3, %s510_s16), 31 }
   0xe   : > { %s511_s17 = sshll.u32 %s710_s16, 2 }
   0xf   : > { %s166_s20 = scalar_lea.vmem %s705_s0, %s511_s17  ;;  %s668_s25 = scalar_lea.vmem %s708_s3, %s511_s17 }
  0x10   : > { %v604_v1 = vld [vmem:[%s166_s20] sm:$0xff]   ;;  %v606_v3 = vld [vmem:[%s166_s20 + $0x8] sm:$0xff]   ;;  %v608_v5 = vld [vmem:[%s166_s20 + $0x10] sm:$0xff]  }
  0x11   : > { %v605_v2 = vld [vmem:[%s166_s20 + $0x20] sm:$0xff]   ;;  %577 = vmatprep.mubr.msk.bf16.mxu0 %vm246_vm0, %v604_v1  ;;  %v607_v4 = vld [vmem:[%s166_s20 + $0x28] sm:$0xff]   ;;  %v609_v6 = vld [vmem:[%s166_s20 + $0x30] sm:$0xff]  }
  0x12   : > { %585 = vmatprep.mubr.msk.bf16.mxu1 %vm246_vm0, %v605_v2  ;;  %578 = vmatmul.mubr.msk.bf16.vlgmr.msra.gmra.mrb[0].mxu0 %vm246_vm0, %v606_v3  ;;  %v610_v7 = vld [vmem:[%s166_s20 + $0x18] sm:$0xff]  }
  0x13   : > { %586 = vmatmul.mubr.msk.bf16.vlgmr.msra.gmra.mrb[0].mxu1 %vm246_vm0, %v607_v4  ;;  %581 = vmatprep.mubr.msk.bf16.mxu0 %vm246_vm0, %v608_v5  ;;  %v611_v8 = vld [vmem:[%s166_s20 + $0x38] sm:$0xff]  }
  0x14   : > { %589 = vmatprep.mubr.msk.bf16.mxu1 %vm246_vm0, %v609_v6 }
  0x1a   : > { %582 = vmatmul.mubr.msk.bf16.gmra.mrb[4].mxu0 %vm246_vm0, %v610_v7 }
  0x1b   : > { %590 = vmatmul.mubr.msk.bf16.gmra.mrb[4].mxu1 %vm246_vm0, %v611_v8 }
  0xe5   : > { %v579_v10 = vpop.f32.mrb[0].mxu0 }
  0xe6   : > { %v314_v11 = vadd.f32 %v579_v10, %v514_v9  ;;  %v587_v12 = vpop.f32.mrb[0].mxu1  ;;  %v305_v13 = vpop.f32.mrb[1].mxu0 }
  0xe7   : > { %v346_v14 = vadd.f32 %v587_v12, %v514_v9  ;;  %v306_v15 = vadd.f32 %v514_v9, %v305_v13  ;;  %v337_v16 = vpop.f32.mrb[1].mxu1  ;;  %v580_v17 = vpop.f32.mrb[2].mxu0 }
  0xe8   : > { %v552_v18 = vpack.c.bf16 %v314_v11, %v314_v11  ;;  %v338_v19 = vadd.f32 %v514_v9, %v337_v16  ;;  %v317_v20 = vadd.f32 %v580_v17, %v514_v9  ;;  %v588_v21 = vpop.f32.mrb[2].mxu1  ;;  %v308_v22 = vpop.f32.mrb[3].mxu0 }
  0xe9   : > { %v560_v23 = vpack.c.bf16 %v346_v14, %v346_v14  ;;  %v550_v24 = vpack.c.bf16 %v306_v15, %v306_v15  ;;  %v349_v25 = vadd.f32 %v588_v21, %v514_v9  ;;  %v309_v26 = vadd.f32 %v514_v9, %v308_v22  ;;  %v340_v27 = vpop.f32.mrb[3].mxu1 }
  0xea   : > { %435 = vst.msk [vmem:[%s668_s25 + $0x8] sm:$0xf] %vm432_vm1, %v552_v18  ;;  %v558_v28 = vpack.c.bf16 %v338_v19, %v338_v19  ;;  %v553_v29 = vpack.c.bf16 %v317_v20, %v317_v20  ;;  %v341_v30 = vadd.f32 %v514_v9, %v340_v27 }
  0xeb   : > { %443 = vst.msk [vmem:[%s668_s25 + $0x28] sm:$0xf] %vm432_vm1, %v560_v23  ;;  %433 = vst.msk [vmem:[%s668_s25] sm:$0xf] %vm432_vm1, %v550_v24  ;;  %v561_v31 = vpack.c.bf16 %v349_v25, %v349_v25  ;;  %v551_v32 = vpack.c.bf16 %v309_v26, %v309_v26 }
  0xec   : > { %441 = vst.msk [vmem:[%s668_s25 + $0x20] sm:$0xf] %vm432_vm1, %v558_v28  ;;  %436 = vst.msk [vmem:[%s668_s25 + $0xc] sm:$0xf] %vm432_vm1, %v553_v29  ;;  %v559_v33 = vpack.c.bf16 %v341_v30, %v341_v30 }
  0xed   : > { %444 = vst.msk [vmem:[%s668_s25 + $0x2c] sm:$0xf] %vm432_vm1, %v561_v31  ;;  %434 = vst.msk [vmem:[%s668_s25 + $0x4] sm:$0xf] %vm432_vm1, %v551_v32  ;;  %v583_v34 = vpop.f32.mrb[4].mxu0 }
  0xee   : > { %442 = vst.msk [vmem:[%s668_s25 + $0x24] sm:$0xf] %vm432_vm1, %v559_v33  ;;  %v330_v35 = vadd.f32 %v583_v34, %v514_v9  ;;  %v591_v36 = vpop.f32.mrb[4].mxu1  ;;  %v321_v37 = vpop.f32.mrb[5].mxu0 }
  0xef   : > { %v362_v38 = vadd.f32 %v591_v36, %v514_v9  ;;  %v322_v39 = vadd.f32 %v514_v9, %v321_v37  ;;  %v353_v40 = vpop.f32.mrb[5].mxu1  ;;  %v584_v41 = vpop.f32.mrb[6].mxu0 }
  0xf0   : > { %v556_v42 = vpack.c.bf16 %v330_v35, %v330_v35  ;;  %v354_v43 = vadd.f32 %v514_v9, %v353_v40  ;;  %v333_v44 = vadd.f32 %v584_v41, %v514_v9  ;;  %v592_v45 = vpop.f32.mrb[6].mxu1  ;;  %v324_v46 = vpop.f32.mrb[7].mxu0 }
  0xf1   : > { %v564_v47 = vpack.c.bf16 %v362_v38, %v362_v38  ;;  %v554_v48 = vpack.c.bf16 %v322_v39, %v322_v39  ;;  %v365_v49 = vadd.f32 %v592_v45, %v514_v9  ;;  %v325_v50 = vadd.f32 %v514_v9, %v324_v46  ;;  %v356_v51 = vpop.f32.mrb[7].mxu1 }
  0xf2   : > { %439 = vst.msk [vmem:[%s668_s25 + $0x18] sm:$0xf] %vm432_vm1, %v556_v42  ;;  %v562_v52 = vpack.c.bf16 %v354_v43, %v354_v43  ;;  %v557_v53 = vpack.c.bf16 %v333_v44, %v333_v44  ;;  %v357_v54 = vadd.f32 %v514_v9, %v356_v51 }
  0xf3   : > { %447 = vst.msk [vmem:[%s668_s25 + $0x38] sm:$0xf] %vm432_vm1, %v564_v47  ;;  %437 = vst.msk [vmem:[%s668_s25 + $0x10] sm:$0xf] %vm432_vm1, %v554_v48  ;;  %v565_v55 = vpack.c.bf16 %v365_v49, %v365_v49  ;;  %v555_v56 = vpack.c.bf16 %v325_v50, %v325_v50 }
  0xf4   : > { %445 = vst.msk [vmem:[%s668_s25 + $0x30] sm:$0xf] %vm432_vm1, %v562_v52  ;;  %440 = vst.msk [vmem:[%s668_s25 + $0x1c] sm:$0xf] %vm432_vm1, %v557_v53  ;;  %v563_v57 = vpack.c.bf16 %v357_v54, %v357_v54 }
  0xf5   : > { %448 = vst.msk [vmem:[%s668_s25 + $0x3c] sm:$0xf] %vm432_vm1, %v565_v55  ;;  %438 = vst.msk [vmem:[%s668_s25 + $0x14] sm:$0xf] %vm432_vm1, %v555_v56 }
  0xf6   : > { %446 = vst.msk [vmem:[%s668_s25 + $0x34] sm:$0xf] %vm432_vm1, %v563_v57 }
  0xf7 PF: > { %s13_s12 = sadd.s32 1, %s618_s12  }
  0xf8   : > { %p10_p4 = scmp.ge.s32.totalorder %s13_s12, 4  }
  0xfa   :  { %12 = sbr.rel (!%p10_p4) target bundleno = 1 (0x1), region = 62 }

// kernel: thermal_net_resnet_forward.8
= control target key start
LH: loop header
LB: loop body
LE: loop exit
PB: predicated region body
PF: predicated region fallthrough
CT: control target
= control target key end

     0   :  { %s1299_s15 = smov 0   ;;  %s1498_s0 = inlined_call_operand.vmem [shape: bf16[256,288], index: 0, kind: input, shape index: {}]   ;;  %s1499_s1 = inlined_call_operand.vmem [shape: bf16[288,32], index: 1, kind: input, shape index: {}]   ;;  %s1500_s2 = inlined_call_operand.vmem [shape: f32[1,32], index: 2, kind: input, shape index: {}]   ;;  %s1501_s3 = inlined_call_operand.vmem [shape: bf16[256,32], index: 3, kind: input, shape index: {}]   ;;  %s1502_s4 = inlined_call_operand.vmem [shape: bf16[256,32], index: 4, kind: output, shape index: {}]  }
   0x1 LB: > { %s962_s16 = sadd.s32 4294967295, %s1272_s15   ;;  %p966_p0 = scmp.ge.s32.totalorder %s1272_s15, 1  ;;  %s1272_s15 = sphi %s1299_s15, %s14_s15  }
   0x2   : > { %p175_p1 = scmp.lt.s32.totalorder %s1272_s15, 3 }
   0x4   : > { %p176_p2 = pnand %p966_p0, %p175_p1 }
   0x5   : > { %v1216_v0 = vld [vmem:[%s1499_s1 + $0x40] sm:$0xff] (!%p176_p2)   ;;  %s967_s19 = sshll.u32 (!%p176_p2), %s962_s16, 4  ;;  %v1218_v2 = vld [vmem:[%s1499_s1 + $0x48] sm:$0xff] (!%p176_p2)   ;;  %v1220_v4 = vld [vmem:[%s1499_s1 + $0x50] sm:$0xff] (!%p176_p2)   ;;  %vm530_vm0 = vcmask (!%p176_p2), 261120   ;;  %vm877_vm1 = vcmask (!%p176_p2), 257024  }
   0x6   : > { %179 = sbr.rel (%p176_p2) target bundleno = 307 (0x133), region = 36  ;;  %v1217_v1 = vld [vmem:[%s1499_s1] sm:$0xff] (!%p176_p2)   ;;  %1097 = vmatprep.subr.bf16.mxu0 (!%p176_p2), %v1216_v0  ;;  %1191 = vmatprep.subr.bf16.mxu1 (!%p176_p2), %v1216_v0  ;;  %p208_p3 = scmp.lt.s32.totalorder (!%p176_p2), %s967_s19, 31  ;;  %v1219_v3 = vld [vmem:[%s1499_s1 + $0x8] sm:$0xff] (!%p176_p2)   ;;  %v1221_v5 = vld [vmem:[%s1499_s1 + $0x10] sm:$0xff] (!%p176_p2)  }
   0x7   : > { %1098 = vmatpush3.bf16.msra.mxu0 (!%p176_p2), %v1217_v1  ;;  %1199 = vmatpush3.bf16.msra.mxu1 (!%p176_p2), %v1217_v1  ;;  %v1222_v6 = vld [vmem:[%s1499_s1 + $0x58] sm:$0xff] (!%p176_p2)   ;;  %v1224_v8 = vld [vmem:[%s1499_s1 + $0x60] sm:$0xff] (!%p176_p2)   ;;  %v1226_v10 = vld [vmem:[%s1499_s1 + $0x68] sm:$0xff] (!%p176_p2)  }
   0x8   : > { %1099 = vmatprep.subr.bf16.mxu0 (!%p176_p2), %v1218_v2  ;;  %1192 = vmatprep.subr.bf16.mxu1 (!%p176_p2), %v1218_v2  ;;  %v1223_v7 = vld [vmem:[%s1499_s1 + $0x18] sm:$0xff] (!%p176_p2)   ;;  %v1225_v9 = vld [vmem:[%s1499_s1 + $0x20] sm:$0xff] (!%p176_p2)   ;;  %v1227_v13 = vld [vmem:[%s1499_s1 + $0x28] sm:$0xff] (!%p176_p2)  }
   0x9   : > { %v1228_v14 = vld [vmem:[%s1499_s1 + $0x70] sm:$0xff] (!%p176_p2)   ;;  %v1230_v16 = vld [vmem:[%s1499_s1 + $0x78] sm:$0xff] (!%p176_p2)   ;;  %v1238_v19 = vld [vmem:[%s1499_s1 + $0x80] sm:$0xff] (!%p176_p2)  }
   0xa   : > { %v1229_v15 = vld [vmem:[%s1499_s1 + $0x30] sm:$0xff] (!%p176_p2)   ;;  %v1231_v17 = vld [vmem:[%s1499_s1 + $0x38] sm:$0xff] (!%p176_p2)   ;;  %v1245_v23 = vld [vmem:[%s1499_s1 + $0x88] sm:$0xff] (!%p176_p2)  }
   0xb   : > { %1100 = vmatpush3.bf16.msra.mxu0 (!%p176_p2), %v1219_v3  ;;  %1200 = vmatpush3.bf16.msra.mxu1 (!%p176_p2), %v1219_v3  ;;  %v1421_v3 = vld [vmem:[%s1500_s2] ss:$0 sm:$0xff] (!%p176_p2) }
   0xc   : > { %1101 = vmatprep.subr.bf16.mxu0 (!%p176_p2), %v1220_v4  ;;  %1193 = vmatprep.subr.bf16.mxu1 (!%p176_p2), %v1220_v4 }
   0xd   : > { %s1504_s19 = smov (!%p208_p3, %s967_s19), 31 }
   0xe   : > { %s1207_s6 = smul.u32 12, %s1504_s19  ;;  %s970_s8 = sshll.u32 %s1504_s19, 2 }
   0xf   : > { %1102 = vmatpush3.bf16.msra.mxu0 %v1221_v5  ;;  %1201 = vmatpush3.bf16.msra.mxu1 %v1221_v5  ;;  %s1411_s11 = scalar_lea.vmem %s1501_s3, %s970_s8  ;;  %s1434_s17 = scalar_lea.vmem %s1502_s4, %s970_s8 }
  0x10   : > { %1103 = vmatprep.subr.bf16.mxu0 %v1222_v6  ;;  %1194 = vmatprep.subr.bf16.mxu1 %v1222_v6  ;;  %s1340_s13 = scalar_lea.vmem %s1498_s0, %s1207_s6  ;;  %v1090_v2 = vld [vmem:[%s1411_s11 + $0x8] sm:$0xff]   ;;  %v1059_v4 = vld [vmem:[%s1411_s11] sm:$0xff]  }
  0x11   : > { %v1234_v11 = vld [vmem:[%s1340_s13 + $0x4] ss:$12 sps:$4 sm:$0xff]   ;;  %v1237_v12 = vld [vmem:[%s1340_s13 + $0x94] ss:$12 sps:$4 sm:$0xff]   ;;  %v1239_v21 = vld [vmem:[%s1340_s13 + $0x1c] ss:$12 sps:$4 sm:$0xff]   ;;  %v1064_v6 = vunpack.c.l.bf16 %v1090_v2 }
  0x12   : > { %587 = vmatprep.mubr.bf16.mxu0 %v1234_v11  ;;  %635 = vmatprep.mubr.bf16.mxu1 %v1237_v12  ;;  %v1232_v18 = vld [vmem:[%s1340_s13] ss:$12 sps:$4 sm:$0xff]   ;;  %v1235_v20 = vld [vmem:[%s1340_s13 + $0x90] ss:$12 sps:$4 sm:$0xff]   ;;  %v1243_v24 = vld [vmem:[%s1340_s13 + $0x18] ss:$12 sps:$4 sm:$0xff]  }
  0x13   : > { %1104 = vmatpush3.bf16.msra.mxu0 %v1223_v7  ;;  %1202 = vmatpush3.bf16.msra.mxu1 %v1223_v7  ;;  %v1241_v22 = vld [vmem:[%s1340_s13 + $0xac] ss:$12 sps:$4 sm:$0xff]   ;;  %v1244_v25 = vld [vmem:[%s1340_s13 + $0xa8] ss:$12 sps:$4 sm:$0xff]   ;;  %v1249_v28 = vld [vmem:[%s1340_s13 + $0x30] ss:$12 sps:$4 sm:$0xff]  }
  0x14   : > { %1105 = vmatprep.subr.bf16.mxu0 %v1224_v8  ;;  %1195 = vmatprep.subr.bf16.mxu1 %v1224_v8  ;;  %v1246_v26 = vld [vmem:[%s1340_s13 + $0x34] ss:$12 sps:$4 sm:$0xff]   ;;  %v1251_v30 = vld [vmem:[%s1340_s13 + $0x4c] ss:$12 sps:$4 sm:$0xff]   ;;  %v1255_v33 = vld [vmem:[%s1340_s13 + $0x50] ss:$12 sps:$4 sm:$0xff]  }
  0x15   : > { %v1248_v27 = vld [vmem:[%s1340_s13 + $0x8] ss:$12 sps:$4 sm:$0xff]   ;;  %v1250_v29 = vld [vmem:[%s1340_s13 + $0x20] ss:$12 sps:$4 sm:$0xff]   ;;  %v1253_v31 = vld [vmem:[%s1340_s13 + $0x38] ss:$12 sps:$4 sm:$0xff]  }
  0x16   : > { %v1254_v32 = vld [vmem:[%s1340_s13 + $0x48] ss:$12 sps:$4 sm:$0xff]   ;;  %v1256_v34 = vld [vmem:[%s1340_s13 + $0x64] ss:$12 sps:$4 sm:$0xff]   ;;  %v1259_v36 = vld [vmem:[%s1340_s13 + $0x60] ss:$12 sps:$4 sm:$0xff]  }
  0x17   : > { %1106 = vmatpush3.bf16.msra.mxu0 %v1225_v9  ;;  %1203 = vmatpush3.bf16.msra.mxu1 %v1225_v9  ;;  %v1258_v35 = vld [vmem:[%s1340_s13 + $0x68] ss:$12 sps:$4 sm:$0xff]   ;;  %v1260_v37 = vld [vmem:[%s1340_s13 + $0x80] ss:$12 sps:$4 sm:$0xff]   ;;  %v1263_v39 = vld [vmem:[%s1340_s13 + $0x98] ss:$12 sps:$4 sm:$0xff]  }
  0x18   : > { %1107 = vmatprep.subr.bf16.mxu0 %v1226_v10  ;;  %1196 = vmatprep.subr.bf16.mxu1 %v1226_v10  ;;  %v1261_v38 = vld [vmem:[%s1340_s13 + $0x7c] ss:$12 sps:$4 sm:$0xff]   ;;  %v1264_v40 = vld [vmem:[%s1340_s13 + $0x78] ss:$12 sps:$4 sm:$0xff]   ;;  %v1060_v10 = vunpack.c.l.bf16 %v1059_v4 }
  0x19   : > { %v1265_v41 = vld [vmem:[%s1340_s13 + $0xb0] ss:$12 sps:$4 sm:$0xff]  }
  0x1b   : > { %1108 = vmatpush3.bf16.msra.mxu0 %v1227_v13  ;;  %1204 = vmatpush3.bf16.msra.mxu1 %v1227_v13 }
  0x1c   : > { %1109 = vmatprep.subr.bf16.mxu0 %v1228_v14  ;;  %1197 = vmatprep.subr.bf16.mxu1 %v1228_v14 }
  0x1f   : > { %1110 = vmatpush3.bf16.msra.mxu0 %v1229_v15  ;;  %1205 = vmatpush3.bf16.msra.mxu1 %v1229_v15  ;;  %v1065_v15 = vunpack.c.h.bf16 %v1090_v2 }
  0x20   : > { %1111 = vmatprep.subr.bf16.mxu0 %v1230_v16  ;;  %1198 = vmatprep.subr.bf16.mxu1 %v1230_v16 }
  0x23   : > { %1112 = vmatpush3.bf16.msra.mxu0 %v1231_v17  ;;  %1206 = vmatpush3.bf16.msra.mxu1 %v1231_v17 }
  0x24   : > { %1171 = vmatprep.subr.bf16.mxu1 %v1238_v19 }
  0x26   : > { %588 = vmatmul.mubr.bf16.vlgmr.msra.gmra.mrb[0].mxu0 %v1232_v18  ;;  %636 = vmatmul.mubr.bf16.vlgmr.msra.gmra.mrb[0].mxu1 %v1235_v20 }
  0x27   : > { %1172 = vmatpush3.bf16.msra.mxu1 %v1238_v19  ;;  %595 = vmatprep.mubr.bf16.mxu0 %v1239_v21  ;;  %v1061_v21 = vunpack.c.h.bf16 %v1059_v4 }
  0x28   : > { %643 = vmatprep.mubr.bf16.mxu1 %v1241_v22  ;;  %1173 = vmatprep.subr.bf16.mxu1 %v1245_v23 }
  0x2b   : > { %1174 = vmatpush3.bf16.msra.mxu1 %v1245_v23 }
  0x2e   : > { %596 = vmatmul.mubr.bf16.gmra.mrb[4].mxu0 %v1243_v24  ;;  %644 = vmatmul.mubr.bf16.gmra.mrb[4].mxu1 %v1244_v25 }
  0x2f   : > { %603 = vmatprep.mubr.bf16.mxu0 %v1246_v26  ;;  %1175 = vmatprep.mubr.msk.bf16.mxu1 %vm530_vm0, %v1248_v27 }
  0x36   : > { %604 = vmatmul.mubr.bf16.gmra.mrb[8].mxu0 %v1249_v28  ;;  %1176 = vmatmul.mubr.msk.bf16.vlgmr.msra.gmra.mrb[8].mxu1 %vm530_vm0, %v1250_v29 }
  0x37   : > { %611 = vmatprep.mubr.bf16.mxu0 %v1251_v30  ;;  %1179 = vmatprep.mubr.msk.bf16.mxu1 %vm530_vm0, %v1253_v31  ;;  %v1091_v31 = vld [vmem:[%s1411_s11 + $0x10] sm:$0xff]  }
  0x3e   : > { %612 = vmatmul.mubr.bf16.gmra.mrb[12].mxu0 %v1254_v32  ;;  %1180 = vmatmul.mubr.msk.bf16.gmra.mrb[12].mxu1 %vm530_vm0, %v1255_v33 }
  0x3f   : > { %619 = vmatprep.mubr.bf16.mxu0 %v1256_v34  ;;  %1183 = vmatprep.mubr.msk.bf16.mxu1 %vm530_vm0, %v1258_v35 }
  0x46   : > { %620 = vmatmul.mubr.bf16.gmra.mrb[16].mxu0 %v1259_v36  ;;  %1184 = vmatmul.mubr.msk.bf16.gmra.mrb[16].mxu1 %vm530_vm0, %v1260_v37 }
  0x47   : > { %627 = vmatprep.mubr.bf16.mxu0 %v1261_v38  ;;  %1187 = vmatprep.mubr.msk.bf16.mxu1 %vm530_vm0, %v1263_v39 }
  0x4e   : > { %628 = vmatmul.mubr.bf16.gmra.mrb[20].mxu0 %v1264_v40  ;;  %1188 = vmatmul.mubr.msk.bf16.gmra.mrb[20].mxu1 %vm530_vm0, %v1265_v41  ;;  %v1092_v40 = vld [vmem:[%s1411_s11 + $0x18] sm:$0xff]  }
  0xf9   : > { %v1113_v42 = vpop.f32.mrb[0].mxu0  ;;  %v1149_v43 = vpop.f32.mrb[0].mxu1 }
  0xfa   : > { %v1114_v44 = vpop.f32.mrb[1].mxu0  ;;  %v1150_v45 = vpop.f32.mrb[1].mxu1 }
  0xfb   : > { %v1115_v46 = vadd.f32 %v1114_v44, %v1113_v42  ;;  %v1116_v47 = vpop.f32.mrb[2].mxu0  ;;  %v1401_v48 = vadd.f32 %v1150_v45, %v1149_v43  ;;  %v1152_v49 = vpop.f32.mrb[2].mxu1  ;;  %v1068_v42 = vunpack.c.l.bf16 %v1091_v31 }
  0xfc   : > { %v1117_v50 = vpop.f32.mrb[3].mxu0  ;;  %v1153_v51 = vpop.f32.mrb[3].mxu1 }
  0xfd   : > { %v1118_v52 = vadd.f32 %v1117_v50, %v1116_v47  ;;  %v1403_v53 = vadd.f32 %v1153_v51, %v1152_v49  ;;  %v590_v9 = vadd.f32 %v1115_v46, %v1421_v3  ;;  %v1069_v46 = vunpack.c.h.bf16 %v1091_v31 }
  0xff   : > { %v593_v20 = vadd.f32 %v1118_v52, %v1421_v3 }
 0x101   : > { %v1119_v54 = vpop.f32.mrb[4].mxu0  ;;  %v1155_v55 = vpop.f32.mrb[4].mxu1 }
 0x102   : > { %v1120_v56 = vpop.f32.mrb[5].mxu0  ;;  %v1156_v57 = vpop.f32.mrb[5].mxu1 }
 0x103   : > { %v1121_v58 = vadd.f32 %v1120_v56, %v1119_v54  ;;  %v1122_v59 = vpop.f32.mrb[6].mxu0  ;;  %v1413_v60 = vadd.f32 %v1156_v57, %v1155_v55  ;;  %v1158_v61 = vpop.f32.mrb[6].mxu1  ;;  %v1072_v55 = vunpack.c.l.bf16 %v1092_v40 }
 0x104   : > { %v1123_v62 = vpop.f32.mrb[7].mxu0  ;;  %v1159_v63 = vpop.f32.mrb[7].mxu1 }
 0x105   : > { %v1124_v0 = vadd.f32 %v1123_v62, %v1122_v59  ;;  %v1415_v1 = vadd.f32 %v1159_v63, %v1158_v61  ;;  %v598_v5 = vadd.f32 %v1121_v58, %v1421_v3  ;;  %v1073_v63 = vunpack.c.h.bf16 %v1092_v40  ;;  %v1094_v40 = vld [vmem:[%s1411_s11 + $0x28] sm:$0xff]  }
 0x107   : > { %v601_v14 = vadd.f32 %v1124_v0, %v1421_v3 }
 0x109   : > { %v1125_v7 = vpop.f32.mrb[8].mxu0  ;;  %v1177_v8 = vpop.f32.mrb[8].mxu1 }
 0x10a   : > { %v695_v11 = vadd.f32 %v1177_v8, %v598_v5  ;;  %v1126_v12 = vpop.f32.mrb[9].mxu0  ;;  %v686_v13 = vpop.f32.mrb[9].mxu1 }
 0x10b   : > { %v1127_v16 = vadd.f32 %v1126_v12, %v1125_v7  ;;  %v687_v17 = vadd.f32 %v686_v13, %v590_v9  ;;  %v1128_v18 = vpop.f32.mrb[10].mxu0  ;;  %v1178_v19 = vpop.f32.mrb[10].mxu1  ;;  %v1093_v12 = vld [vmem:[%s1411_s11 + $0x20] sm:$0xff]  }
 0x10c   : > { %v783_v22 = vadd.f32 %v1064_v6, %v695_v11  ;;  %v698_v23 = vadd.f32 %v1178_v19, %v601_v14  ;;  %v1129_v24 = vpop.f32.mrb[11].mxu0  ;;  %v689_v25 = vpop.f32.mrb[11].mxu1 }
 0x10d   : > { %v781_v26 = vadd.f32 %v1060_v10, %v687_v17  ;;  %v1130_v27 = vadd.f32 %v1129_v24, %v1128_v18  ;;  %v690_v28 = vadd.f32 %v689_v25, %v593_v20  ;;  %v606_v41 = vadd.f32 %v1127_v16, %v1421_v3 }
 0x10e   : > { %v799_v29 = vmax.f32 %v783_v22, 0.0  ;;  %v784_v30 = vadd.f32 %v1065_v15, %v698_v23 }
 0x10f   : > { %v797_v32 = vmax.f32 %v781_v26, 0.0  ;;  %v782_v33 = vadd.f32 %v1061_v21, %v690_v28  ;;  %v609_v54 = vadd.f32 %v1130_v27, %v1421_v3  ;;  %v1076_v21 = vunpack.c.l.bf16 %v1093_v12  ;;  %v1096_v28 = vld [vmem:[%s1411_s11 + $0x38] sm:$0xff]  }
 0x110   : > { %v1044_v34 = vpack.c.bf16 %v799_v29, %v799_v29  ;;  %v800_v35 = vmax.f32 %v784_v30, 0.0  ;;  %v1095_v29 = vld [vmem:[%s1411_s11 + $0x30] sm:$0xff]  }
 0x111   : > { %v1042_v36 = vpack.c.bf16 %v797_v32, %v797_v32  ;;  %v798_v37 = vmax.f32 %v782_v33, 0.0  ;;  %v1131_v38 = vpop.f32.mrb[12].mxu0  ;;  %v1181_v39 = vpop.f32.mrb[12].mxu1  ;;  %v1077_v33 = vunpack.c.h.bf16 %v1093_v12 }
 0x112   : > { %880 = vst.msk [vmem:[%s1434_s17 + $0x8] sm:$0xf] %vm877_vm1, %v1044_v34  ;;  %v1045_v43 = vpack.c.bf16 %v800_v35, %v800_v35  ;;  %v1132_v44 = vpop.f32.mrb[13].mxu0  ;;  %v702_v45 = vpop.f32.mrb[13].mxu1  ;;  %v646_v34 = vadd.f32 %v1413_v60, %v1421_v3  ;;  %v1088_v35 = vunpack.c.l.bf16 %v1096_v28  ;;  %v1085_v60 = vunpack.c.h.bf16 %v1095_v29 }
 0x113   : > { %878 = vst.msk [vmem:[%s1434_s17] sm:$0xf] %vm877_vm1, %v1042_v36  ;;  %v1043_v47 = vpack.c.bf16 %v798_v37, %v798_v37  ;;  %v1133_v49 = vadd.f32 %v1132_v44, %v1131_v38  ;;  %v703_v50 = vadd.f32 %v702_v45, %v606_v41  ;;  %v1134_v51 = vpop.f32.mrb[14].mxu0  ;;  %v1182_v52 = vpop.f32.mrb[14].mxu1  ;;  %v638_v41 = vadd.f32 %v1401_v48, %v1421_v3 }
 0x114   : > { %881 = vst.msk [vmem:[%s1434_s17 + $0xc] sm:$0xf] %vm877_vm1, %v1045_v43  ;;  %v1135_v56 = vpop.f32.mrb[15].mxu0  ;;  %v705_v57 = vpop.f32.mrb[15].mxu1 }
 0x115   : > { %879 = vst.msk [vmem:[%s1434_s17 + $0x4] sm:$0xf] %vm877_vm1, %v1043_v47  ;;  %v614_v58 = vadd.f32 %v1133_v49, %v1421_v3  ;;  %v785_v59 = vadd.f32 %v1068_v42, %v703_v50  ;;  %v1136_v61 = vadd.f32 %v1135_v56, %v1134_v51  ;;  %v706_v62 = vadd.f32 %v705_v57, %v609_v54 }
 0x116   : > { %v1084_v42 = vunpack.c.l.bf16 %v1095_v29  ;;  %v1089_v47 = vunpack.c.h.bf16 %v1096_v28  ;;  %v1080_v57 = vunpack.c.l.bf16 %v1094_v40 }
 0x117   : > { %v711_v0 = vadd.f32 %v1181_v39, %v614_v58  ;;  %v801_v2 = vmax.f32 %v785_v59, 0.0  ;;  %v617_v4 = vadd.f32 %v1136_v61, %v1421_v3  ;;  %v786_v5 = vadd.f32 %v1069_v46, %v706_v62 }
 0x118   : > { %v649_v46 = vadd.f32 %v1415_v1, %v1421_v3  ;;  %v641_v59 = vadd.f32 %v1403_v53, %v1421_v3 }
 0x119   : > { %v787_v6 = vadd.f32 %v1072_v55, %v711_v0  ;;  %v1046_v7 = vpack.c.bf16 %v801_v2, %v801_v2  ;;  %v714_v8 = vadd.f32 %v1182_v52, %v617_v4  ;;  %v802_v9 = vmax.f32 %v786_v5, 0.0  ;;  %v1137_v10 = vpop.f32.mrb[16].mxu0  ;;  %v1449_v11 = vpop.f32.mrb[16].mxu1 }
 0x11a   : > { %v1138_v13 = vpop.f32.mrb[17].mxu0  ;;  %v718_v14 = vpop.f32.mrb[17].mxu1 }
 0x11b   : > { %v803_v15 = vmax.f32 %v787_v6, 0.0  ;;  %882 = vst.msk [vmem:[%s1434_s17 + $0x10] sm:$0xf] %vm877_vm1, %v1046_v7  ;;  %v788_v16 = vadd.f32 %v1073_v63, %v714_v8  ;;  %v1047_v17 = vpack.c.bf16 %v802_v9, %v802_v9  ;;  %v1139_v18 = vadd.f32 %v1138_v13, %v1137_v10  ;;  %v1140_v19 = vpop.f32.mrb[18].mxu0  ;;  %v1454_v20 = vpop.f32.mrb[18].mxu1 }
 0x11c   : > { %v1141_v22 = vpop.f32.mrb[19].mxu0  ;;  %v721_v23 = vpop.f32.mrb[19].mxu1  ;;  %v1081_v9 = vunpack.c.h.bf16 %v1094_v40 }
 0x11d   : > { %v1048_v24 = vpack.c.bf16 %v803_v15, %v803_v15  ;;  %v804_v25 = vmax.f32 %v788_v16, 0.0  ;;  %883 = vst.msk [vmem:[%s1434_s17 + $0x14] sm:$0xf] %vm877_vm1, %v1047_v17  ;;  %v622_v26 = vadd.f32 %v1139_v18, %v1421_v3  ;;  %v1142_v27 = vadd.f32 %v1141_v22, %v1140_v19 }
 0x11f   : > { %884 = vst.msk [vmem:[%s1434_s17 + $0x18] sm:$0xf] %vm877_vm1, %v1048_v24  ;;  %v1049_v30 = vpack.c.bf16 %v804_v25, %v804_v25  ;;  %v719_v31 = vadd.f32 %v718_v14, %v622_v26  ;;  %v625_v32 = vadd.f32 %v1142_v27, %v1421_v3 }
 0x121   : > { %885 = vst.msk [vmem:[%s1434_s17 + $0x1c] sm:$0xf] %vm877_vm1, %v1049_v30  ;;  %v789_v36 = vadd.f32 %v1076_v21, %v719_v31  ;;  %v722_v37 = vadd.f32 %v721_v23, %v625_v32  ;;  %v1143_v38 = vpop.f32.mrb[20].mxu0  ;;  %v1189_v39 = vpop.f32.mrb[20].mxu1 }
 0x122   : > { %v743_v43 = vadd.f32 %v1189_v39, %v646_v34  ;;  %v1144_v44 = vpop.f32.mrb[21].mxu0  ;;  %v734_v45 = vpop.f32.mrb[21].mxu1 }
 0x123   : > { %v805_v49 = vmax.f32 %v789_v36, 0.0  ;;  %v790_v50 = vadd.f32 %v1077_v33, %v722_v37  ;;  %v1145_v51 = vadd.f32 %v1144_v44, %v1143_v38  ;;  %v735_v52 = vadd.f32 %v734_v45, %v638_v41  ;;  %v1146_v54 = vpop.f32.mrb[22].mxu0  ;;  %v1190_v55 = vpop.f32.mrb[22].mxu1 }
 0x124   : > { %v795_v56 = vadd.f32 %v1088_v35, %v743_v43  ;;  %v746_v58 = vadd.f32 %v1190_v55, %v649_v46  ;;  %v1147_v48 = vpop.f32.mrb[23].mxu0  ;;  %v737_v61 = vpop.f32.mrb[23].mxu1 }
 0x125   : > { %v1050_v62 = vpack.c.bf16 %v805_v49, %v805_v49  ;;  %v806_v63 = vmax.f32 %v790_v50, 0.0  ;;  %v630_v1 = vadd.f32 %v1145_v51, %v1421_v3  ;;  %v793_v0 = vadd.f32 %v1084_v42, %v735_v52 }
 0x126   : > { %v811_v2 = vmax.f32 %v795_v56, 0.0  ;;  %v796_v4 = vadd.f32 %v1089_v47, %v746_v58  ;;  %v1148_v5 = vadd.f32 %v1147_v48, %v1146_v54  ;;  %v738_v6 = vadd.f32 %v737_v61, %v641_v59 }
 0x127   : > { %886 = vst.msk [vmem:[%s1434_s17 + $0x20] sm:$0xf] %vm877_vm1, %v1050_v62  ;;  %v1051_v7 = vpack.c.bf16 %v806_v63, %v806_v63  ;;  %v727_v8 = vadd.f32 %v1449_v11, %v630_v1  ;;  %v809_v53 = vmax.f32 %v793_v0, 0.0 }
 0x128   : > { %v1056_v10 = vpack.c.bf16 %v811_v2, %v811_v2  ;;  %v812_v12 = vmax.f32 %v796_v4, 0.0  ;;  %v633_v13 = vadd.f32 %v1148_v5, %v1421_v3  ;;  %v794_v14 = vadd.f32 %v1085_v60, %v738_v6 }
 0x129   : > { %887 = vst.msk [vmem:[%s1434_s17 + $0x24] sm:$0xf] %vm877_vm1, %v1051_v7  ;;  %v791_v15 = vadd.f32 %v1080_v57, %v727_v8  ;;  %v1054_v16 = vpack.c.bf16 %v809_v53, %v809_v53 }
 0x12a   : > { %892 = vst.msk [vmem:[%s1434_s17 + $0x38] sm:$0xf] %vm877_vm1, %v1056_v10  ;;  %v1057_v17 = vpack.c.bf16 %v812_v12, %v812_v12  ;;  %v730_v11 = vadd.f32 %v1454_v20, %v633_v13  ;;  %v810_v18 = vmax.f32 %v794_v14, 0.0 }
 0x12b   : > { %v807_v19 = vmax.f32 %v791_v15, 0.0  ;;  %890 = vst.msk [vmem:[%s1434_s17 + $0x30] sm:$0xf] %vm877_vm1, %v1054_v16 }
 0x12c   : > { %893 = vst.msk [vmem:[%s1434_s17 + $0x3c] sm:$0xf] %vm877_vm1, %v1057_v17  ;;  %v792_v3 = vadd.f32 %v1081_v9, %v730_v11  ;;  %v1055_v21 = vpack.c.bf16 %v810_v18, %v810_v18 }
 0x12d   : > { %v1052_v22 = vpack.c.bf16 %v807_v19, %v807_v19 }
 0x12e   : > { %v808_v23 = vmax.f32 %v792_v3, 0.0  ;;  %891 = vst.msk [vmem:[%s1434_s17 + $0x34] sm:$0xf] %vm877_vm1, %v1055_v21 }
 0x12f   : > { %888 = vst.msk [vmem:[%s1434_s17 + $0x28] sm:$0xf] %vm877_vm1, %v1052_v22 }
 0x130   : > { %v1053_v24 = vpack.c.bf16 %v808_v23, %v808_v23 }
 0x132   : > { %889 = vst.msk [vmem:[%s1434_s17 + $0x2c] sm:$0xf] %vm877_vm1, %v1053_v24 }
 0x133 PF: > { %s14_s15 = sadd.s32 1, %s1272_s15  }
 0x134   : > { %p11_p4 = scmp.ge.s32.totalorder %s14_s15, 4  }
 0x136   :  { %13 = sbr.rel (!%p11_p4) target bundleno = 1 (0x1), region = 69 }

// kernel: thermal_net_resnet_forward.9
= control target key start
LH: loop header
LB: loop body
LE: loop exit
PB: predicated region body
PF: predicated region fallthrough
CT: control target
= control target key end

     0   :  { %s3521_s20 = smov 0   ;;  %s4158_s0 = inlined_call_operand.vmem [shape: bf16[2,128,32], index: 0, kind: input, shape index: {}]   ;;  %s4159_s1 = inlined_call_operand.vmem [shape: bf16[32,4], index: 1, kind: input, shape index: {}]   ;;  %s4160_s2 = inlined_call_operand.vmem [shape: f32[1,4], index: 2, kind: input, shape index: {}]   ;;  %s4161_s3 = inlined_call_operand.vmem [shape: bf16[32,4], index: 3, kind: input, shape index: {}]   ;;  %s4162_s4 = inlined_call_operand.vmem [shape: f32[1,4], index: 4, kind: input, shape index: {}]   ;;  %s4163_s5 = inlined_call_operand.vmem [shape: bf16[128,16], index: 5, kind: input, shape index: {}]   ;;  %s4164_s6 = inlined_call_operand.vmem [shape: bf16[128,16], index: 6, kind: input, shape index: {}]   ;;  %s4165_s7 = inlined_call_operand.vmem [shape: f32[1,16], index: 7, kind: input, shape index: {}]   ;;  %s4166_s8 = inlined_call_operand.vmem [shape: bf16[32,4], index: 8, kind: input, shape index: {}]   ;;  %s4167_s9 = inlined_call_operand.vmem [shape: f32[1,4], index: 9, kind: input, shape index: {}]   ;;  %s4168_s10 = inlined_call_operand.vmem [shape: f32[1,8], index: 10, kind: input, shape index: {}]   ;;  %s4169_s11 = inlined_call_operand.vmem [shape: bf16[16,8], index: 11, kind: input, shape index: {}]   ;;  %s4170_s12 = inlined_call_operand.vmem [shape: f32[1,8], index: 12, kind: input, shape index: {}]   ;;  %s4171_s13 = inlined_call_operand.vmem [shape: f32[1,8], index: 13, kind: input, shape index: {}]   ;;  %s4172_s14 = inlined_call_operand.<no memory space> [shape: f32[1,1], index: 14, kind: input, shape index: {}]   ;;  %s4173_s15 = inlined_call_operand.vmem [shape: bf16[32,64], index: 15, kind: input, shape index: {}]   ;;  %s4174_s16 = inlined_call_operand.vmem [shape: f32[1,64], index: 16, kind: input, shape index: {}]   ;;  %s4175_s17 = inlined_call_operand.vmem [shape: bf16[6,128], index: 17, kind: input, shape index: {}]   ;;  %s4176_s18 = inlined_call_operand.vmem [shape: bf16[2,128,64], index: 18, kind: output, shape index: {0}]   ;;  %s4177_s19 = inlined_call_operand.vmem [shape: f32[2,6,64], index: 19, kind: output, shape index: {1}]  }
   0x1   :  { %4180 = sst [smem:[#allocation3_spill]] %s4158_s0  ;;  %v25_v0 = vstv %s4172_s14 }
   0x2   :  { %4181 = sst [smem:[#allocation4_spill]] %s4159_s1  ;;  %26 = vst [vmem:[#allocation2] sm:$0x1] %v25_v0 }
   0x3   :  { %4182 = sst [smem:[#allocation5_spill]] %s4160_s2 }
   0x4   :  { %4183 = sst [smem:[#allocation6_spill]] %s4161_s3 }
   0x5 LB: > { %s2705_s21 = sadd.s32 4294967295, %s3413_s20   ;;  %p2709_p0 = scmp.ge.s32.totalorder %s3413_s20, 1  ;;  %s3413_s20 = sphi %s3521_s20, %s32_s20  }
   0x6   : > { %p542_p1 = scmp.lt.s32.totalorder %s3413_s20, 3 }
   0x8   : > { %p543_p2 = pnand %p2709_p0, %p542_p1 }
   0x9   : > { %s4184_s2 = sld [smem:[#allocation4_spill]] (!%p543_p2)  ;;  %p602_p3 = scmp.lt.s32.totalorder (!%p543_p2), %s2705_s21, 1  ;;  %vm696_vm0 = vcmask (!%p543_p2), 261120   ;;  %v3615_v15 = vld [vmem:[%s4162_s4] ss:$0 sm:$0xff] (!%p543_p2)  ;;  %vm986_vm1 = vcmask (!%p543_p2), 31744  }
   0xa   : > { %546 = sbr.rel (%p543_p2) target bundleno = 1792 (0x700), region = 92  ;;  %s4185_s24 = sld [smem:[#allocation6_spill]] (!%p543_p2)  ;;  %vm1846_vm2 = vcmask (!%p543_p2), 130048   ;;  %vm2046_vm3 = vcmask (!%p543_p2), 64512   ;;  %vm3417_vm4 = vmmov (!%p543_p2), 0   ;;  %vm2558_vm5 = vcmask (!%p543_p2), 519168  }
   0xb   : > { %s4186_s30 = sld [smem:[#allocation3_spill]] (!%p543_p2)  ;;  %s4187_s23 = sld [smem:[#allocation5_spill]] (!%p543_p2)  ;;  %vm2617_vm6 = vcmask (!%p543_p2), 521216  }
   0xf   : > { %v3294_v1 = vld [vmem:[%s4184_s2] sm:$0xff] (!%p543_p2)   ;;  %v3296_v3 = vld [vmem:[%s4184_s2 + $0x8] sm:$0xff] (!%p543_p2)  }
  0x10   : > { %v3295_v2 = vld [vmem:[%s4185_s24] sm:$0xff] (!%p543_p2)   ;;  %2987 = vmatprep.subr.bf16.mxu0 (!%p543_p2), %v3294_v1  ;;  %v3297_v4 = vld [vmem:[%s4185_s24 + $0x8] sm:$0xff] (!%p543_p2)  }
  0x11   : > { %s4189_s21 = smov (!%p602_p3, %s2705_s21), 1  ;;  %3007 = vmatprep.subr.bf16.mxu1 %v3295_v2  ;;  %2988 = vmatpush3.bf16.msra.mxu0 %v3294_v1  ;;  %v3610_v13 = vld [vmem:[%s4187_s23] ss:$0 sm:$0xff] }
  0x12   : > { %3008 = vmatpush3.bf16.msra.mxu1 %v3295_v2  ;;  %2989 = vmatprep.subr.bf16.mxu0 %v3296_v3  ;;  %s2847_s28 = sshll.u32 %s4189_s21, 6  ;;  %s2714_s23 = sshll.u32 %s4189_s21, 3 }
  0x13   : > { %3009 = vmatprep.subr.bf16.mxu1 %v3297_v4  ;;  %s3549_s1 = scalar_lea.vmem %s4186_s30, %s2847_s28  ;;  %s4094_s22 = scalar_lea.vmem %s4176_s18, %s2847_s28 }
  0x14   : > { %v3552_v5 = vld [vmem:[%s3549_s1] sm:$0xff]   ;;  %v3555_v6 = vld [vmem:[%s3549_s1 + $0x8] sm:$0xff]   ;;  %v3558_v7 = vld [vmem:[%s3549_s1 + $0x10] sm:$0xff]   ;;  %s615_s26 = scalar_lea.vmem %s4177_s19, %s2714_s23 }
  0x15   : > { %2990 = vmatpush3.bf16.msra.mxu0 %v3296_v3  ;;  %2991 = vmatprep.mubr.msk.bf16.mxu0 %vm696_vm0, %v3552_v5  ;;  %v3565_v8 = vld [vmem:[%s3549_s1 + $0x18] sm:$0xff]   ;;  %v3570_v9 = vld [vmem:[%s3549_s1 + $0x20] sm:$0xff]   ;;  %v3579_v10 = vld [vmem:[%s3549_s1 + $0x28] sm:$0xff]  }
  0x16   : > { %3010 = vmatpush3.bf16.msra.mxu1 %v3297_v4  ;;  %3011 = vmatprep.mubr.msk.bf16.mxu1 %vm696_vm0, %v3552_v5  ;;  %v3584_v11 = vld [vmem:[%s3549_s1 + $0x30] sm:$0xff]   ;;  %v3599_v12 = vld [vmem:[%s3549_s1 + $0x38] sm:$0xff]  }
  0x18   : > { %2992 = vmatmul.mubr.msk.bf16.vlgmr.msra.gmra.mrb[0].mxu0 %vm696_vm0, %v3555_v6 }
  0x19   : > { %3012 = vmatmul.mubr.msk.bf16.vlgmr.msra.gmra.mrb[0].mxu1 %vm696_vm0, %v3555_v6  ;;  %2995 = vmatprep.mubr.msk.bf16.mxu0 %vm696_vm0, %v3558_v7 }
  0x1a   : > { %3015 = vmatprep.mubr.msk.bf16.mxu1 %vm696_vm0, %v3558_v7 }
  0x20   : > { %2996 = vmatmul.mubr.msk.bf16.gmra.mrb[4].mxu0 %vm696_vm0, %v3565_v8 }
  0x21   : > { %3016 = vmatmul.mubr.msk.bf16.gmra.mrb[4].mxu1 %vm696_vm0, %v3565_v8  ;;  %2999 = vmatprep.mubr.msk.bf16.mxu0 %vm696_vm0, %v3570_v9 }
  0x22   : > { %3019 = vmatprep.mubr.msk.bf16.mxu1 %vm696_vm0, %v3570_v9 }
  0x28   : > { %3000 = vmatmul.mubr.msk.bf16.gmra.mrb[8].mxu0 %vm696_vm0, %v3579_v10 }
  0x29   : > { %3020 = vmatmul.mubr.msk.bf16.gmra.mrb[8].mxu1 %vm696_vm0, %v3579_v10  ;;  %3003 = vmatprep.mubr.msk.bf16.mxu0 %vm696_vm0, %v3584_v11 }
  0x2a   : > { %3023 = vmatprep.mubr.msk.bf16.mxu1 %vm696_vm0, %v3584_v11 }
  0x30   : > { %3004 = vmatmul.mubr.msk.bf16.gmra.mrb[12].mxu0 %vm696_vm0, %v3599_v12 }
  0x31   : > { %3024 = vmatmul.mubr.msk.bf16.gmra.mrb[12].mxu1 %vm696_vm0, %v3599_v12 }
  0xeb   : > { %v2993_v14 = vpop.f32.mrb[0].mxu0 }
  0xec   : > { %v764_v16 = vadd.f32 %v2993_v14, %v3610_v13  ;;  %v3013_v17 = vpop.f32.mrb[0].mxu1  ;;  %v755_v18 = vpop.f32.mrb[1].mxu0 }
  0xed   : > { %v900_v19 = vadd.f32 %v3013_v17, %v3615_v15  ;;  %v756_v20 = vadd.f32 %v3610_v13, %v755_v18  ;;  %v891_v21 = vpop.f32.mrb[1].mxu1  ;;  %v2994_v22 = vpop.f32.mrb[2].mxu0 }
  0xee   : > { %v892_v23 = vadd.f32 %v3615_v15, %v891_v21  ;;  %v767_v24 = vadd.f32 %v2994_v22, %v3610_v13  ;;  %v3014_v25 = vpop.f32.mrb[2].mxu1  ;;  %v758_v26 = vpop.f32.mrb[3].mxu0  ;;  %v820_v31 = vmax.f32 %v764_v16, 0.0 }
  0xef   : > { %v956_v27 = vmax.f32 %v900_v19, 0.0  ;;  %v903_v28 = vadd.f32 %v3014_v25, %v3615_v15  ;;  %v759_v29 = vadd.f32 %v3610_v13, %v758_v26  ;;  %v894_v30 = vpop.f32.mrb[3].mxu1  ;;  %v818_v35 = vmax.f32 %v756_v20, 0.0 }
  0xf0   : > { %v954_v32 = vmax.f32 %v892_v23, 0.0  ;;  %v821_v33 = vmax.f32 %v767_v24, 0.0  ;;  %v895_v34 = vadd.f32 %v3615_v15, %v894_v30 }
  0xf1   : > { %v957_v36 = vmax.f32 %v903_v28, 0.0  ;;  %v819_v37 = vmax.f32 %v759_v29, 0.0 }
  0xf2   : > { %v3625_v38 = vpack.c.bf16 %v821_v33, %v820_v31  ;;  %v955_v39 = vmax.f32 %v895_v34, 0.0 }
  0xf3   : > { %v3627_v40 = vpack.c.bf16 %v957_v36, %v956_v27  ;;  %v970_v41 = vpack.c.bf16 %v819_v37, %v818_v35  ;;  %v2997_v42 = vpop.f32.mrb[4].mxu0 }
  0xf4   : > { %v978_v43 = vpack.c.bf16 %v955_v39, %v954_v32  ;;  %v780_v44 = vadd.f32 %v2997_v42, %v3610_v13  ;;  %v771_v45 = vpop.f32.mrb[5].mxu0  ;;  %v3017_v46 = vpop.f32.mrb[4].mxu1  ;;  %v991_v24 = vsel %vm986_vm1, %v3625_v38, 0 }
  0xf5   : > { %3043 = vmatprep.mubr.msk.bf16.mxu0 %vm986_vm1, %v970_v41  ;;  %3273 = vmatprep.subr.msk.bf16.mxu1 %vm986_vm1, %v970_v41  ;;  %v988_v47 = vsel %vm986_vm1, %v970_v41, 0  ;;  %v772_v48 = vadd.f32 %v3610_v13, %v771_v45  ;;  %v2998_v49 = vpop.f32.mrb[6].mxu0  ;;  %v916_v50 = vadd.f32 %v3017_v46, %v3615_v15  ;;  %v907_v51 = vpop.f32.mrb[5].mxu1  ;;  %v1015_v20 = vsel %vm986_vm1, %v3627_v40, 0 }
  0xf6   : > { %3265 = vmatprep.subr.msk.bf16.mxu0 %vm986_vm1, %v978_v43  ;;  %v1012_v52 = vsel %vm986_vm1, %v978_v43, 0  ;;  %3060 = vmatpush3.bf16.xpose.msra.mxu1 %v988_v47  ;;  %v824_v53 = vmax.f32 %v780_v44, 0.0  ;;  %v783_v54 = vadd.f32 %v2998_v49, %v3610_v13  ;;  %v774_v55 = vpop.f32.mrb[7].mxu0  ;;  %v908_v56 = vadd.f32 %v3615_v15, %v907_v51  ;;  %v3018_v57 = vpop.f32.mrb[6].mxu1 }
  0xf7   : > { %3028 = vmatpush3.bf16.xpose.msra.mxu0 %v1012_v52  ;;  %3274 = vmatprep.subr.msk.bf16.mxu1 %vm986_vm1, %v3625_v38  ;;  %v822_v58 = vmax.f32 %v772_v48, 0.0  ;;  %v775_v59 = vadd.f32 %v3610_v13, %v774_v55  ;;  %v960_v60 = vmax.f32 %v916_v50, 0.0  ;;  %v919_v61 = vadd.f32 %v3018_v57, %v3615_v15  ;;  %v910_v62 = vpop.f32.mrb[7].mxu1 }
  0xf8   : > { %v825_v63 = vmax.f32 %v783_v54, 0.0  ;;  %v958_v0 = vmax.f32 %v908_v56, 0.0  ;;  %3266 = vmatprep.subr.msk.bf16.mxu0 %vm986_vm1, %v3627_v40  ;;  %v911_v1 = vadd.f32 %v3615_v15, %v910_v62  ;;  %3075 = vmatprep.mubr.msk.bf16.mxu1 %vm986_vm1, %v978_v43 }
  0xf9   : > { %v823_v2 = vmax.f32 %v775_v59, 0.0  ;;  %v961_v3 = vmax.f32 %v919_v61, 0.0 }
  0xfa   : > { %v3647_v4 = vpack.c.bf16 %v825_v63, %v824_v53  ;;  %v959_v14 = vmax.f32 %v911_v1, 0.0 }
  0xfb   : > { %v3649_v16 = vpack.c.bf16 %v823_v2, %v822_v58  ;;  %v3651_v17 = vpack.c.bf16 %v961_v3, %v960_v60  ;;  %v3001_v18 = vpop.f32.mrb[8].mxu0 }
  0xfc   : > { %v3653_v19 = vpack.c.bf16 %v959_v14, %v958_v0  ;;  %v796_v21 = vadd.f32 %v3001_v18, %v3610_v13  ;;  %v787_v22 = vpop.f32.mrb[9].mxu0  ;;  %v3021_v23 = vpop.f32.mrb[8].mxu1 }
  0xfd   : > { %v788_v25 = vadd.f32 %v3610_v13, %v787_v22  ;;  %v3002_v26 = vpop.f32.mrb[10].mxu0  ;;  %v932_v27 = vadd.f32 %v3021_v23, %v3615_v15  ;;  %v923_v28 = vpop.f32.mrb[9].mxu1  ;;  %v994_v56 = vsel %vm986_vm1, %v3649_v16, 0 }
  0xfe   : > { %3062 = vmatpush3.bf16.xpose.msra.mxu1 %v991_v24  ;;  %v828_v29 = vmax.f32 %v796_v21, 0.0  ;;  %v799_v30 = vadd.f32 %v3002_v26, %v3610_v13  ;;  %v790_v31 = vpop.f32.mrb[11].mxu0  ;;  %v924_v32 = vadd.f32 %v3615_v15, %v923_v28  ;;  %v3022_v33 = vpop.f32.mrb[10].mxu1  ;;  %v1018_v51 = vsel %vm986_vm1, %v3653_v19, 0 }
  0xff   : > { %3030 = vmatpush3.bf16.xpose.msra.mxu0 %v1015_v20  ;;  %3275 = vmatprep.subr.msk.bf16.mxu1 %vm986_vm1, %v3649_v16  ;;  %v826_v34 = vmax.f32 %v788_v25, 0.0  ;;  %v791_v35 = vadd.f32 %v3610_v13, %v790_v31  ;;  %v964_v36 = vmax.f32 %v932_v27, 0.0  ;;  %v935_v37 = vadd.f32 %v3022_v33, %v3615_v15  ;;  %v926_v39 = vpop.f32.mrb[11].mxu1 }
 0x100   : > { %3267 = vmatprep.subr.msk.bf16.mxu0 %vm986_vm1, %v3653_v19  ;;  %v829_v41 = vmax.f32 %v799_v30, 0.0  ;;  %v962_v42 = vmax.f32 %v924_v32, 0.0  ;;  %v927_v43 = vadd.f32 %v3615_v15, %v926_v39  ;;  %v997_v31 = vsel %vm986_vm1, %v3647_v4, 0 }
 0x101   : > { %v827_v44 = vmax.f32 %v791_v35, 0.0  ;;  %v965_v45 = vmax.f32 %v935_v37, 0.0  ;;  %v3730_v37 = vld [vmem:[%s4163_s5] sm:$0xff]  }
 0x102   : > { %v3671_v46 = vpack.c.bf16 %v829_v41, %v828_v29  ;;  %v963_v47 = vmax.f32 %v927_v43, 0.0  ;;  %v3306_v41 = vld [vmem:[%s4164_s6] sm:$0xff]   ;;  %v3307_v43 = vld [vmem:[%s4164_s6 + $0x8] sm:$0xff]  }
 0x103   : > { %v3673_v48 = vpack.c.bf16 %v827_v44, %v826_v34  ;;  %v3675_v49 = vpack.c.bf16 %v965_v45, %v964_v36  ;;  %v3005_v50 = vpop.f32.mrb[12].mxu0  ;;  %v3308_v44 = vld [vmem:[%s4164_s6 + $0x10] sm:$0xff]  }
 0x104   : > { %v3679_v52 = vpack.c.bf16 %v963_v47, %v962_v42  ;;  %v812_v53 = vadd.f32 %v3005_v50, %v3610_v13  ;;  %v803_v54 = vpop.f32.mrb[13].mxu0  ;;  %v3025_v55 = vpop.f32.mrb[12].mxu1  ;;  %v1003_v34 = vsel %vm986_vm1, %v3671_v46, 0  ;;  %v3316_v45 = vld [vmem:[%s4163_s5 + $0x10] sm:$0xff]   ;;  %v3801_v47 = vld [vmem:[%s4163_s5 + $0x20] sm:$0xff]   ;;  %v3822_v50 = vld [vmem:[%s4163_s5 + $0x38] sm:$0xff]  }
 0x105   : > { %v804_v57 = vadd.f32 %v3610_v13, %v803_v54  ;;  %v3006_v58 = vpop.f32.mrb[14].mxu0  ;;  %v948_v59 = vadd.f32 %v3025_v55, %v3615_v15  ;;  %v939_v60 = vpop.f32.mrb[13].mxu1  ;;  %v1000_v32 = vsel %vm986_vm1, %v3673_v48, 0  ;;  %v1027_v33 = vsel %vm986_vm1, %v3675_v49, 0 }
 0x106   : > { %3064 = vmatpush3.bf16.xpose.msra.mxu1 %v994_v56  ;;  %v832_v61 = vmax.f32 %v812_v53, 0.0  ;;  %v815_v62 = vadd.f32 %v3006_v58, %v3610_v13  ;;  %v806_v63 = vpop.f32.mrb[15].mxu0  ;;  %v940_v0 = vadd.f32 %v3615_v15, %v939_v60  ;;  %v3026_v1 = vpop.f32.mrb[14].mxu1 }
 0x107   : > { %3032 = vmatpush3.bf16.xpose.msra.mxu0 %v1018_v51  ;;  %3276 = vmatprep.subr.msk.bf16.mxu1 %vm986_vm1, %v3647_v4  ;;  %v830_v2 = vmax.f32 %v804_v57, 0.0  ;;  %v807_v3 = vadd.f32 %v3610_v13, %v806_v63  ;;  %v968_v14 = vmax.f32 %v948_v59, 0.0  ;;  %v951_v18 = vadd.f32 %v3026_v1, %v3615_v15  ;;  %v942_v20 = vpop.f32.mrb[15].mxu1  ;;  %v3829_v51 = vld [vmem:[%s4166_s8] sm:$0xff]  }
 0x108   : > { %3268 = vmatprep.subr.msk.bf16.mxu0 %vm986_vm1, %v3651_v17  ;;  %v833_v21 = vmax.f32 %v815_v62, 0.0  ;;  %v966_v22 = vmax.f32 %v940_v0, 0.0  ;;  %v943_v23 = vadd.f32 %v3615_v15, %v942_v20  ;;  %v1021_v13 = vsel %vm986_vm1, %v3651_v17, 0 }
 0x109   : > { %v831_v24 = vmax.f32 %v807_v3, 0.0  ;;  %v969_v25 = vmax.f32 %v951_v18, 0.0  ;;  %v1024_v15 = vsel %vm986_vm1, %v3679_v52, 0 }
 0x10a   : > { %v3695_v26 = vpack.c.bf16 %v833_v21, %v832_v61  ;;  %v967_v27 = vmax.f32 %v943_v23, 0.0 }
 0x10b   : > { %v976_v28 = vpack.c.bf16 %v831_v24, %v830_v2  ;;  %v3697_v29 = vpack.c.bf16 %v969_v25, %v968_v14 }
 0x10c   : > { %v984_v30 = vpack.c.bf16 %v967_v27, %v966_v22  ;;  %v1009_v42 = vsel %vm986_vm1, %v3695_v26, 0 }
 0x10d   : > { %v1006_v36 = vsel %vm986_vm1, %v976_v28, 0  ;;  %v1033_v39 = vsel %vm986_vm1, %v3697_v29, 0 }
 0x10e   : > { %3066 = vmatpush3.bf16.xpose.msra.mxu1 %v997_v31  ;;  %v1030_v35 = vsel %vm986_vm1, %v984_v30, 0 }
 0x10f   : > { %3034 = vmatpush3.bf16.xpose.msra.mxu0 %v1021_v13  ;;  %3277 = vmatprep.subr.msk.bf16.mxu1 %vm986_vm1, %v3673_v48 }
 0x110   : > { %3269 = vmatprep.subr.msk.bf16.mxu0 %vm986_vm1, %v3679_v52 }
 0x116   : > { %3068 = vmatpush3.bf16.xpose.msra.mxu1 %v1000_v32 }
 0x117   : > { %3036 = vmatpush3.bf16.xpose.msra.mxu0 %v1024_v15  ;;  %3278 = vmatprep.subr.msk.bf16.mxu1 %vm986_vm1, %v3671_v46 }
 0x118   : > { %3270 = vmatprep.subr.msk.bf16.mxu0 %vm986_vm1, %v3675_v49 }
 0x11e   : > { %3070 = vmatpush3.bf16.xpose.msra.mxu1 %v1003_v34 }
 0x11f   : > { %3038 = vmatpush3.bf16.xpose.msra.mxu0 %v1027_v33  ;;  %3279 = vmatprep.subr.msk.bf16.mxu1 %vm986_vm1, %v976_v28 }
 0x120   : > { %3271 = vmatprep.subr.msk.bf16.mxu0 %vm986_vm1, %v984_v30 }
 0x126   : > { %3072 = vmatpush3.bf16.xpose.msra.mxu1 %v1006_v36 }
 0x127   : > { %3040 = vmatpush3.bf16.xpose.msra.mxu0 %v1030_v35  ;;  %3280 = vmatprep.subr.msk.bf16.mxu1 %vm986_vm1, %v3695_v26 }
 0x128   : > { %3272 = vmatprep.subr.msk.bf16.mxu0 %vm986_vm1, %v3697_v29 }
 0x12e   : > { %3074 = vmatpush3.bf16.xpose.msra.mxu1 %v1009_v42 }
 0x12f   : > { %3042 = vmatpush3.bf16.xpose.msra.mxu0 %v1033_v39  ;;  %3233 = vmatprep.subr.bf16.mxu1 %v3730_v37 }
 0x130   : > { %3091 = vmatprep.subr.bf16.mxu0 %v3306_v41 }
 0x135   : > { %3076 = vmatmul.mubr.msk.bf16.vlgmr.msra.gmra.mrb[16].mxu1 %vm986_vm1, %v3627_v40  ;;  %v3310_v40 = vld [vmem:[%s4164_s6 + $0x20] sm:$0xff]  }
 0x136   : > { %3044 = vmatmul.mubr.msk.bf16.vlgmr.msra.gmra.mrb[16].mxu0 %vm986_vm1, %v3625_v38  ;;  %3079 = vmatprep.mubr.msk.bf16.mxu1 %vm986_vm1, %v3653_v19  ;;  %v3309_v38 = vld [vmem:[%s4164_s6 + $0x18] sm:$0xff]   ;;  %v3315_v19 = vld [vmem:[%s4163_s5 + $0x8] sm:$0xff]  }
 0x137   : > { %3047 = vmatprep.mubr.msk.bf16.mxu0 %vm986_vm1, %v3649_v16  ;;  %3092 = vmatpush3.bf16.msra.mxu0 %v3306_v41  ;;  %v3311_v16 = vld [vmem:[%s4164_s6 + $0x28] sm:$0xff]  }
 0x138   : > { %3093 = vmatprep.subr.bf16.mxu0 %v3307_v43  ;;  %3241 = vmatpush3.bf16.msra.mxu1 %v3730_v37 }
 0x139   : > { %3234 = vmatprep.subr.bf16.mxu1 %v3315_v19 }
 0x13b   : > { %3094 = vmatpush3.bf16.msra.mxu0 %v3307_v43 }
 0x13c   : > { %3095 = vmatprep.subr.bf16.mxu0 %v3308_v44  ;;  %3242 = vmatpush3.bf16.msra.mxu1 %v3315_v19 }
 0x13d   : > { %3080 = vmatmul.mubr.msk.bf16.gmra.mrb[20].mxu1 %vm986_vm1, %v3651_v17  ;;  %v3314_v17 = vld [vmem:[%s4164_s6 + $0x38] sm:$0xff]   ;;  %3235 = vmatprep.subr.bf16.mxu1 %v3316_v45 }
 0x13e   : > { %3048 = vmatmul.mubr.msk.bf16.gmra.mrb[20].mxu0 %vm986_vm1, %v3647_v4  ;;  %3083 = vmatprep.mubr.msk.bf16.mxu1 %vm986_vm1, %v3679_v52  ;;  %v3312_v4 = vld [vmem:[%s4164_s6 + $0x30] sm:$0xff]  }
 0x13f   : > { %3051 = vmatprep.mubr.msk.bf16.mxu0 %vm986_vm1, %v3673_v48  ;;  %3096 = vmatpush3.bf16.msra.mxu0 %v3308_v44  ;;  %v3808_v48 = vld [vmem:[%s4163_s5 + $0x28] sm:$0xff]  }
 0x140   : > { %3097 = vmatprep.subr.bf16.mxu0 %v3309_v38  ;;  %3243 = vmatpush3.bf16.msra.mxu1 %v3316_v45 }
 0x143   : > { %3098 = vmatpush3.bf16.msra.mxu0 %v3309_v38 }
 0x144   : > { %3099 = vmatprep.subr.bf16.mxu0 %v3310_v40 }
 0x145   : > { %3084 = vmatmul.mubr.msk.bf16.gmra.mrb[24].mxu1 %vm986_vm1, %v3675_v49  ;;  %v3815_v49 = vld [vmem:[%s4163_s5 + $0x30] sm:$0xff]  }
 0x146   : > { %3052 = vmatmul.mubr.msk.bf16.gmra.mrb[24].mxu0 %vm986_vm1, %v3671_v46  ;;  %3087 = vmatprep.mubr.msk.bf16.mxu1 %vm986_vm1, %v984_v30  ;;  %v3317_v46 = vld [vmem:[%s4163_s5 + $0x18] sm:$0xff]  }
 0x147   : > { %3055 = vmatprep.mubr.msk.bf16.mxu0 %vm986_vm1, %v976_v28  ;;  %3100 = vmatpush3.bf16.msra.mxu0 %v3310_v40 }
 0x148   : > { %3101 = vmatprep.subr.bf16.mxu0 %v3311_v16  ;;  %3236 = vmatprep.subr.bf16.mxu1 %v3317_v46 }
 0x149   : > { %3244 = vmatpush3.bf16.msra.mxu1 %v3317_v46 }
 0x14a   : > { %3237 = vmatprep.subr.bf16.mxu1 %v3801_v47 }
 0x14b   : > { %3102 = vmatpush3.bf16.msra.mxu0 %v3311_v16 }
 0x14c   : > { %3103 = vmatprep.subr.bf16.mxu0 %v3312_v4 }
 0x14d   : > { %3088 = vmatmul.mubr.msk.bf16.gmra.mrb[28].mxu1 %vm986_vm1, %v3697_v29 }
 0x14e   : > { %3056 = vmatmul.mubr.msk.bf16.gmra.mrb[28].mxu0 %vm986_vm1, %v3695_v26  ;;  %3245 = vmatpush3.bf16.msra.mxu1 %v3801_v47 }
 0x14f   : > { %3104 = vmatpush3.bf16.msra.mxu0 %v3312_v4  ;;  %3238 = vmatprep.subr.bf16.mxu1 %v3808_v48 }
 0x150   : > { %3105 = vmatprep.subr.bf16.mxu0 %v3314_v17 }
 0x152   : > { %3246 = vmatpush3.bf16.msra.mxu1 %v3808_v48 }
 0x153   : > { %3106 = vmatpush3.bf16.msra.mxu0 %v3314_v17  ;;  %3239 = vmatprep.subr.bf16.mxu1 %v3815_v49 }
 0x154   : > { %3123 = vmatprep.subr.bf16.mxu0 %v3730_v37 }
 0x156   : > { %3247 = vmatpush3.bf16.msra.mxu1 %v3815_v49 }
 0x157   : > { %3240 = vmatprep.subr.bf16.mxu1 %v3822_v50 }
 0x15a   : > { %3248 = vmatpush3.bf16.msra.mxu1 %v3822_v50 }
 0x15b   : > { %3155 = vmatprep.subr.bf16.mxu1 %v3829_v51 }
 0x208   : > { %v3077_v52 = vpop.f32.mrb[16].mxu1 }
 0x209   : > { %v3832_v53 = vpop.f32.mrb[16].mxu0  ;;  %v1174_v54 = vpop.f32.mrb[17].mxu1 }
 0x20a   : > { %v3834_v55 = vpop.f32.mrb[17].mxu0  ;;  %v3078_v56 = vpop.f32.mrb[18].mxu1 }
 0x20b   : > { %v3836_v57 = vpop.f32.mrb[18].mxu0  ;;  %v1238_v58 = vpack.c.bf16 %v3078_v56, %v3077_v52  ;;  %v1177_v59 = vpop.f32.mrb[19].mxu1 }
 0x20c   : > { %v1133_v60 = vpack.c.bf16 %v3836_v57, %v3832_v53  ;;  %v3840_v61 = vpop.f32.mrb[19].mxu0  ;;  %v1237_v62 = vpack.c.bf16 %v1177_v59, %v1174_v54 }
 0x20d   : > { %v1132_v63 = vpack.c.bf16 %v3840_v61, %v3834_v55 }
 0x20e   : > { %3107 = vmatprep.mubr.bf16.mxu0 %v1237_v62 }
 0x20f   : > { %3108 = vmatmul.mubr.bf16.vlgmr.msra.gmra.mrb[32].mxu0 %v1238_v58  ;;  %v3900_v58 = vld [vmem:[%s4167_s9] ss:$0 sm:$0xff] }
 0x210   : > { %v3081_v0 = vpop.f32.mrb[20].mxu1  ;;  %3124 = vmatpush3.bf16.msra.mxu0 %v3730_v37 }
 0x211   : > { %v3845_v1 = vpop.f32.mrb[20].mxu0  ;;  %v1190_v2 = vpop.f32.mrb[21].mxu1  ;;  %3125 = vmatprep.subr.bf16.mxu0 %v3315_v19 }
 0x212   : > { %v3847_v3 = vpop.f32.mrb[21].mxu0  ;;  %v3082_v14 = vpop.f32.mrb[22].mxu1 }
 0x213   : > { %v3849_v18 = vpop.f32.mrb[22].mxu0  ;;  %v1240_v20 = vpack.c.bf16 %v3082_v14, %v3081_v0  ;;  %v1193_v21 = vpop.f32.mrb[23].mxu1 }
 0x214   : > { %v1135_v22 = vpack.c.bf16 %v3849_v18, %v3845_v1  ;;  %v1088_v23 = vpop.f32.mrb[23].mxu0  ;;  %v1239_v24 = vpack.c.bf16 %v1193_v21, %v1190_v2  ;;  %3126 = vmatpush3.bf16.msra.mxu0 %v3315_v19  ;;  %v3323_v19 = vld [vmem:[%s4166_s8 + $0x8] sm:$0xff]  }
 0x215   : > { %v1134_v25 = vpack.c.bf16 %v1088_v23, %v3847_v3  ;;  %3127 = vmatprep.subr.bf16.mxu0 %v3316_v45 }
 0x216   : > { %3111 = vmatprep.mubr.bf16.mxu0 %v1239_v24 }
 0x217   : > { %3112 = vmatmul.mubr.bf16.gmra.mrb[36].mxu0 %v1240_v20 }
 0x218   : > { %v3085_v26 = vpop.f32.mrb[24].mxu1  ;;  %3128 = vmatpush3.bf16.msra.mxu0 %v3316_v45  ;;  %v3324_v45 = vld [vmem:[%s4169_s11] sm:$0xff]  }
 0x219   : > { %v3053_v27 = vpop.f32.mrb[24].mxu0  ;;  %v1206_v28 = vpop.f32.mrb[25].mxu1  ;;  %3129 = vmatprep.subr.bf16.mxu0 %v3317_v46 }
 0x21a   : > { %v1101_v29 = vpop.f32.mrb[25].mxu0  ;;  %v3086_v13 = vpop.f32.mrb[26].mxu1 }
 0x21b   : > { %v3054_v30 = vpop.f32.mrb[26].mxu0  ;;  %v1242_v31 = vpack.c.bf16 %v3086_v13, %v3085_v26  ;;  %v1209_v15 = vpop.f32.mrb[27].mxu1 }
 0x21c   : > { %v1137_v32 = vpack.c.bf16 %v3054_v30, %v3053_v27  ;;  %v1104_v33 = vpop.f32.mrb[27].mxu0  ;;  %v1241_v34 = vpack.c.bf16 %v1209_v15, %v1206_v28  ;;  %3130 = vmatpush3.bf16.msra.mxu0 %v3317_v46 }
 0x21d   : > { %v1136_v35 = vpack.c.bf16 %v1104_v33, %v1101_v29  ;;  %3131 = vmatprep.subr.bf16.mxu0 %v3801_v47 }
 0x21e   : > { %3115 = vmatprep.mubr.bf16.mxu0 %v1241_v34 }
 0x21f   : > { %3116 = vmatmul.mubr.bf16.gmra.mrb[40].mxu0 %v1242_v31 }
 0x220   : > { %v3089_v36 = vpop.f32.mrb[28].mxu1  ;;  %3132 = vmatpush3.bf16.msra.mxu0 %v3801_v47 }
 0x221   : > { %v3057_v37 = vpop.f32.mrb[28].mxu0  ;;  %v1222_v39 = vpop.f32.mrb[29].mxu1  ;;  %3133 = vmatprep.subr.bf16.mxu0 %v3808_v48 }
 0x222   : > { %v1117_v41 = vpop.f32.mrb[29].mxu0  ;;  %v3090_v42 = vpop.f32.mrb[30].mxu1 }
 0x223   : > { %v3058_v43 = vpop.f32.mrb[30].mxu0  ;;  %v1244_v44 = vpack.c.bf16 %v3090_v42, %v3089_v36  ;;  %v1225_v38 = vpop.f32.mrb[31].mxu1 }
 0x224   : > { %v1139_v40 = vpack.c.bf16 %v3058_v43, %v3057_v37  ;;  %v1120_v16 = vpop.f32.mrb[31].mxu0  ;;  %v1243_v4 = vpack.c.bf16 %v1225_v38, %v1222_v39  ;;  %3134 = vmatpush3.bf16.msra.mxu0 %v3808_v48 }
 0x225   : > { %v1138_v17 = vpack.c.bf16 %v1120_v16, %v1117_v41  ;;  %3135 = vmatprep.subr.bf16.mxu0 %v3815_v49 }
 0x226   : > { %3119 = vmatprep.mubr.bf16.mxu0 %v1243_v4 }
 0x227   : > { %3151 = vmatprep.mubr.bf16.mxu1 %v1138_v17  ;;  %3120 = vmatmul.mubr.bf16.gmra.mrb[44].mxu0 %v1244_v44 }
 0x228   : > { %3152 = vmatmul.mubr.bf16.vlgmr.msra.gmra.mrb[32].mxu1 %v1139_v40  ;;  %3136 = vmatpush3.bf16.msra.mxu0 %v3815_v49 }
 0x229   : > { %3139 = vmatprep.mubr.bf16.mxu0 %v1132_v63  ;;  %3137 = vmatprep.subr.bf16.mxu0 %v3822_v50 }
 0x22a   : > { %3156 = vmatpush3.bf16.msra.mxu1 %v3829_v51  ;;  %3159 = vmatprep.mubr.msk.bf16.mxu1 %vm696_vm0, %v3552_v5 }
 0x22b   : > { %3157 = vmatprep.subr.bf16.mxu1 %v3323_v19 }
 0x22c   : > { %3138 = vmatpush3.bf16.msra.mxu0 %v3822_v50 }
 0x22e   : > { %3158 = vmatpush3.bf16.msra.mxu1 %v3323_v19 }
 0x22f   : > { %3140 = vmatmul.mubr.bf16.vlgmr.msra.gmra.mrb[32].mxu0 %v1133_v60  ;;  %3175 = vmatprep.subr.bf16.mxu1 %v3324_v45 }
 0x230   : > { %3143 = vmatprep.mubr.bf16.mxu0 %v1134_v25 }
 0x231   : > { %3160 = vmatmul.mubr.msk.bf16.vlgmr.msra.gmra.mrb[36].mxu1 %vm696_vm0, %v3555_v6 }
 0x232   : > { %3163 = vmatprep.mubr.msk.bf16.mxu1 %vm696_vm0, %v3558_v7  ;;  %3176 = vmatpush3.bf16.msra.mxu1 %v3324_v45  ;;  %v3891_v7 = vld [vmem:[%s4165_s7] ss:$0 sm:$0xff] }
 0x237   : > { %3144 = vmatmul.mubr.bf16.gmra.mrb[36].mxu0 %v1135_v22 }
 0x238   : > { %3147 = vmatprep.mubr.bf16.mxu0 %v1136_v35 }
 0x239   : > { %3164 = vmatmul.mubr.msk.bf16.gmra.mrb[40].mxu1 %vm696_vm0, %v3565_v8 }
 0x23a   : > { %3167 = vmatprep.mubr.msk.bf16.mxu1 %vm696_vm0, %v3570_v9 }
 0x23f   : > { %3148 = vmatmul.mubr.bf16.gmra.mrb[40].mxu0 %v1137_v32 }
 0x241   : > { %3168 = vmatmul.mubr.msk.bf16.gmra.mrb[44].mxu1 %vm696_vm0, %v3579_v10 }
 0x242   : > { %3171 = vmatprep.mubr.msk.bf16.mxu1 %vm696_vm0, %v3584_v11 }
 0x249   : > { %3172 = vmatmul.mubr.msk.bf16.gmra.mrb[48].mxu1 %vm696_vm0, %v3599_v12 }
 0x2fa   : > { %v3121_v5 = vpop.f32.mrb[44].mxu0 }
 0x2fb   : > { %v3153_v6 = vpop.f32.mrb[32].mxu1  ;;  %v1407_v8 = vpop.f32.mrb[45].mxu0 }
 0x2fc   : > { %v1561_v46 = vadd.f32 %v3153_v6, %v3121_v5  ;;  %v1552_v9 = vpop.f32.mrb[33].mxu1  ;;  %v3122_v47 = vpop.f32.mrb[46].mxu0 }
 0x2fd   : > { %v1553_v48 = vadd.f32 %v1552_v9, %v1407_v8  ;;  %v3154_v49 = vpop.f32.mrb[34].mxu1  ;;  %v1410_v10 = vpop.f32.mrb[47].mxu0 }
 0x2fe   : > { %v1588_v50 = vadd.f32 %v3891_v7, %v1561_v46  ;;  %v1564_v11 = vadd.f32 %v3154_v49, %v3122_v47  ;;  %v1555_v51 = vpop.f32.mrb[35].mxu1 }
 0x2ff   : > { %v1586_v12 = vadd.f32 %v3891_v7, %v1553_v48  ;;  %v1556_v52 = vadd.f32 %v1555_v51, %v1410_v10 }
 0x300   : > { %v1589_v53 = vadd.f32 %v3891_v7, %v1564_v11  ;;  %v1604_v55 = vmax.f32 %v1588_v50, 0.0 }
 0x301   : > { %v1587_v54 = vadd.f32 %v3891_v7, %v1556_v52  ;;  %v1602_v59 = vmax.f32 %v1586_v12, 0.0 }
 0x302   : > { %v1605_v56 = vmax.f32 %v1589_v53, 0.0  ;;  %v3141_v57 = vpop.f32.mrb[32].mxu0 }
 0x303   : > { %v1603_v60 = vmax.f32 %v1587_v54, 0.0  ;;  %v1576_v61 = vadd.f32 %v3141_v57, %v3891_v7  ;;  %v1504_v62 = vpop.f32.mrb[33].mxu0 }
 0x304   : > { %v3903_v63 = vpack.c.bf16 %v1605_v56, %v1604_v55  ;;  %v1574_v0 = vadd.f32 %v3891_v7, %v1504_v62  ;;  %v3142_v1 = vpop.f32.mrb[34].mxu0  ;;  %v3161_v2 = vpop.f32.mrb[36].mxu1 }
 0x305   : > { %v3906_v3 = vpack.c.bf16 %v1603_v60, %v1602_v59  ;;  %v1577_v14 = vadd.f32 %v3142_v1, %v3891_v7  ;;  %v1507_v18 = vpop.f32.mrb[35].mxu0  ;;  %v1672_v20 = vadd.f32 %v3161_v2, %v3900_v58  ;;  %v1663_v21 = vpop.f32.mrb[37].mxu1  ;;  %v1592_v25 = vmax.f32 %v1576_v61, 0.0 }
 0x306   : > { %v1575_v22 = vadd.f32 %v3891_v7, %v1507_v18  ;;  %v1664_v23 = vadd.f32 %v3900_v58, %v1663_v21  ;;  %v3162_v24 = vpop.f32.mrb[38].mxu1  ;;  %v1590_v13 = vmax.f32 %v1574_v0, 0.0 }
 0x307   : > { %v1593_v26 = vmax.f32 %v1577_v14, 0.0  ;;  %v1728_v27 = vmax.f32 %v1672_v20, 0.0  ;;  %v1675_v28 = vadd.f32 %v3162_v24, %v3900_v58  ;;  %v1666_v29 = vpop.f32.mrb[39].mxu1 }
 0x308   : > { %v1591_v30 = vmax.f32 %v1575_v22, 0.0  ;;  %v1726_v31 = vmax.f32 %v1664_v23, 0.0  ;;  %v1667_v15 = vadd.f32 %v3900_v58, %v1666_v29 }
 0x309   : > { %v1831_v32 = vpack.c.bf16 %v1593_v26, %v1592_v25  ;;  %v1729_v33 = vmax.f32 %v1675_v28, 0.0  ;;  %v1748_v34 = vsel %vm986_vm1, %v1728_v27, 0.0 }
 0x30a   : > { %v1830_v35 = vpack.c.bf16 %v1591_v30, %v1590_v13  ;;  %v3145_v36 = vpop.f32.mrb[36].mxu0  ;;  %v1727_v37 = vmax.f32 %v1667_v15, 0.0  ;;  %1749 = vadd.xlane.f32.xlu1 %v1748_v34  ;;  %v1742_v39 = vsel %vm986_vm1, %v1726_v31, 0.0 }
 0x30b   : > { %v1580_v41 = vadd.f32 %v3145_v36, %v3891_v7  ;;  %v1520_v42 = vpop.f32.mrb[37].mxu0  ;;  %1743 = vadd.xlane.f32.xlu0 %v1742_v39  ;;  %v1751_v43 = vsel %vm986_vm1, %v1729_v33, 0.0 }
 0x30c   : > { %v1578_v44 = vadd.f32 %v3891_v7, %v1520_v42  ;;  %v3146_v38 = vpop.f32.mrb[38].mxu0  ;;  %3177 = vmatprep.mubr.msk.bf16.mxu1 %vm1846_vm2, %v1830_v35  ;;  %v3165_v40 = vpop.f32.mrb[40].mxu1  ;;  %v1745_v16 = vsel %vm986_vm1, %v1727_v37, 0.0 }
 0x30d   : > { %v1581_v4 = vadd.f32 %v3146_v38, %v3891_v7  ;;  %v1523_v17 = vpop.f32.mrb[39].mxu0  ;;  %3178 = vmatmul.mubr.msk.bf16.vlgmr.msra.gmra.mrb[52].mxu1 %vm1846_vm2, %v1831_v32  ;;  %v1688_v19 = vadd.f32 %v3165_v40, %v3900_v58  ;;  %v1679_v45 = vpop.f32.mrb[41].mxu1  ;;  %v1596_v46 = vmax.f32 %v1580_v41, 0.0 }
 0x30e   : > { %v1579_v5 = vadd.f32 %v3891_v7, %v1523_v17  ;;  %v1680_v6 = vadd.f32 %v3900_v58, %v1679_v45  ;;  %v3166_v8 = vpop.f32.mrb[42].mxu1  ;;  %1752 = vadd.xlane.f32.xlu1 %v1751_v43  ;;  %v1594_v9 = vmax.f32 %v1578_v44, 0.0 }
 0x30f   : > { %v1597_v47 = vmax.f32 %v1581_v4, 0.0  ;;  %v1691_v48 = vadd.f32 %v3166_v8, %v3900_v58  ;;  %v1682_v49 = vpop.f32.mrb[43].mxu1  ;;  %1746 = vadd.xlane.f32.xlu0 %v1745_v16  ;;  %v1732_v50 = vmax.f32 %v1688_v19, 0.0 }
 0x310   : > { %v1595_v10 = vmax.f32 %v1579_v5, 0.0  ;;  %v1730_v11 = vmax.f32 %v1680_v6, 0.0  ;;  %v1683_v51 = vadd.f32 %v3900_v58, %v1682_v49 }
 0x311   : > { %v1833_v12 = vpack.c.bf16 %v1597_v47, %v1596_v46  ;;  %v1733_v54 = vmax.f32 %v1691_v48, 0.0  ;;  %v1760_v1 = vsel %vm986_vm1, %v1732_v50, 0.0 }
 0x312   : > { %v1832_v52 = vpack.c.bf16 %v1595_v10, %v1594_v9  ;;  %v3149_v53 = vpop.f32.mrb[40].mxu0  ;;  %v1731_v55 = vmax.f32 %v1683_v51, 0.0  ;;  %v1754_v56 = vsel %vm986_vm1, %v1730_v11, 0.0 }
 0x313   : > { %v1584_v57 = vadd.f32 %v3149_v53, %v3891_v7  ;;  %v1536_v59 = vpop.f32.mrb[41].mxu0  ;;  %1755 = vadd.xlane.f32.xlu0 %v1754_v56  ;;  %v1763_v24 = vsel %vm986_vm1, %v1733_v54, 0.0 }
 0x314   : > { %v1582_v60 = vadd.f32 %v3891_v7, %v1536_v59  ;;  %v3150_v61 = vpop.f32.mrb[42].mxu0  ;;  %3181 = vmatprep.mubr.msk.bf16.mxu1 %vm1846_vm2, %v1832_v52  ;;  %v3169_v62 = vpop.f32.mrb[44].mxu1  ;;  %v1757_v0 = vsel %vm986_vm1, %v1731_v55, 0.0  ;;  %v3963_v52 = vld [vmem:[%s4168_s10] ss:$0 sm:$0xff] }
 0x315   : > { %v1585_v2 = vadd.f32 %v3150_v61, %v3891_v7  ;;  %v1539_v14 = vpop.f32.mrb[43].mxu0  ;;  %3182 = vmatmul.mubr.msk.bf16.gmra.mrb[56].mxu1 %vm1846_vm2, %v1833_v12  ;;  %v1704_v18 = vadd.f32 %v3169_v62, %v3900_v58  ;;  %v1695_v20 = vpop.f32.mrb[45].mxu1  ;;  %1758 = vadd.xlane.f32.xlu1 %v1757_v0  ;;  %v1600_v25 = vmax.f32 %v1584_v57, 0.0 }
 0x316   : > { %v1583_v21 = vadd.f32 %v3891_v7, %v1539_v14  ;;  %v1696_v22 = vadd.f32 %v3900_v58, %v1695_v20  ;;  %v3170_v23 = vpop.f32.mrb[46].mxu1  ;;  %v1598_v26 = vmax.f32 %v1582_v60, 0.0  ;;  %v3970_v60 = vld [vmem:[%s4170_s12] ss:$0 sm:$0xff] }
 0x317   : > { %v1601_v27 = vmax.f32 %v1585_v2, 0.0  ;;  %v1707_v28 = vadd.f32 %v3170_v23, %v3900_v58  ;;  %v1698_v29 = vpop.f32.mrb[47].mxu1  ;;  %1761 = vadd.xlane.f32.xlu0 %v1760_v1  ;;  %v1736_v30 = vmax.f32 %v1704_v18, 0.0 }
 0x318   : > { %v1599_v13 = vmax.f32 %v1583_v21, 0.0  ;;  %v1734_v31 = vmax.f32 %v1696_v22, 0.0  ;;  %v1699_v15 = vadd.f32 %v3900_v58, %v1698_v29 }
 0x319   : > { %v1835_v32 = vpack.c.bf16 %v1601_v27, %v1600_v25  ;;  %1764 = vadd.xlane.f32.xlu1 %v1763_v24  ;;  %v1737_v33 = vmax.f32 %v1707_v28, 0.0  ;;  %v1772_v39 = vsel %vm986_vm1, %v1736_v30, 0.0 }
 0x31a   : > { %v1834_v7 = vpack.c.bf16 %v1599_v13, %v1598_v26  ;;  %v1735_v34 = vmax.f32 %v1699_v15, 0.0  ;;  %v1766_v35 = vsel %vm986_vm1, %v1734_v31, 0.0  ;;  %v3981_v31 = vld [vmem:[%s4171_s13] ss:$0 sm:$0xff] }
 0x31b   : > { %1767 = vadd.xlane.f32.xlu0 %v1766_v35  ;;  %v1775_v38 = vsel %vm986_vm1, %v1737_v33, 0.0 }
 0x31c   : > { %3185 = vmatprep.mubr.msk.bf16.mxu1 %vm1846_vm2, %v1834_v7  ;;  %v3173_v36 = vpop.f32.mrb[48].mxu1  ;;  %v1769_v37 = vsel %vm986_vm1, %v1735_v34, 0.0 }
 0x31d   : > { %3186 = vmatmul.mubr.msk.bf16.gmra.mrb[60].mxu1 %vm1846_vm2, %v1835_v32  ;;  %v1720_v41 = vadd.f32 %v3173_v36, %v3900_v58  ;;  %v1711_v42 = vpop.f32.mrb[49].mxu1  ;;  %1770 = vadd.xlane.f32.xlu1 %v1769_v37 }
 0x31e   : > { %3189 = vmatprep.mubr.msk.bf16.mxu1 %vm1846_vm2, %v3906_v3  ;;  %v1712_v43 = vadd.f32 %v3900_v58, %v1711_v42  ;;  %v3174_v44 = vpop.f32.mrb[50].mxu1 }
 0x31f   : > { %v1723_v40 = vadd.f32 %v3174_v44, %v3900_v58  ;;  %v1714_v16 = vpop.f32.mrb[51].mxu1  ;;  %1773 = vadd.xlane.f32.xlu0 %v1772_v39  ;;  %v1740_v4 = vmax.f32 %v1720_v41, 0.0 }
 0x320   : > { %v1738_v17 = vmax.f32 %v1712_v43, 0.0  ;;  %v1715_v19 = vadd.f32 %v3900_v58, %v1714_v16 }
 0x321   : > { %1776 = vadd.xlane.f32.xlu1 %v1775_v38  ;;  %v1741_v45 = vmax.f32 %v1723_v40, 0.0  ;;  %v1784_v8 = vsel %vm986_vm1, %v1740_v4, 0.0 }
 0x322   : > { %v1739_v5 = vmax.f32 %v1715_v19, 0.0  ;;  %v1778_v6 = vsel %vm986_vm1, %v1738_v17, 0.0 }
 0x323   : > { %1779 = vadd.xlane.f32.xlu0 %v1778_v6  ;;  %v1787_v46 = vsel %vm986_vm1, %v1741_v45, 0.0 }
 0x324   : > { %v1781_v3 = vsel %vm986_vm1, %v1739_v5, 0.0 }
 0x325   : > { %3190 = vmatmul.mubr.msk.bf16.gmra.mrb[64].mxu1 %vm1846_vm2, %v3903_v63  ;;  %1782 = vadd.xlane.f32.xlu1 %v1781_v3 }
 0x327   : > { %1785 = vadd.xlane.f32.xlu0 %v1784_v8 }
 0x329   : > { %1788 = vadd.xlane.f32.xlu1 %v1787_v46 }
 0x397   : > { %v1750_v58 = vpop.xlane.xlu1 %1749 }
 0x398   : > { %v1744_v9 = vpop.xlane.xlu0 %1743  ;;  %v1793_v51 = vmul.f32 0.25, %v1750_v58 }
 0x399   : > { %v1791_v12 = vmul.f32 0.25, %v1744_v9 }
 0x39a   : > { %v1816_v54 = vmul.f32 %v3963_v52, %v1793_v51 }
 0x39b   : > { %v1753_v48 = vpop.xlane.xlu1 %1752  ;;  %v1814_v56 = vmul.f32 %v3963_v52, %v1791_v12 }
 0x39c   : > { %v1747_v47 = vpop.xlane.xlu0 %1746  ;;  %v1794_v53 = vmul.f32 0.25, %v1753_v48 }
 0x39d   : > { %v1792_v55 = vmul.f32 0.25, %v1747_v47 }
 0x39e   : > { %v1817_v0 = vmul.f32 %v3963_v52, %v1794_v53 }
 0x39f   : > { %v1815_v20 = vmul.f32 %v3963_v52, %v1792_v55 }
 0x3a0   : > { %v1756_v49 = vpop.xlane.xlu0 %1755 }
 0x3a1   : > { %v1795_v2 = vmul.f32 0.25, %v1756_v49 }
 0x3a2   : > { %v1759_v10 = vpop.xlane.xlu1 %1758 }
 0x3a3   : > { %v1796_v27 = vmul.f32 0.25, %v1759_v10  ;;  %v1818_v33 = vmul.f32 %v3963_v52, %v1795_v2 }
 0x3a4   : > { %v1762_v50 = vpop.xlane.xlu0 %1761 }
 0x3a5   : > { %v1797_v1 = vmul.f32 0.25, %v1762_v50  ;;  %v1819_v41 = vmul.f32 %v3963_v52, %v1796_v27 }
 0x3a6   : > { %v1765_v11 = vpop.xlane.xlu1 %1764 }
 0x3a7   : > { %v1798_v25 = vmul.f32 0.25, %v1765_v11  ;;  %v1820_v30 = vmul.f32 %v3963_v52, %v1797_v1 }
 0x3a8   : > { %v1768_v63 = vpop.xlane.xlu0 %1767 }
 0x3a9   : > { %v1821_v34 = vmul.f32 %v3963_v52, %v1798_v25  ;;  %v1799_v43 = vmul.f32 0.25, %v1768_v63 }
 0x3aa   : > { %v1771_v57 = vpop.xlane.xlu1 %1770 }
 0x3ab   : > { %v1800_v3 = vmul.f32 0.25, %v1771_v57  ;;  %v1822_v11 = vmul.f32 %v3963_v52, %v1799_v43 }
 0x3ac   : > { %v1774_v21 = vpop.xlane.xlu0 %1773 }
 0x3ad   : > { %v1801_v40 = vmul.f32 0.25, %v1774_v21 }
 0x3ae   : > { %v1777_v29 = vpop.xlane.xlu1 %1776 }
 0x3af   : > { %v1802_v9 = vmul.f32 0.25, %v1777_v29  ;;  %v1824_v50 = vmul.f32 %v3963_v52, %v1801_v40 }
 0x3b0   : > { %v1780_v42 = vpop.xlane.xlu0 %1779 }
 0x3b1   : > { %v1825_v55 = vmul.f32 %v3963_v52, %v1802_v9  ;;  %v1803_v2 = vmul.f32 0.25, %v1780_v42 }
 0x3b2   : > { %v1783_v5 = vpop.xlane.xlu1 %1782 }
 0x3b3   : > { %v1804_v27 = vmul.f32 0.25, %v1783_v5 }
 0x3b5   : > { %v1827_v43 = vmul.f32 %v3963_v52, %v1804_v27 }
 0x3b6   : > { %v1789_v1 = vpop.xlane.xlu1 %1788 }
 0x3e0   : > { %v3179_v59 = vpop.f32.mrb[52].mxu1 }
 0x3e1   : > { %v1970_v61 = vadd.f32 %v3179_v59, %v1816_v54  ;;  %v1905_v62 = vpop.f32.mrb[53].mxu1  ;;  %v1786_v54 = vpop.xlane.xlu0 %1785 }
 0x3e2   : > { %v1968_v14 = vadd.f32 %v1905_v62, %v1814_v56  ;;  %v3180_v18 = vpop.f32.mrb[54].mxu1  ;;  %v1823_v56 = vmul.f32 %v3963_v52, %v1800_v3 }
 0x3e3   : > { %v1993_v22 = vadd.f32 %v3970_v60, %v1970_v61  ;;  %v1971_v23 = vadd.f32 %v3180_v18, %v1817_v0  ;;  %v1908_v24 = vpop.f32.mrb[55].mxu1 }
 0x3e4   : > { %v1991_v26 = vadd.f32 %v3970_v60, %v1968_v14  ;;  %v1969_v28 = vadd.f32 %v1908_v24, %v1815_v20  ;;  %v1805_v20 = vmul.f32 0.25, %v1786_v54 }
 0x3e5   : > { %v1994_v13 = vadd.f32 %v3970_v60, %v1971_v23  ;;  %v2009_v15 = vmax.f32 %v1993_v22, 0.0 }
 0x3e6   : > { %v2007_v32 = vmax.f32 %v1991_v26, 0.0  ;;  %v1992_v7 = vadd.f32 %v3970_v60, %v1969_v28 }
 0x3e7   : > { %v2010_v35 = vmax.f32 %v1994_v13, 0.0  ;;  %v2032_v45 = vmul.f32 %v3981_v31, %v2009_v15  ;;  %v1806_v13 = vmul.f32 0.25, %v1789_v1  ;;  %v3415_v1 = vmov 0  }
 0x3e8   : > { %v2008_v36 = vmax.f32 %v1992_v7, 0.0  ;;  %v3183_v37 = vpop.f32.mrb[56].mxu1  ;;  %v2030_v39 = vmul.f32 %v3981_v31, %v2007_v32  ;;  %3292 = vset.pattern.permute.xlu0 %v3415_v1  ;;  %3293 = vset.pattern.permute.xlu1 %v3415_v1 }
 0x3e9   : > { %v1974_v44 = vadd.f32 %v3183_v37, %v1820_v30  ;;  %v1921_v38 = vpop.f32.mrb[57].mxu1  ;;  %v2033_v49 = vmul.f32 %v3981_v31, %v2010_v35  ;;  %v2053_v53 = vsel %vm2046_vm3, %v2032_v45, 0.0  ;;  %v1826_v35 = vmul.f32 %v3963_v52, %v1803_v2  ;;  %v4039_v2 = vld [vmem:[#allocation2] ss:$0 sm:$0xff] }
 0x3ea   : > { %v1972_v16 = vadd.f32 %v1921_v38, %v1818_v33  ;;  %v3184_v4 = vpop.f32.mrb[58].mxu1  ;;  %v2047_v17 = vsel %vm2046_vm3, %v2030_v39, 0.0  ;;  %v2031_v19 = vmul.f32 %v3981_v31, %v2008_v36  ;;  %v1829_v42 = vmul.f32 %v3963_v52, %v1806_v13 }
 0x3eb   : > { %v1997_v6 = vadd.f32 %v3970_v60, %v1974_v44  ;;  %v1975_v8 = vadd.f32 %v3184_v4, %v1821_v34  ;;  %2048 = vadd.xlane.f32.xlu0 %v2047_v17  ;;  %v1924_v46 = vpop.f32.mrb[59].mxu1  ;;  %v2056_v62 = vsel %vm2046_vm3, %v2033_v49, 0.0  ;;  %v1828_v34 = vmul.f32 %v3963_v52, %v1805_v20 }
 0x3ec   : > { %v1995_v58 = vadd.f32 %v3970_v60, %v1972_v16  ;;  %v1973_v47 = vadd.f32 %v1924_v46, %v1819_v41  ;;  %v2050_v48 = vsel %vm2046_vm3, %v2031_v19, 0.0 }
 0x3ed   : > { %v1998_v10 = vadd.f32 %v3970_v60, %v1975_v8  ;;  %2051 = vadd.xlane.f32.xlu1 %v2050_v48  ;;  %v2013_v51 = vmax.f32 %v1997_v6, 0.0 }
 0x3ee   : > { %v2011_v12 = vmax.f32 %v1995_v58, 0.0  ;;  %v1996_v63 = vadd.f32 %v3970_v60, %v1973_v47 }
 0x3ef   : > { %2054 = vadd.xlane.f32.xlu0 %v2053_v53  ;;  %v2014_v57 = vmax.f32 %v1998_v10, 0.0  ;;  %v2036_v25 = vmul.f32 %v3981_v31, %v2013_v51 }
 0x3f0   : > { %v2012_v59 = vmax.f32 %v1996_v63, 0.0  ;;  %v3187_v61 = vpop.f32.mrb[60].mxu1  ;;  %v2034_v0 = vmul.f32 %v3981_v31, %v2011_v12 }
 0x3f1   : > { %v1978_v14 = vadd.f32 %v3187_v61, %v1824_v50  ;;  %2057 = vadd.xlane.f32.xlu1 %v2056_v62  ;;  %v1937_v18 = vpop.f32.mrb[61].mxu1  ;;  %v2037_v7 = vmul.f32 %v3981_v31, %v2014_v57  ;;  %v2065_v41 = vsel %vm2046_vm3, %v2036_v25, 0.0 }
 0x3f2   : > { %v1976_v21 = vadd.f32 %v1937_v18, %v1822_v11  ;;  %v3188_v22 = vpop.f32.mrb[62].mxu1  ;;  %v2059_v23 = vsel %vm2046_vm3, %v2034_v0, 0.0  ;;  %v2035_v24 = vmul.f32 %v3981_v31, %v2012_v59 }
 0x3f3   : > { %v2001_v26 = vadd.f32 %v3970_v60, %v1978_v14  ;;  %v1979_v28 = vadd.f32 %v3188_v22, %v1825_v55  ;;  %2060 = vadd.xlane.f32.xlu0 %v2059_v23  ;;  %v1940_v29 = vpop.f32.mrb[63].mxu1  ;;  %v2068_v16 = vsel %vm2046_vm3, %v2037_v7, 0.0 }
 0x3f4   : > { %v1999_v30 = vadd.f32 %v3970_v60, %v1976_v21  ;;  %v1977_v15 = vadd.f32 %v1940_v29, %v1823_v56  ;;  %v2062_v32 = vsel %vm2046_vm3, %v2035_v24, 0.0 }
 0x3f5   : > { %v2002_v33 = vadd.f32 %v3970_v60, %v1979_v28  ;;  %2063 = vadd.xlane.f32.xlu1 %v2062_v32  ;;  %v2017_v36 = vmax.f32 %v2001_v26, 0.0 }
 0x3f6   : > { %v2015_v37 = vmax.f32 %v1999_v30, 0.0  ;;  %v2000_v39 = vadd.f32 %v3970_v60, %v1977_v15 }
 0x3f7   : > { %2066 = vadd.xlane.f32.xlu0 %v2065_v41  ;;  %v2018_v44 = vmax.f32 %v2002_v33, 0.0  ;;  %v2040_v8 = vmul.f32 %v3981_v31, %v2017_v36 }
 0x3f8   : > { %v2016_v38 = vmax.f32 %v2000_v39, 0.0  ;;  %v3191_v40 = vpop.f32.mrb[64].mxu1  ;;  %v2038_v4 = vmul.f32 %v3981_v31, %v2015_v37 }
 0x3f9   : > { %v1982_v17 = vadd.f32 %v3191_v40, %v1828_v34  ;;  %2069 = vadd.xlane.f32.xlu1 %v2068_v16  ;;  %v1953_v19 = vpop.f32.mrb[65].mxu1  ;;  %v2041_v49 = vmul.f32 %v3981_v31, %v2018_v44  ;;  %v2077_v12 = vsel %vm2046_vm3, %v2040_v8, 0.0 }
 0x3fa   : > { %v1980_v45 = vadd.f32 %v1953_v19, %v1826_v35  ;;  %v3192_v5 = vpop.f32.mrb[66].mxu1  ;;  %v2071_v6 = vsel %vm2046_vm3, %v2038_v4, 0.0  ;;  %v2039_v3 = vmul.f32 %v3981_v31, %v2016_v38 }
 0x3fb   : > { %v2005_v52 = vadd.f32 %v3970_v60, %v1982_v17  ;;  %v1983_v46 = vadd.f32 %v3192_v5, %v1829_v42  ;;  %2072 = vadd.xlane.f32.xlu0 %v2071_v6  ;;  %v1956_v9 = vpop.f32.mrb[67].mxu1  ;;  %v2080_v54 = vsel %vm2046_vm3, %v2041_v49, 0.0 }
 0x3fc   : > { %v2003_v58 = vadd.f32 %v3970_v60, %v1980_v45  ;;  %v1981_v47 = vadd.f32 %v1956_v9, %v1827_v43  ;;  %v2074_v48 = vsel %vm2046_vm3, %v2039_v3, 0.0 }
 0x3fd   : > { %v2006_v10 = vadd.f32 %v3970_v60, %v1983_v46  ;;  %2075 = vadd.xlane.f32.xlu1 %v2074_v48  ;;  %v2021_v50 = vmax.f32 %v2005_v52, 0.0 }
 0x3fe   : > { %v2019_v11 = vmax.f32 %v2003_v58, 0.0  ;;  %v2004_v51 = vadd.f32 %v3970_v60, %v1981_v47 }
 0x3ff   : > { %2078 = vadd.xlane.f32.xlu0 %v2077_v12  ;;  %v2022_v63 = vmax.f32 %v2006_v10, 0.0  ;;  %v2044_v59 = vmul.f32 %v3981_v31, %v2021_v50 }
 0x400   : > { %v2020_v53 = vmax.f32 %v2004_v51, 0.0  ;;  %v2042_v55 = vmul.f32 %v3981_v31, %v2019_v11  ;;  %v3325_v51 = vld [vmem:[%s4173_s15] sm:$0xff]  }
 0x401   : > { %2081 = vadd.xlane.f32.xlu1 %v2080_v54  ;;  %v2045_v60 = vmul.f32 %v3981_v31, %v2022_v63  ;;  %v2089_v62 = vsel %vm2046_vm3, %v2044_v59, 0.0  ;;  %3193 = vmatprep.subr.bf16.mxu0 %v3325_v51 }
 0x402   : > { %v2083_v56 = vsel %vm2046_vm3, %v2042_v55, 0.0  ;;  %v2043_v57 = vmul.f32 %v3981_v31, %v2020_v53  ;;  %3194 = vmatpush3.bf16.msra.mxu0 %v3325_v51 }
 0x403   : > { %2084 = vadd.xlane.f32.xlu0 %v2083_v56  ;;  %v2092_v0 = vsel %vm2046_vm3, %v2045_v60, 0.0 }
 0x404   : > { %v2086_v61 = vsel %vm2046_vm3, %v2043_v57, 0.0 }
 0x405   : > { %2087 = vadd.xlane.f32.xlu1 %v2086_v61 }
 0x407   : > { %2090 = vadd.xlane.f32.xlu0 %v2089_v62 }
 0x409   : > { %2093 = vadd.xlane.f32.xlu1 %v2092_v0 }
 0x478   : > { %v2049_v14 = vpop.xlane.xlu0 %2048 }
 0x479   : > { %v2102_v18 = vadd.f32 %v4039_v2, %v2049_v14 }
 0x47a   : > { %v2052_v20 = vpop.xlane.xlu1 %2051 }
 0x47b   : > { %v2802_v21 = vmul.f32 -1.442695, %v2102_v18  ;;  %v2103_v31 = vadd.f32 %v4039_v2, %v2052_v20 }
 0x47c   : > { %v2055_v22 = vpop.xlane.xlu0 %2054 }
 0x47d   : > { %3335 = vpow2.f32 %v2802_v21  ;;  %v2104_v23 = vadd.f32 %v4039_v2, %v2055_v22  ;;  %v2803_v28 = vmul.f32 -1.442695, %v2103_v31 }
 0x47e   : > { %v2058_v24 = vpop.xlane.xlu1 %2057 }
 0x47f   : > { %v2804_v25 = vmul.f32 -1.442695, %v2104_v23  ;;  %v2105_v26 = vadd.f32 %v4039_v2, %v2058_v24 }
 0x480   : > { %v2061_v27 = vpop.xlane.xlu0 %2060 }
 0x481   : > { %3337 = vpow2.f32 %v2804_v25  ;;  %v2805_v29 = vmul.f32 -1.442695, %v2105_v26  ;;  %v2106_v15 = vadd.f32 %v4039_v2, %v2061_v27  ;;  %v3326_v27 = vld [vmem:[%s4173_s15 + $0x8] sm:$0xff]  }
 0x482   : > { %v2064_v13 = vpop.xlane.xlu1 %2063  ;;  %3195 = vmatprep.subr.bf16.mxu0 %v3326_v27 }
 0x483   : > { %3339 = vpow2.f32 %v2805_v29  ;;  %v2806_v37 = vmul.f32 -1.442695, %v2106_v15  ;;  %v2107_v39 = vadd.f32 %v4039_v2, %v2064_v13  ;;  %3196 = vmatpush3.bf16.msra.mxu0 %v3326_v27  ;;  %v3404_v27 = vld [vmem:[%s3549_s1 + $0x28] sm:$0xff]  }
 0x484   : > { %v2067_v30 = vpop.xlane.xlu0 %2066  ;;  %3341 = vpow2.f32 %v2803_v28 }
 0x485   : > { %v2108_v32 = vadd.f32 %v4039_v2, %v2067_v30  ;;  %v2807_v40 = vmul.f32 -1.442695, %v2107_v39 }
 0x486   : > { %v2070_v7 = vpop.xlane.xlu1 %2069 }
 0x487   : > { %v3336_v33 = vpop.eup %3335  ;;  %v2808_v34 = vmul.f32 -1.442695, %v2108_v32  ;;  %v2109_v16 = vadd.f32 %v4039_v2, %v2070_v7 }
 0x488   : > { %v2166_v35 = vadd.f32 1.0, %v3336_v33  ;;  %v2073_v36 = vpop.xlane.xlu0 %2072 }
 0x489   : > { %3343 = vpow2.f32 %v2808_v34  ;;  %v2809_v3 = vmul.f32 -1.442695, %v2109_v16  ;;  %v2110_v8 = vadd.f32 %v4039_v2, %v2073_v36 }
 0x48a   : > { %3345 = vrcp.f32 %v2166_v35  ;;  %v2076_v41 = vpop.xlane.xlu1 %2075 }
 0x48b   : > { %v3338_v42 = vpop.eup %3337  ;;  %v2111_v43 = vadd.f32 %v4039_v2, %v2076_v41  ;;  %3347 = vpow2.f32 %v2806_v37  ;;  %v2810_v10 = vmul.f32 -1.442695, %v2110_v8  ;;  %v3400_v8 = vld [vmem:[%s3549_s1] sm:$0xff]  }
 0x48c   : > { %v2168_v44 = vadd.f32 1.0, %v3338_v42  ;;  %v2079_v19 = vpop.xlane.xlu0 %2078 }
 0x48d   : > { %v3340_v38 = vpop.eup %3339  ;;  %v2811_v4 = vmul.f32 -1.442695, %v2111_v43  ;;  %v2112_v50 = vadd.f32 %v4039_v2, %v2079_v19 }
 0x48e   : > { %3349 = vrcp.f32 %v2168_v44  ;;  %v2169_v17 = vadd.f32 1.0, %v3340_v38  ;;  %v2082_v45 = vpop.xlane.xlu1 %2081  ;;  %v3342_v5 = vpop.eup %3341 }
 0x48f   : > { %3351 = vpow2.f32 %v2811_v4  ;;  %v2113_v6 = vadd.f32 %v4039_v2, %v2082_v45  ;;  %v2167_v46 = vadd.f32 1.0, %v3342_v5  ;;  %v2812_v57 = vmul.f32 -1.442695, %v2112_v50  ;;  %v3399_v5 = vld [vmem:[%s3549_s1 + $0x8] sm:$0xff]  }
 0x490   : > { %3353 = vpow2.f32 %v2807_v40  ;;  %v2085_v49 = vpop.xlane.xlu0 %2084 }
 0x491   : > { %v2813_v52 = vmul.f32 -1.442695, %v2113_v6  ;;  %3355 = vrcp.f32 %v2169_v17  ;;  %v2114_v59 = vadd.f32 %v4039_v2, %v2085_v49  ;;  %v2217_v6 = vunpack.c.h.bf16 %v3399_v5 }
 0x492   : > { %v2088_v9 = vpop.xlane.xlu1 %2087 }
 0x493   : > { %v3344_v58 = vpop.eup %3343  ;;  %3357 = vpow2.f32 %v2813_v52  ;;  %v2115_v47 = vadd.f32 %v4039_v2, %v2088_v9  ;;  %v2814_v20 = vmul.f32 -1.442695, %v2114_v59  ;;  %v2214_v52 = vunpack.c.l.bf16 %v3400_v8  ;;  %v3402_v59 = vld [vmem:[%s3549_s1 + $0x18] sm:$0xff]  }
 0x494   : > { %v3346_v48 = vpop.eup %3345  ;;  %3359 = vpow2.f32 %v2809_v3  ;;  %v2172_v12 = vadd.f32 1.0, %v3344_v58  ;;  %v2091_v0 = vpop.xlane.xlu0 %2090  ;;  %v2216_v58 = vunpack.c.l.bf16 %v3399_v5  ;;  %v4084_v5 = vld [vmem:[%s4174_s16] ss:$0 sm:$0xff] }
 0x495   : > { %v2815_v11 = vmul.f32 -1.442695, %v2115_v47  ;;  %2232 = vperm.xlu0 %3292, %v3346_v48   ;;  %3361 = vrcp.f32 %v2167_v46  ;;  %v3348_v53 = vpop.eup %3347  ;;  %v2116_v21 = vadd.f32 %v4039_v2, %v2091_v0  ;;  %v2215_v46 = vunpack.c.h.bf16 %v3400_v8 }
 0x496   : > { %v2094_v63 = vpop.xlane.xlu1 %2093  ;;  %v2170_v60 = vadd.f32 1.0, %v3348_v53  ;;  %v3401_v53 = vld [vmem:[%s3549_s1 + $0x10] sm:$0xff]   ;;  %v2221_v0 = vunpack.c.h.bf16 %v3402_v59 }
 0x497   : > { %3363 = vpow2.f32 %v2815_v11  ;;  %v2117_v54 = vadd.f32 %v4039_v2, %v2094_v63  ;;  %v2816_v26 = vmul.f32 -1.442695, %v2116_v21 }
 0x498   : > { %v3350_v55 = vpop.eup %3349  ;;  %3365 = vpow2.f32 %v2810_v10 }
 0x499   : > { %v3352_v56 = vpop.eup %3351  ;;  %v2817_v61 = vmul.f32 -1.442695, %v2117_v54  ;;  %2242 = vperm.xlu1 %3293, %v3350_v55   ;;  %3367 = vrcp.f32 %v2172_v12  ;;  %v2218_v54 = vunpack.c.l.bf16 %v3401_v53  ;;  %v2219_v55 = vunpack.c.h.bf16 %v3401_v53 }
 0x49a   : > { %v2175_v62 = vadd.f32 1.0, %v3352_v56  ;;  %v3354_v1 = vpop.eup %3353 }
 0x49b   : > { %3369 = vpow2.f32 %v2817_v61  ;;  %v3356_v14 = vpop.eup %3355  ;;  %v2171_v22 = vadd.f32 1.0, %v3354_v1  ;;  %v2220_v61 = vunpack.c.l.bf16 %v3402_v59 }
 0x49c   : > { %3371 = vrcp.f32 %v2175_v62 }
 0x49d   : > { %v3358_v18 = vpop.eup %3357  ;;  %3373 = vpow2.f32 %v2812_v57  ;;  %2247 = vperm.xlu1 %3293, %v3356_v14  }
 0x49e   : > { %3375 = vrcp.f32 %v2170_v60  ;;  %v2177_v31 = vadd.f32 1.0, %v3358_v18  ;;  %v3360_v23 = vpop.eup %3359 }
 0x49f   : > { %v3362_v24 = vpop.eup %3361  ;;  %v2173_v28 = vadd.f32 1.0, %v3360_v23 }
 0x4a0   : > { %3377 = vrcp.f32 %v2177_v31 }
 0x4a1   : > { %v3364_v25 = vpop.eup %3363  ;;  %3379 = vpow2.f32 %v2814_v20  ;;  %2237 = vperm.xlu1 %3293, %v3362_v24   ;;  %v3403_v20 = vld [vmem:[%s3549_s1 + $0x20] sm:$0xff]  }
 0x4a2   : > { %3381 = vrcp.f32 %v2171_v22  ;;  %v2179_v29 = vadd.f32 1.0, %v3364_v25  ;;  %v3366_v13 = vpop.eup %3365  ;;  %v2223_v21 = vunpack.c.h.bf16 %v3403_v20  ;;  %v2222_v31 = vunpack.c.l.bf16 %v3403_v20 }
 0x4a3   : > { %v3368_v2 = vpop.eup %3367  ;;  %v2174_v32 = vadd.f32 1.0, %v3366_v13  ;;  %v2224_v13 = vunpack.c.l.bf16 %v3404_v27 }
 0x4a4   : > { %3383 = vrcp.f32 %v2179_v29 }
 0x4a5   : > { %v3370_v30 = vpop.eup %3369  ;;  %3385 = vpow2.f32 %v2816_v26  ;;  %2262 = vperm.xlu1 %3293, %v3368_v2  }
 0x4a6   : > { %v3372_v15 = vpop.eup %3371  ;;  %3387 = vrcp.f32 %v2173_v28  ;;  %v2181_v7 = vadd.f32 1.0, %v3370_v30  ;;  %v2225_v28 = vunpack.c.h.bf16 %v3404_v27 }
 0x4a7   : > { %v3374_v33 = vpop.eup %3373  ;;  %2277 = vperm.xlu0 %3292, %v3372_v15  }
 0x4a8   : > { %v3376_v34 = vpop.eup %3375  ;;  %3389 = vrcp.f32 %v2181_v7  ;;  %v2176_v36 = vadd.f32 1.0, %v3374_v33  ;;  %v3405_v7 = vld [vmem:[%s3549_s1 + $0x30] sm:$0xff]  }
 0x4a9   : > { %2252 = vperm.xlu1 %3293, %v3376_v34   ;;  %3391 = vrcp.f32 %v2174_v32  ;;  %v2227_v33 = vunpack.c.h.bf16 %v3405_v7 }
 0x4aa   : > { %v3378_v35 = vpop.eup %3377  ;;  %3393 = vrcp.f32 %v2176_v36 }
 0x4ab   : > { %v3380_v37 = vpop.eup %3379  ;;  %2287 = vperm.xlu0 %3292, %v3378_v35   ;;  %v2226_v35 = vunpack.c.l.bf16 %v3405_v7 }
 0x4ac   : > { %v3382_v39 = vpop.eup %3381  ;;  %v2178_v42 = vadd.f32 1.0, %v3380_v37 }
 0x4ad   : > { %2257 = vperm.xlu1 %3293, %v3382_v39  }
 0x4ae   : > { %v3384_v41 = vpop.eup %3383  ;;  %3395 = vrcp.f32 %v2178_v42 }
 0x4af   : > { %v3386_v43 = vpop.eup %3385  ;;  %2297 = vperm.xlu0 %3292, %v3384_v41   ;;  %v3406_v41 = vld [vmem:[%s3549_s1 + $0x38] sm:$0xff]  }
 0x4b0   : > { %v3388_v44 = vpop.eup %3387  ;;  %v2180_v40 = vadd.f32 1.0, %v3386_v43  ;;  %v2229_v42 = vunpack.c.h.bf16 %v3406_v41 }
 0x4b1   : > { %2267 = vperm.xlu1 %3293, %v3388_v44   ;;  %v2228_v44 = vunpack.c.l.bf16 %v3406_v41 }
 0x4b2   : > { %v3390_v38 = vpop.eup %3389  ;;  %3397 = vrcp.f32 %v2180_v40 }
 0x4b3   : > { %2307 = vperm.xlu0 %3292, %v3390_v38   ;;  %v3392_v16 = vpop.eup %3391 }
 0x4b4   : > { %v3394_v4 = vpop.eup %3393 }
 0x4b5   : > { %2272 = vperm.xlu1 %3293, %v3392_v16  }
 0x4b8   : > { %v3396_v17 = vpop.eup %3395 }
 0x4b9   : > { %2282 = vperm.xlu1 %3293, %v3394_v4  }
 0x4bc   : > { %v3398_v19 = vpop.eup %3397 }
 0x4bd   : > { %2292 = vperm.xlu1 %3293, %v3396_v17  }
 0x4c1   : > { %2302 = vperm.xlu1 %3293, %v3398_v19  }
 0x514   : > { %v2233_v9 = vpop.permute.xlu0 %2232 }
 0x515   : > { %v2310_v49 = vmul.f32 %v2233_v9, %v2214_v52 }
 0x518   : > { %v2243_v45 = vpop.permute.xlu1 %2242 }
 0x519   : > { %v2312_v50 = vmul.f32 %v2243_v45, %v2216_v58  ;;  %v3416_v45 = vmov 0.0  }
 0x51a   : > { %3213 = vmatprep.subr.bf16.mxu1 %v3416_v45  ;;  %3229 = vmatprep.mubr.msk.bf16.mxu1 %vm3417_vm4, %v3416_v45 }
 0x51c   : > { %v2248_v3 = vpop.permute.xlu1 %2247 }
 0x51d   : > { %v2313_v47 = vmul.f32 %v2248_v3, %v2217_v6 }
 0x51f   : > { %v2327_v51 = vpack.c.bf16 %v2313_v47, %v2312_v50 }
 0x520   : > { %v2238_v48 = vpop.permute.xlu1 %2237 }
 0x521   : > { %v2311_v10 = vmul.f32 %v2238_v48, %v2215_v46 }
 0x523   : > { %v2326_v11 = vpack.c.bf16 %v2311_v10, %v2310_v49 }
 0x524   : > { %v2263_v12 = vpop.permute.xlu1 %2262 }
 0x525   : > { %3197 = vmatprep.mubr.msk.bf16.mxu0 %vm696_vm0, %v2326_v11  ;;  %v2316_v18 = vmul.f32 %v2263_v12, %v2220_v61 }
 0x526   : > { %3198 = vmatmul.mubr.msk.bf16.vlgmr.msra.gmra.mrb[48].mxu0 %vm696_vm0, %v2327_v51  ;;  %v2278_v56 = vpop.permute.xlu0 %2277 }
 0x527   : > { %v2319_v26 = vmul.f32 %v2278_v56, %v2223_v21 }
 0x528   : > { %v2253_v63 = vpop.permute.xlu1 %2252 }
 0x529   : > { %v2314_v60 = vmul.f32 %v2253_v63, %v2218_v54 }
 0x52a   : > { %v2288_v23 = vpop.permute.xlu0 %2287 }
 0x52b   : > { %v2321_v32 = vmul.f32 %v2288_v23, %v2225_v28 }
 0x52c   : > { %v2258_v57 = vpop.permute.xlu1 %2257 }
 0x52d   : > { %v2315_v62 = vmul.f32 %v2258_v57, %v2219_v55 }
 0x52e   : > { %v2298_v30 = vpop.permute.xlu0 %2297 }
 0x52f   : > { %v2328_v1 = vpack.c.bf16 %v2315_v62, %v2314_v60  ;;  %v2323_v39 = vmul.f32 %v2298_v30, %v2227_v33 }
 0x530   : > { %v2268_v14 = vpop.permute.xlu1 %2267 }
 0x531   : > { %v2317_v22 = vmul.f32 %v2268_v14, %v2221_v0  ;;  %3201 = vmatprep.mubr.msk.bf16.mxu0 %vm696_vm0, %v2328_v1 }
 0x532   : > { %v2308_v38 = vpop.permute.xlu0 %2307 }
 0x533   : > { %v2329_v24 = vpack.c.bf16 %v2317_v22, %v2316_v18  ;;  %v2325_v4 = vmul.f32 %v2308_v38, %v2229_v42 }
 0x534   : > { %v2273_v25 = vpop.permute.xlu1 %2272 }
 0x535   : > { %v2318_v29 = vmul.f32 %v2273_v25, %v2222_v31  ;;  %3202 = vmatmul.mubr.msk.bf16.gmra.mrb[52].mxu0 %vm696_vm0, %v2329_v24 }
 0x537   : > { %v2330_v2 = vpack.c.bf16 %v2319_v26, %v2318_v29 }
 0x538   : > { %v2283_v15 = vpop.permute.xlu1 %2282 }
 0x539   : > { %v2320_v34 = vmul.f32 %v2283_v15, %v2224_v13  ;;  %3205 = vmatprep.mubr.msk.bf16.mxu0 %vm696_vm0, %v2330_v2 }
 0x53b   : > { %v2331_v36 = vpack.c.bf16 %v2321_v32, %v2320_v34 }
 0x53c   : > { %v2293_v37 = vpop.permute.xlu1 %2292 }
 0x53d   : > { %v2322_v43 = vmul.f32 %v2293_v37, %v2226_v35  ;;  %3206 = vmatmul.mubr.msk.bf16.gmra.mrb[56].mxu0 %vm696_vm0, %v2331_v36 }
 0x53f   : > { %v2332_v40 = vpack.c.bf16 %v2323_v39, %v2322_v43 }
 0x540   : > { %v2303_v16 = vpop.permute.xlu1 %2302 }
 0x541   : > { %v2324_v17 = vmul.f32 %v2303_v16, %v2228_v44  ;;  %3209 = vmatprep.mubr.msk.bf16.mxu0 %vm696_vm0, %v2332_v40 }
 0x543   : > { %v2333_v19 = vpack.c.bf16 %v2325_v4, %v2324_v17 }
 0x545   : > { %3210 = vmatmul.mubr.msk.bf16.gmra.mrb[60].mxu0 %vm696_vm0, %v2333_v19 }
 0x5f9   : > { %v3199_v6 = vpop.f32.mrb[48].mxu0 }
 0x5fa   : > { %v2424_v3 = vadd.f32 %v3199_v6, %v4084_v5  ;;  %v2415_v8 = vpop.f32.mrb[49].mxu0 }
 0x5fb   : > { %v2416_v52 = vadd.f32 %v4084_v5, %v2415_v8  ;;  %v3200_v46 = vpop.f32.mrb[50].mxu0 }
 0x5fc   : > { %v2480_v9 = vmax.f32 %v2424_v3, 0.0  ;;  %v2427_v58 = vadd.f32 %v3200_v46, %v4084_v5  ;;  %v2418_v47 = vpop.f32.mrb[51].mxu0 }
 0x5fd   : > { %v2478_v48 = vmax.f32 %v2416_v52, 0.0  ;;  %v2419_v49 = vadd.f32 %v4084_v5, %v2418_v47 }
 0x5fe   : > { %v2851_v10 = vpack.c.bf16 %v2480_v9, %v2480_v9  ;;  %v2481_v50 = vmax.f32 %v2427_v58, 0.0 }
 0x5ff   : > { %v2849_v11 = vpack.c.bf16 %v2478_v48, %v2478_v48  ;;  %v2479_v51 = vmax.f32 %v2419_v49, 0.0 }
 0x600   : > { %2561 = vst.msk [vmem:[%s4094_s22 + $0x8] sm:$0xf] %vm2558_vm5, %v2851_v10  ;;  %v2495_v12 = vpack.c.bf16 %v2481_v50, %v2480_v9  ;;  %v2852_v63 = vpack.c.bf16 %v2481_v50, %v2481_v50 }
 0x601   : > { %2559 = vst.msk [vmem:[%s4094_s22] sm:$0xf] %vm2558_vm5, %v2849_v11  ;;  %v2494_v53 = vpack.c.bf16 %v2479_v51, %v2478_v48  ;;  %v2850_v54 = vpack.c.bf16 %v2479_v51, %v2479_v51 }
 0x602   : > { %2562 = vst.msk [vmem:[%s4094_s22 + $0xc] sm:$0xf] %vm2558_vm5, %v2852_v63 }
 0x603   : > { %2560 = vst.msk [vmem:[%s4094_s22 + $0x4] sm:$0xf] %vm2558_vm5, %v2850_v54  ;;  %3214 = vmatpush3.bf16.msra.mxu1 %v2494_v53 }
 0x604   : > { %3215 = vmatprep.subr.bf16.mxu1 %v3416_v45 }
 0x607   : > { %3216 = vmatpush3.bf16.msra.mxu1 %v2495_v12 }
 0x608   : > { %v3203_v55 = vpop.f32.mrb[52].mxu0  ;;  %3217 = vmatprep.subr.bf16.mxu1 %v3416_v45 }
 0x609   : > { %v2440_v56 = vadd.f32 %v3203_v55, %v4084_v5  ;;  %v2431_v57 = vpop.f32.mrb[53].mxu0 }
 0x60a   : > { %v2432_v59 = vadd.f32 %v4084_v5, %v2431_v57  ;;  %v3204_v61 = vpop.f32.mrb[54].mxu0 }
 0x60b   : > { %v2484_v60 = vmax.f32 %v2440_v56, 0.0  ;;  %v2443_v62 = vadd.f32 %v3204_v61, %v4084_v5  ;;  %v2434_v0 = vpop.f32.mrb[55].mxu0 }
 0x60c   : > { %v2482_v1 = vmax.f32 %v2432_v59, 0.0  ;;  %v2435_v14 = vadd.f32 %v4084_v5, %v2434_v0 }
 0x60d   : > { %v2855_v18 = vpack.c.bf16 %v2484_v60, %v2484_v60  ;;  %v2485_v20 = vmax.f32 %v2443_v62, 0.0 }
 0x60e   : > { %v2853_v21 = vpack.c.bf16 %v2482_v1, %v2482_v1  ;;  %v2483_v22 = vmax.f32 %v2435_v14, 0.0 }
 0x60f   : > { %2565 = vst.msk [vmem:[%s4094_s22 + $0x18] sm:$0xf] %vm2558_vm5, %v2855_v18  ;;  %v2497_v31 = vpack.c.bf16 %v2485_v20, %v2484_v60  ;;  %v2856_v23 = vpack.c.bf16 %v2485_v20, %v2485_v20 }
 0x610   : > { %2563 = vst.msk [vmem:[%s4094_s22 + $0x10] sm:$0xf] %vm2558_vm5, %v2853_v21  ;;  %v2496_v24 = vpack.c.bf16 %v2483_v22, %v2482_v1  ;;  %v2854_v25 = vpack.c.bf16 %v2483_v22, %v2483_v22  ;;  %v3207_v26 = vpop.f32.mrb[56].mxu0 }
 0x611   : > { %2566 = vst.msk [vmem:[%s4094_s22 + $0x1c] sm:$0xf] %vm2558_vm5, %v2856_v23  ;;  %v2456_v27 = vadd.f32 %v3207_v26, %v4084_v5  ;;  %v2447_v28 = vpop.f32.mrb[57].mxu0 }
 0x612   : > { %2564 = vst.msk [vmem:[%s4094_s22 + $0x14] sm:$0xf] %vm2558_vm5, %v2854_v25  ;;  %v2448_v29 = vadd.f32 %v4084_v5, %v2447_v28  ;;  %v3208_v13 = vpop.f32.mrb[58].mxu0  ;;  %3218 = vmatpush3.bf16.msra.mxu1 %v2496_v24 }
 0x613   : > { %v2488_v2 = vmax.f32 %v2456_v27, 0.0  ;;  %v2459_v30 = vadd.f32 %v3208_v13, %v4084_v5  ;;  %v2450_v15 = vpop.f32.mrb[59].mxu0  ;;  %3219 = vmatprep.subr.bf16.mxu1 %v3416_v45 }
 0x614   : > { %v2486_v32 = vmax.f32 %v2448_v29, 0.0  ;;  %v2451_v7 = vadd.f32 %v4084_v5, %v2450_v15 }
 0x615   : > { %v2859_v33 = vpack.c.bf16 %v2488_v2, %v2488_v2  ;;  %v2489_v34 = vmax.f32 %v2459_v30, 0.0 }
 0x616   : > { %v2857_v35 = vpack.c.bf16 %v2486_v32, %v2486_v32  ;;  %v2487_v36 = vmax.f32 %v2451_v7, 0.0  ;;  %3220 = vmatpush3.bf16.msra.mxu1 %v2497_v31 }
 0x617   : > { %2569 = vst.msk [vmem:[%s4094_s22 + $0x28] sm:$0xf] %vm2558_vm5, %v2859_v33  ;;  %v2499_v37 = vpack.c.bf16 %v2489_v34, %v2488_v2  ;;  %v2860_v39 = vpack.c.bf16 %v2489_v34, %v2489_v34  ;;  %3221 = vmatprep.subr.bf16.mxu1 %v3416_v45 }
 0x618   : > { %2567 = vst.msk [vmem:[%s4094_s22 + $0x20] sm:$0xf] %vm2558_vm5, %v2857_v35  ;;  %v2498_v41 = vpack.c.bf16 %v2487_v36, %v2486_v32  ;;  %v2858_v42 = vpack.c.bf16 %v2487_v36, %v2487_v36  ;;  %v3211_v43 = vpop.f32.mrb[60].mxu0 }
 0x619   : > { %2570 = vst.msk [vmem:[%s4094_s22 + $0x2c] sm:$0xf] %vm2558_vm5, %v2860_v39  ;;  %v2472_v44 = vadd.f32 %v3211_v43, %v4084_v5  ;;  %v2463_v38 = vpop.f32.mrb[61].mxu0 }
 0x61a   : > { %2568 = vst.msk [vmem:[%s4094_s22 + $0x24] sm:$0xf] %vm2558_vm5, %v2858_v42  ;;  %v2464_v40 = vadd.f32 %v4084_v5, %v2463_v38  ;;  %v3212_v16 = vpop.f32.mrb[62].mxu0  ;;  %3222 = vmatpush3.bf16.msra.mxu1 %v2498_v41 }
 0x61b   : > { %v2492_v4 = vmax.f32 %v2472_v44, 0.0  ;;  %v2475_v17 = vadd.f32 %v3212_v16, %v4084_v5  ;;  %v2466_v19 = vpop.f32.mrb[63].mxu0  ;;  %3223 = vmatprep.subr.bf16.mxu1 %v3416_v45 }
 0x61c   : > { %v2490_v6 = vmax.f32 %v2464_v40, 0.0  ;;  %v2467_v3 = vadd.f32 %v4084_v5, %v2466_v19  ;;  %v2575_v5 = vld [vmem:[%s4175_s17] sm:$0x7] }
 0x61d   : > { %v2863_v8 = vpack.c.bf16 %v2492_v4, %v2492_v4  ;;  %v2493_v52 = vmax.f32 %v2475_v17, 0.0 }
 0x61e   : > { %v2861_v46 = vpack.c.bf16 %v2490_v6, %v2490_v6  ;;  %v2491_v9 = vmax.f32 %v2467_v3, 0.0  ;;  %3224 = vmatpush3.bf16.msra.mxu1 %v2499_v37 }
 0x61f   : > { %2573 = vst.msk [vmem:[%s4094_s22 + $0x38] sm:$0xf] %vm2558_vm5, %v2863_v8  ;;  %v2501_v58 = vpack.c.bf16 %v2493_v52, %v2492_v4  ;;  %v2864_v47 = vpack.c.bf16 %v2493_v52, %v2493_v52  ;;  %3225 = vmatprep.subr.bf16.mxu1 %v3416_v45 }
 0x620   : > { %2571 = vst.msk [vmem:[%s4094_s22 + $0x30] sm:$0xf] %vm2558_vm5, %v2861_v46  ;;  %v2500_v48 = vpack.c.bf16 %v2491_v9, %v2490_v6  ;;  %v2862_v49 = vpack.c.bf16 %v2491_v9, %v2491_v9 }
 0x621   : > { %2574 = vst.msk [vmem:[%s4094_s22 + $0x3c] sm:$0xf] %vm2558_vm5, %v2864_v47 }
 0x622   : > { %2572 = vst.msk [vmem:[%s4094_s22 + $0x34] sm:$0xf] %vm2558_vm5, %v2862_v49  ;;  %3226 = vmatpush3.bf16.msra.mxu1 %v2500_v48 }
 0x623   : > { %3227 = vmatprep.subr.bf16.mxu1 %v3416_v45 }
 0x626   : > { %3228 = vmatpush3.bf16.msra.mxu1 %v2501_v58 }
 0x629   : > { %3230 = vmatmul.mubr.bf16.vlgmr.msra.gmra.mrb[68].mxu1 %v2575_v5 }
 0x6fc   : > { %v2610_v10 = vpop.f32.mrb[68].mxu1 }
 0x6fd   : > { %v2616_v50 = vmul.f32 0.020833334, %v2610_v10  ;;  %v3231_v11 = vpop.f32.mrb[69].mxu1 }
 0x6fe   : > { %v2613_v51 = vpop.f32.mrb[70].mxu1 }
 0x6ff   : > { %2618 = vst.msk [vmem:[%s615_s26] sm:$0x3f] %vm2617_vm6, %v2616_v50  ;;  %v3232_v12 = vpop.f32.mrb[71].mxu1 }
 0x700 PF: > { %s32_s20 = sadd.s32 1, %s3413_s20  }
 0x701   : > { %p29_p4 = scmp.ge.s32.totalorder %s32_s20, 4  }
 0x703   :  { %31 = sbr.rel (!%p29_p4) target bundleno = 5 (0x5), region = 134 }

</bundles_post_ra>
